<compile_context>
chip_gen: v6e
topology: v6e:2x2x1
jax: 0.10.0
libtpu: 0.0.40
codegen_flags: <defaults>
</compile_context>

<pallas_src>
import functools
import numpy as np
import jax
import jax.numpy as jnp
from jax import lax
from jax.experimental import pallas as pl
from jax.experimental.pallas import tpu as pltpu

BN_EPS = 1e-5


def _round8(c):
    return ((c + 7) // 8) * 8


# ------------------------------ fused kernel ---------------------------------

def _fused_forward_kernel(
        feat_ref, wrench_ref, gripper_ref, mask_ref,
        w_wr1_ref, b_wr1_ref, w_wr2_ref, b_wr2_ref,
        w_gr1_ref, b_gr1_ref, w_gr2_ref, b_gr2_ref,
        w_in1_feat_ref, w_in1_wg_ref, b_in1_ref,
        w_in_later_ref, b_in_later_ref,
        wd_all_ref, bd_all_ref, w1_all_ref, b1_all_ref,
        w_out_all_ref, b_out_all_ref,
        out_ref,
        pad_ref,
        *, T, num_stages, num_layers, nc, nc_pad, maxd):
    f32 = jnp.float32
    mask = mask_ref[0].astype(f32)                        # (1, T)

    # Zero-bordered staging buffer used to build time-shifted activations.
    # Only columns [maxd, maxd+T) are ever overwritten afterwards, so the
    # maxd-wide borders stay zero and supply the conv zero-padding for free.
    pad_ref[...] = jnp.zeros(pad_ref.shape, f32)

    def shifted(x, d):
        # Returns (x[:, t-d], x[:, t+d]) with zeros outside [0, T).
        c = x.shape[0]
        pad_ref[pl.ds(0, c), pl.ds(maxd, T)] = x
        x_m = pad_ref[pl.ds(0, c), pl.ds(maxd - d, T)]
        x_p = pad_ref[pl.ds(0, c), pl.ds(maxd + d, T)]
        return x_m, x_p

    def dil_conv_taps(x, w3_ref, b_ref, d):
        # w3_ref: (3, Cout, Cin); tap 0 -> x[t-d], 1 -> x[t], 2 -> x[t+d]
        x_m, x_p = shifted(x, d)
        return (jnp.dot(w3_ref[0], x_m, preferred_element_type=f32)
                + jnp.dot(w3_ref[1], x, preferred_element_type=f32)
                + jnp.dot(w3_ref[2], x_p, preferred_element_type=f32)
                + b_ref[...])

    def sensor(x, w1r, b1r, w2r, b2r):
        # Conv1d(k3,d2,p2)+BN+ReLU -> Conv1d(k3,d4,p4)+BN+ReLU  (BN folded)
        h = jnp.maximum(dil_conv_taps(x, w1r, b1r, d=2), 0.0)
        return jnp.maximum(dil_conv_taps(h, w2r, b2r, d=4), 0.0)

    wf = sensor(wrench_ref[0].astype(f32), w_wr1_ref, b_wr1_ref, w_wr2_ref, b_wr2_ref)
    gf = sensor(gripper_ref[0].astype(f32), w_gr1_ref, b_gr1_ref, w_gr2_ref, b_gr2_ref)
    wg = jnp.concatenate([wf, gf], axis=0)                # (32, T)

    # Stage-1 conv_1x1 with w_in split by input group (no HBM concat of feat/wf/gf).
    out = (jnp.dot(w_in1_feat_ref[...], feat_ref[0].astype(f32),
                   preferred_element_type=f32)
           + jnp.dot(w_in1_wg_ref[...], wg, preferred_element_type=f32)
           + b_in1_ref[...])                              # (fm, T)

    ch = lax.broadcasted_iota(jnp.int32, (nc_pad, 1), 0)
    pad_bias = jnp.where(ch < nc, 0.0, -1e30)             # kill padded rows in softmax

    for s in range(num_stages):
        for i in range(num_layers):
            d = 2 ** i
            idx = s * num_layers + i
            x_m, x_p = shifted(out, d)
            xs = jnp.concatenate([x_m, out, x_p], axis=0)           # (3*fm, T)
            h = jnp.dot(wd_all_ref[idx], xs, preferred_element_type=f32) + bd_all_ref[idx]
            h = jnp.maximum(h, 0.0)
            h = jnp.dot(w1_all_ref[idx], h, preferred_element_type=f32) + b1_all_ref[idx]
            # nn.Dropout is identity in eval mode.
            out = (out + h) * mask
        logits = (jnp.dot(w_out_all_ref[s], out, preferred_element_type=f32)
                  + b_out_all_ref[s]) * mask                        # (nc_pad, T); pad rows 0
        out_ref[s, 0] = logits.astype(out_ref.dtype)
        if s + 1 < num_stages:
            # F.softmax over the nc real channels, * mask (fused, no extra launch).
            z = logits + pad_bias
            z = z - jnp.max(z, axis=0, keepdims=True)
            e = jnp.exp(z)
            sm = (e / jnp.sum(e, axis=0, keepdims=True)) * mask
            out = (jnp.dot(w_in_later_ref[s], sm, preferred_element_type=f32)
                   + b_in_later_ref[s])                             # next stage conv_1x1


# --------------------------- trace-time weight prep --------------------------

def _fold_bn(w, b, bn):
    # eval-mode BatchNorm1d folded into the preceding Conv1d
    s = bn['gamma'] / jnp.sqrt(bn['var'] + BN_EPS)
    return w * s[:, None, None], b * s + bn['beta'] - bn['mean'] * s


def _pack_sensor(p, cin_pad):
    w1, b1 = _fold_bn(p['conv1_w'], p['conv1_b'], p['bn1'])
    w2, b2 = _fold_bn(p['conv2_w'], p['conv2_b'], p['bn2'])
    cin = w1.shape[1]
    w1t = jnp.pad(jnp.transpose(w1, (2, 0, 1)),            # (3, 32, cin_pad)
                  ((0, 0), (0, 0), (0, cin_pad - cin)))
    w2t = jnp.transpose(w2, (2, 0, 1))                      # (3, 16, 32)
    return w1t, b1.reshape(-1, 1), w2t, b2.reshape(-1, 1)


def _rep(shape):
    n = len(shape)
    return pl.BlockSpec(shape, lambda b, _n=n: (0,) * _n)


# ------------------------------ model forward --------------------------------

def multimodal_classifier_forward(params, feat, wrench, gripper, mask_human):
    N, feat_dim, T = feat.shape
    stages = params['stages']
    S = len(stages)
    L = len(stages[0]['layers'])
    fm = stages[0]['w_in'].shape[0]
    nc = stages[0]['w_out'].shape[0]
    nc_pad = _round8(nc)

    cin_w_pad = _round8(wrench.shape[1])
    cin_g_pad = _round8(gripper.shape[1])
    wrench_p = jnp.pad(wrench, ((0, 0), (0, cin_w_pad - wrench.shape[1]), (0, 0)))
    gripper_p = jnp.pad(gripper, ((0, 0), (0, cin_g_pad - gripper.shape[1]), (0, 0)))

    # Sensor models (BN folded, tap weights padded to 8 input channels).
    w_wr1, b_wr1, w_wr2, b_wr2 = _pack_sensor(params['wrench'], cin_w_pad)
    w_gr1, b_gr1, w_gr2, b_gr2 = _pack_sensor(params['gripper'], cin_g_pad)

    # Stage-1 conv_1x1: split into feat columns and sensor-feature columns.
    s1 = stages[0]
    w_in1_feat = s1['w_in'][:, :feat_dim]                  # (fm, 2048)
    w_in1_wg = s1['w_in'][:, feat_dim:]                    # (fm, 32)
    b_in1 = s1['b_in'].reshape(fm, 1)

    # Later-stage conv_1x1 weights (input = nc softmax channels, padded to nc_pad).
    if S > 1:
        w_in_later = jnp.stack(
            [jnp.pad(sp['w_in'], ((0, 0), (0, nc_pad - nc))) for sp in stages[1:]])
        b_in_later = jnp.stack([sp['b_in'].reshape(fm, 1) for sp in stages[1:]])
    else:
        w_in_later = jnp.zeros((1, fm, nc_pad), jnp.float32)
        b_in_later = jnp.zeros((1, fm, 1), jnp.float32)

    # Residual-layer weights packed so each dilated conv is one (fm, 3*fm) matmul.
    wd_all = jnp.stack([jnp.transpose(lp['wd'], (0, 2, 1)).reshape(fm, 3 * fm)
                        for sp in stages for lp in sp['layers']])
    bd_all = jnp.stack([lp['bd'].reshape(fm, 1) for sp in stages for lp in sp['layers']])
    w1_all = jnp.stack([lp['w1'] for sp in stages for lp in sp['layers']])
    b1_all = jnp.stack([lp['b1'].reshape(fm, 1) for sp in stages for lp in sp['layers']])

    # conv_out padded to nc_pad rows (zero rows -> zero outputs, sliced off below).
    w_out_all = jnp.stack([jnp.pad(sp['w_out'], ((0, nc_pad - nc), (0, 0)))
                           for sp in stages])
    b_out_all = jnp.stack([jnp.pad(sp['b_out'], (0, nc_pad - nc)).reshape(nc_pad, 1)
                           for sp in stages])

    mask_row = mask_human[:, 0:1, :]

    # Shift staging buffer: widest activation rows x (T + 2*max dilation).
    maxd = max(4, 2 ** (L - 1))            # sensor convs use d=4; layers up to 2^(L-1)
    pad_rows = max(fm, 32, cin_w_pad, cin_g_pad)

    kern = functools.partial(_fused_forward_kernel, T=T, num_stages=S,
                             num_layers=L, nc=nc, nc_pad=nc_pad, maxd=maxd)

    out = pl.pallas_call(
        kern,
        out_shape=jax.ShapeDtypeStruct((S, N, nc_pad, T), feat.dtype),
        grid=(N,),
        in_specs=[
            pl.BlockSpec((1, feat_dim, T), lambda b: (b, 0, 0)),
            pl.BlockSpec((1, cin_w_pad, T), lambda b: (b, 0, 0)),
            pl.BlockSpec((1, cin_g_pad, T), lambda b: (b, 0, 0)),
            pl.BlockSpec((1, 1, T), lambda b: (b, 0, 0)),
            _rep(w_wr1.shape), _rep(b_wr1.shape), _rep(w_wr2.shape), _rep(b_wr2.shape),
            _rep(w_gr1.shape), _rep(b_gr1.shape), _rep(w_gr2.shape), _rep(b_gr2.shape),
            _rep(w_in1_feat.shape), _rep(w_in1_wg.shape), _rep(b_in1.shape),
            _rep(w_in_later.shape), _rep(b_in_later.shape),
            _rep(wd_all.shape), _rep(bd_all.shape), _rep(w1_all.shape), _rep(b1_all.shape),
            _rep(w_out_all.shape), _rep(b_out_all.shape),
        ],
        out_specs=pl.BlockSpec((S, 1, nc_pad, T), lambda b: (0, b, 0, 0)),
        scratch_shapes=[pltpu.VMEM((pad_rows, T + 2 * maxd), jnp.float32)],
        compiler_params=pltpu.CompilerParams(dimension_semantics=("parallel",)),
    )(feat, wrench_p, gripper_p, mask_row,
      w_wr1, b_wr1, w_wr2, b_wr2, w_gr1, b_gr1, w_gr2, b_gr2,
      w_in1_feat, w_in1_wg, b_in1, w_in_later, b_in_later,
      wd_all, bd_all, w1_all, b1_all, w_out_all, b_out_all)

    return out[:, :, :nc, :]


# ----------------------------- parameter init --------------------------------

def _uniform(key, shape, fan_in):
    bound = 1.0 / np.sqrt(fan_in)
    return jax.random.uniform(key, shape, jnp.float32, -bound, bound)


def _init_bn(key, c):
    k = jax.random.split(key, 4)
    return dict(gamma=1.0 + 0.1 * jax.random.normal(k[0], (c,), jnp.float32),
                beta=0.1 * jax.random.normal(k[1], (c,), jnp.float32),
                mean=0.1 * jax.random.normal(k[2], (c,), jnp.float32),
                var=0.5 + jax.random.uniform(k[3], (c,), jnp.float32))


def _init_sensor(key, cin):
    k = jax.random.split(key, 6)
    return dict(conv1_w=_uniform(k[0], (32, cin, 3), cin * 3),
                conv1_b=_uniform(k[1], (32,), cin * 3),
                bn1=_init_bn(k[2], 32),
                conv2_w=_uniform(k[3], (16, 32, 3), 32 * 3),
                conv2_b=_uniform(k[4], (16,), 32 * 3),
                bn2=_init_bn(k[5], 16))


def _init_stage(key, num_layers, fm, dim_in, n_classes):
    k = jax.random.split(key, 4 + num_layers)
    p = dict(w_in=_uniform(k[0], (fm, dim_in), dim_in),
             b_in=_uniform(k[1], (fm,), dim_in),
             w_out=_uniform(k[2], (n_classes, fm), fm),
             b_out=_uniform(k[3], (n_classes,), fm))
    layers = []
    for i in range(num_layers):
        kk = jax.random.split(k[4 + i], 4)
        layers.append(dict(wd=_uniform(kk[0], (fm, fm, 3), fm * 3),
                           bd=_uniform(kk[1], (fm,), fm * 3),
                           w1=_uniform(kk[2], (fm, fm), fm),
                           b1=_uniform(kk[3], (fm,), fm)))
    p['layers'] = layers
    return p


def init_params(key, hp):
    dim = 2048 + 16 + 16                       # input_type == 'video_FT_gripper'
    nc = hp['num_outcome_classes'] - 2         # loss_function == 'Lcls'
    k = jax.random.split(key, 2 + hp['num_stages'])
    stages = [_init_stage(k[2], hp['num_layers'], hp['num_f_maps'], dim, nc)]
    for s in range(1, hp['num_stages']):
        stages.append(_init_stage(k[2 + s], hp['num_layers'], hp['num_f_maps'], nc, nc))
    return dict(wrench=_init_sensor(k[0], 6),
                gripper=_init_sensor(k[1], 1),
                stages=stages)


# ------------------------- pure-JAX reference check --------------------------

def _ref_conv1d(x, w, b, dilation, padding):
    y = lax.conv_general_dilated(
        x, w, window_strides=(1,), padding=[(padding, padding)],
        rhs_dilation=(dilation,), dimension_numbers=('NCH', 'OIH', 'NCH'),
        precision=lax.Precision.HIGHEST)
    return y + b[None, :, None]


def _ref_bn(x, bn):
    s = 1.0 / jnp.sqrt(bn['var'] + BN_EPS)
    return ((x - bn['mean'][None, :, None]) * s[None, :, None]
            * bn['gamma'][None, :, None] + bn['beta'][None, :, None])


def _ref_sensor(x, p):
    h = jax.nn.relu(_ref_bn(_ref_conv1d(x, p['conv1_w'], p['conv1_b'], 2, 2), p['bn1']))
    return jax.nn.relu(_ref_bn(_ref_conv1d(h, p['conv2_w'], p['conv2_b'], 4, 4), p['bn2']))


def _ref_conv1x1(x, w, b):
    return jnp.einsum('oc,nct->not', w, x,
                      precision=lax.Precision.HIGHEST) + b[None, :, None]


def _ref_stage(x, mask_row, p):
    out = _ref_conv1x1(x, p['w_in'], p['b_in'])
    for i, lp in enumerate(p['layers']):
        h = jax.nn.relu(_ref_conv1d(out, lp['wd'], lp['bd'], 2 ** i, 2 ** i))
        h = _ref_conv1x1(h, lp['w1'], lp['b1'])
        out = (out + h) * mask_row
    return _ref_conv1x1(out, p['w_out'], p['b_out']) * mask_row


def _ref_forward(params, feat, wrench, gripper, mask_human):
    wf = _ref_sensor(wrench, params['wrench'])
    gf = _ref_sensor(gripper, params['gripper'])
    x = jnp.concatenate([feat, wf, gf], axis=1)
    mask_row = mask_human[:, 0:1, :]
    out = _ref_stage(x, mask_row, params['stages'][0])
    outs = [out]
    for sp in params['stages'][1:]:
        out = _ref_stage(jax.nn.softmax(out, axis=1) * mask_row, mask_row, sp)
        outs.append(out)
    return jnp.stack(outs, axis=0)


# ----------------------------------- main ------------------------------------

if __name__ == "__main__":
    hp = dict(input_type='video_FT_gripper', loss_function='Lcls',
              num_layers=3, num_f_maps=32, num_stages=2,
              num_outcome_classes=9, num_seg_classes=7)
    N, T = 2, 128

    key = jax.random.PRNGKey(0)
    kp, kf, kw, kg = jax.random.split(key, 4)
    params = init_params(kp, hp)

    feat = jax.random.normal(kf, (N, 2048, T), jnp.float32)
    wrench = jax.random.normal(kw, (N, 6, T), jnp.float32)
    gripper = jax.random.normal(kg, (N, 1, T), jnp.float32)
    lengths = jnp.array([T, 3 * T // 4])
    mask_human = ((jnp.arange(T)[None, None, :] < lengths[:, None, None])
                  .astype(jnp.float32) * jnp.ones((N, hp['num_seg_classes'], T),
                                                  jnp.float32))
    # NOTE: task_var / robot_activity / human_activity / mask_robot / path are
    # only used by loss_fn, not by forward.
    # TODO(synk): loss_fn (CrossEntropy / MSE smoothing loss) not implemented;
    # only the (eval-mode) forward pass is translated.

    fwd = jax.jit(multimodal_classifier_forward)
    out = jax.block_until_ready(fwd(params, feat, wrench, gripper, mask_human))
    assert out.shape == (hp['num_stages'], N, hp['num_outcome_classes'] - 2, T), out.shape
    assert bool(jnp.all(jnp.isfinite(out))), "non-finite output"

    ref = _ref_forward(params, feat, wrench, gripper, mask_human)
    err = float(jnp.max(jnp.abs(out - ref)))
    assert err < 2e-2, f"mismatch vs reference: max abs err = {err}"

    print("KERNEL_OK")
</pallas_src>

<mosaic_0001>
module attributes {stable_mosaic.version = 11 : i64} {
  func.func @_fused_forward_kernel(%arg0: i32, %arg1: memref<1x2048x128xf32, #tpu.memory_space<vmem>>, %arg2: memref<1x8x128xf32, #tpu.memory_space<vmem>>, %arg3: memref<1x8x128xf32, #tpu.memory_space<vmem>>, %arg4: memref<1x1x128xf32, #tpu.memory_space<vmem>>, %arg5: memref<3x32x8xf32, #tpu.memory_space<vmem>>, %arg6: memref<32x1xf32, #tpu.memory_space<vmem>>, %arg7: memref<3x16x32xf32, #tpu.memory_space<vmem>>, %arg8: memref<16x1xf32, #tpu.memory_space<vmem>>, %arg9: memref<3x32x8xf32, #tpu.memory_space<vmem>>, %arg10: memref<32x1xf32, #tpu.memory_space<vmem>>, %arg11: memref<3x16x32xf32, #tpu.memory_space<vmem>>, %arg12: memref<16x1xf32, #tpu.memory_space<vmem>>, %arg13: memref<32x2048xf32, #tpu.memory_space<vmem>>, %arg14: memref<32x32xf32, #tpu.memory_space<vmem>>, %arg15: memref<32x1xf32, #tpu.memory_space<vmem>>, %arg16: memref<1x32x8xf32, #tpu.memory_space<vmem>>, %arg17: memref<1x32x1xf32, #tpu.memory_space<vmem>>, %arg18: memref<6x32x96xf32, #tpu.memory_space<vmem>>, %arg19: memref<6x32x1xf32, #tpu.memory_space<vmem>>, %arg20: memref<6x32x32xf32, #tpu.memory_space<vmem>>, %arg21: memref<6x32x1xf32, #tpu.memory_space<vmem>>, %arg22: memref<2x8x32xf32, #tpu.memory_space<vmem>>, %arg23: memref<2x8x1xf32, #tpu.memory_space<vmem>>, %arg24: memref<2x1x8x128xf32, #tpu.memory_space<vmem>>, %arg25: memref<32x136xf32, #tpu.memory_space<vmem>>) attributes {dimension_semantics = [#tpu.dimension_semantics<parallel>], iteration_bounds = array<i64: 2>, scalar_prefetch = 0 : i64, scratch_operands = 1 : i64, tpu.core_type = #tpu.core_type<tc>, window_params = [{transform_indices = @transform_0, window_bounds = array<i64: 1, 2048, 128>}, {transform_indices = @transform_1, window_bounds = array<i64: 1, 8, 128>}, {transform_indices = @transform_2, window_bounds = array<i64: 1, 8, 128>}, {transform_indices = @transform_3, window_bounds = array<i64: 1, 1, 128>}, {pipeline_mode = #tpu.pipeline_mode<synchronous>, transform_indices = @transform_4, window_bounds = array<i64: 3, 32, 8>}, {pipeline_mode = #tpu.pipeline_mode<synchronous>, transform_indices = @transform_5, window_bounds = array<i64: 32, 1>}, {pipeline_mode = #tpu.pipeline_mode<synchronous>, transform_indices = @transform_6, window_bounds = array<i64: 3, 16, 32>}, {pipeline_mode = #tpu.pipeline_mode<synchronous>, transform_indices = @transform_7, window_bounds = array<i64: 16, 1>}, {pipeline_mode = #tpu.pipeline_mode<synchronous>, transform_indices = @transform_8, window_bounds = array<i64: 3, 32, 8>}, {pipeline_mode = #tpu.pipeline_mode<synchronous>, transform_indices = @transform_9, window_bounds = array<i64: 32, 1>}, {pipeline_mode = #tpu.pipeline_mode<synchronous>, transform_indices = @transform_10, window_bounds = array<i64: 3, 16, 32>}, {pipeline_mode = #tpu.pipeline_mode<synchronous>, transform_indices = @transform_11, window_bounds = array<i64: 16, 1>}, {pipeline_mode = #tpu.pipeline_mode<synchronous>, transform_indices = @transform_12, window_bounds = array<i64: 32, 2048>}, {pipeline_mode = #tpu.pipeline_mode<synchronous>, transform_indices = @transform_13, window_bounds = array<i64: 32, 32>}, {pipeline_mode = #tpu.pipeline_mode<synchronous>, transform_indices = @transform_14, window_bounds = array<i64: 32, 1>}, {pipeline_mode = #tpu.pipeline_mode<synchronous>, transform_indices = @transform_15, window_bounds = array<i64: 1, 32, 8>}, {pipeline_mode = #tpu.pipeline_mode<synchronous>, transform_indices = @transform_16, window_bounds = array<i64: 1, 32, 1>}, {pipeline_mode = #tpu.pipeline_mode<synchronous>, transform_indices = @transform_17, window_bounds = array<i64: 6, 32, 96>}, {pipeline_mode = #tpu.pipeline_mode<synchronous>, transform_indices = @transform_18, window_bounds = array<i64: 6, 32, 1>}, {pipeline_mode = #tpu.pipeline_mode<synchronous>, transform_indices = @transform_19, window_bounds = array<i64: 6, 32, 32>}, {pipeline_mode = #tpu.pipeline_mode<synchronous>, transform_indices = @transform_20, window_bounds = array<i64: 6, 32, 1>}, {pipeline_mode = #tpu.pipeline_mode<synchronous>, transform_indices = @transform_21, window_bounds = array<i64: 2, 8, 32>}, {pipeline_mode = #tpu.pipeline_mode<synchronous>, transform_indices = @transform_22, window_bounds = array<i64: 2, 8, 1>}, {transform_indices = @transform_23, window_bounds = array<i64: 2, 1, 8, 128>}]} {
    %c0 = arith.constant 0 : index
    %c0_0 = arith.constant 0 : index
    %c0_1 = arith.constant 0 : index
    %0 = vector.load %arg4[%c0, %c0_0, %c0_1] : memref<1x1x128xf32, #tpu.memory_space<vmem>>, vector<1x1x128xf32>
    %1 = vector.shape_cast %0 : vector<1x1x128xf32> to vector<1x128xf32>
    %cst = arith.constant 0.000000e+00 : f32
    %2 = vector.broadcast %cst : f32 to vector<32x136xf32>
    %c0_2 = arith.constant 0 : index
    %c0_3 = arith.constant 0 : index
    %3 = vector.load %arg25[%c0_2, %c0_3] : memref<32x136xf32, #tpu.memory_space<vmem>>, vector<32x136xf32>
    tpu.vector_store %arg25[%c0_2, %c0_3], %2 {strides = array<i32>} : memref<32x136xf32, #tpu.memory_space<vmem>>, vector<32x136xf32>,
    %c0_4 = arith.constant 0 : index
    %c0_5 = arith.constant 0 : index
    %c0_6 = arith.constant 0 : index
    %4 = vector.load %arg2[%c0_4, %c0_5, %c0_6] : memref<1x8x128xf32, #tpu.memory_space<vmem>>, vector<1x8x128xf32>
    %5 = vector.shape_cast %4 : vector<1x8x128xf32> to vector<8x128xf32>
    %c0_7 = arith.constant 0 : index
    %c4 = arith.constant 4 : index
    %6 = vector.load %arg25[%c0_7, %c4] : memref<32x136xf32, #tpu.memory_space<vmem>>, vector<8x128xf32>
    tpu.vector_store %arg25[%c0_7, %c4], %5 {strides = array<i32>} : memref<32x136xf32, #tpu.memory_space<vmem>>, vector<8x128xf32>,
    %c0_8 = arith.constant 0 : index
    %c2 = arith.constant 2 : index
    %7 = vector.load %arg25[%c0_8, %c2] : memref<32x136xf32, #tpu.memory_space<vmem>>, vector<8x128xf32>
    %c0_9 = arith.constant 0 : index
    %c6 = arith.constant 6 : index
    %8 = vector.load %arg25[%c0_9, %c6] : memref<32x136xf32, #tpu.memory_space<vmem>>, vector<8x128xf32>
    %c0_10 = arith.constant 0 : index
    %c0_11 = arith.constant 0 : index
    %c0_12 = arith.constant 0 : index
    %9 = vector.load %arg5[%c0_10, %c0_11, %c0_12] : memref<3x32x8xf32, #tpu.memory_space<vmem>>, vector<1x32x8xf32>
    %10 = vector.shape_cast %9 : vector<1x32x8xf32> to vector<32x8xf32>
    %cst_13 = arith.constant dense<0.000000e+00> : vector<32x128xf32>
    %11 = tpu.matmul %10, %7, %cst_13 {dimension_numbers = #tpu.dot_dimension_numbers<[1], [0], [0], [1], [0, 0, 1, 1], [], []>} : vector<32x8xf32>, vector<8x128xf32>, vector<32x128xf32> -> vector<32x128xf32>
    %c1 = arith.constant 1 : index
    %c0_14 = arith.constant 0 : index
    %c0_15 = arith.constant 0 : index
    %12 = vector.load %arg5[%c1, %c0_14, %c0_15] : memref<3x32x8xf32, #tpu.memory_space<vmem>>, vector<1x32x8xf32>
    %13 = vector.shape_cast %12 : vector<1x32x8xf32> to vector<32x8xf32>
    %cst_16 = arith.constant dense<0.000000e+00> : vector<32x128xf32>
    %14 = tpu.matmul %13, %5, %cst_16 {dimension_numbers = #tpu.dot_dimension_numbers<[1], [0], [0], [1], [0, 0, 1, 1], [], []>} : vector<32x8xf32>, vector<8x128xf32>, vector<32x128xf32> -> vector<32x128xf32>
    %15 = arith.addf %11, %14 : vector<32x128xf32>
    %c2_17 = arith.constant 2 : index
    %c0_18 = arith.constant 0 : index
    %c0_19 = arith.constant 0 : index
    %16 = vector.load %arg5[%c2_17, %c0_18, %c0_19] : memref<3x32x8xf32, #tpu.memory_space<vmem>>, vector<1x32x8xf32>
    %17 = vector.shape_cast %16 : vector<1x32x8xf32> to vector<32x8xf32>
    %cst_20 = arith.constant dense<0.000000e+00> : vector<32x128xf32>
    %18 = tpu.matmul %17, %8, %cst_20 {dimension_numbers = #tpu.dot_dimension_numbers<[1], [0], [0], [1], [0, 0, 1, 1], [], []>} : vector<32x8xf32>, vector<8x128xf32>, vector<32x128xf32> -> vector<32x128xf32>
    %19 = arith.addf %15, %18 : vector<32x128xf32>
    %c0_21 = arith.constant 0 : index
    %c0_22 = arith.constant 0 : index
    %20 = vector.load %arg6[%c0_21, %c0_22] : memref<32x1xf32, #tpu.memory_space<vmem>>, vector<32x1xf32>
    %21 = vector.broadcast %20 : vector<32x1xf32> to vector<32x128xf32>
    %22 = arith.addf %19, %21 : vector<32x128xf32>
    %cst_23 = arith.constant 0.000000e+00 : f32
    %23 = vector.broadcast %cst_23 : f32 to vector<32x128xf32>
    %24 = arith.maximumf %22, %23 : vector<32x128xf32>
    %c0_24 = arith.constant 0 : index
    %c4_25 = arith.constant 4 : index
    %25 = vector.load %arg25[%c0_24, %c4_25] : memref<32x136xf32, #tpu.memory_space<vmem>>, vector<32x128xf32>
    tpu.vector_store %arg25[%c0_24, %c4_25], %24 {strides = array<i32>} : memref<32x136xf32, #tpu.memory_space<vmem>>, vector<32x128xf32>,
    %c0_26 = arith.constant 0 : index
    %c0_27 = arith.constant 0 : index
    %26 = vector.load %arg25[%c0_26, %c0_27] : memref<32x136xf32, #tpu.memory_space<vmem>>, vector<32x128xf32>
    %c0_28 = arith.constant 0 : index
    %c8 = arith.constant 8 : index
    %27 = vector.load %arg25[%c0_28, %c8] : memref<32x136xf32, #tpu.memory_space<vmem>>, vector<32x128xf32>
    %c0_29 = arith.constant 0 : index
    %c0_30 = arith.constant 0 : index
    %c0_31 = arith.constant 0 : index
    %28 = vector.load %arg7[%c0_29, %c0_30, %c0_31] : memref<3x16x32xf32, #tpu.memory_space<vmem>>, vector<1x16x32xf32>
    %29 = vector.shape_cast %28 : vector<1x16x32xf32> to vector<16x32xf32>
    %cst_32 = arith.constant dense<0.000000e+00> : vector<16x128xf32>
    %30 = tpu.matmul %29, %26, %cst_32 {dimension_numbers = #tpu.dot_dimension_numbers<[1], [0], [0], [1], [0, 0, 1, 1], [], []>} : vector<16x32xf32>, vector<32x128xf32>, vector<16x128xf32> -> vector<16x128xf32>
    %c1_33 = arith.constant 1 : index
    %c0_34 = arith.constant 0 : index
    %c0_35 = arith.constant 0 : index
    %31 = vector.load %arg7[%c1_33, %c0_34, %c0_35] : memref<3x16x32xf32, #tpu.memory_space<vmem>>, vector<1x16x32xf32>
    %32 = vector.shape_cast %31 : vector<1x16x32xf32> to vector<16x32xf32>
    %cst_36 = arith.constant dense<0.000000e+00> : vector<16x128xf32>
    %33 = tpu.matmul %32, %24, %cst_36 {dimension_numbers = #tpu.dot_dimension_numbers<[1], [0], [0], [1], [0, 0, 1, 1], [], []>} : vector<16x32xf32>, vector<32x128xf32>, vector<16x128xf32> -> vector<16x128xf32>
    %34 = arith.addf %30, %33 : vector<16x128xf32>
    %c2_37 = arith.constant 2 : index
    %c0_38 = arith.constant 0 : index
    %c0_39 = arith.constant 0 : index
    %35 = vector.load %arg7[%c2_37, %c0_38, %c0_39] : memref<3x16x32xf32, #tpu.memory_space<vmem>>, vector<1x16x32xf32>
    %36 = vector.shape_cast %35 : vector<1x16x32xf32> to vector<16x32xf32>
    %cst_40 = arith.constant dense<0.000000e+00> : vector<16x128xf32>
    %37 = tpu.matmul %36, %27, %cst_40 {dimension_numbers = #tpu.dot_dimension_numbers<[1], [0], [0], [1], [0, 0, 1, 1], [], []>} : vector<16x32xf32>, vector<32x128xf32>, vector<16x128xf32> -> vector<16x128xf32>
    %38 = arith.addf %34, %37 : vector<16x128xf32>
    %c0_41 = arith.constant 0 : index
    %c0_42 = arith.constant 0 : index
    %39 = vector.load %arg8[%c0_41, %c0_42] : memref<16x1xf32, #tpu.memory_space<vmem>>, vector<16x1xf32>
    %40 = vector.broadcast %39 : vector<16x1xf32> to vector<16x128xf32>
    %41 = arith.addf %38, %40 : vector<16x128xf32>
    %cst_43 = arith.constant 0.000000e+00 : f32
    %42 = vector.broadcast %cst_43 : f32 to vector<16x128xf32>
    %43 = arith.maximumf %41, %42 : vector<16x128xf32>
    %c0_44 = arith.constant 0 : index
    %c0_45 = arith.constant 0 : index
    %c0_46 = arith.constant 0 : index
    %44 = vector.load %arg3[%c0_44, %c0_45, %c0_46] : memref<1x8x128xf32, #tpu.memory_space<vmem>>, vector<1x8x128xf32>
    %45 = vector.shape_cast %44 : vector<1x8x128xf32> to vector<8x128xf32>
    %c0_47 = arith.constant 0 : index
    %c4_48 = arith.constant 4 : index
    %46 = vector.load %arg25[%c0_47, %c4_48] : memref<32x136xf32, #tpu.memory_space<vmem>>, vector<8x128xf32>
    tpu.vector_store %arg25[%c0_47, %c4_48], %45 {strides = array<i32>} : memref<32x136xf32, #tpu.memory_space<vmem>>, vector<8x128xf32>,
    %c0_49 = arith.constant 0 : index
    %c2_50 = arith.constant 2 : index
    %47 = vector.load %arg25[%c0_49, %c2_50] : memref<32x136xf32, #tpu.memory_space<vmem>>, vector<8x128xf32>
    %c0_51 = arith.constant 0 : index
    %c6_52 = arith.constant 6 : index
    %48 = vector.load %arg25[%c0_51, %c6_52] : memref<32x136xf32, #tpu.memory_space<vmem>>, vector<8x128xf32>
    %c0_53 = arith.constant 0 : index
    %c0_54 = arith.constant 0 : index
    %c0_55 = arith.constant 0 : index
    %49 = vector.load %arg9[%c0_53, %c0_54, %c0_55] : memref<3x32x8xf32, #tpu.memory_space<vmem>>, vector<1x32x8xf32>
    %50 = vector.shape_cast %49 : vector<1x32x8xf32> to vector<32x8xf32>
    %cst_56 = arith.constant dense<0.000000e+00> : vector<32x128xf32>
    %51 = tpu.matmul %50, %47, %cst_56 {dimension_numbers = #tpu.dot_dimension_numbers<[1], [0], [0], [1], [0, 0, 1, 1], [], []>} : vector<32x8xf32>, vector<8x128xf32>, vector<32x128xf32> -> vector<32x128xf32>
    %c1_57 = arith.constant 1 : index
    %c0_58 = arith.constant 0 : index
    %c0_59 = arith.constant 0 : index
    %52 = vector.load %arg9[%c1_57, %c0_58, %c0_59] : memref<3x32x8xf32, #tpu.memory_space<vmem>>, vector<1x32x8xf32>
    %53 = vector.shape_cast %52 : vector<1x32x8xf32> to vector<32x8xf32>
    %cst_60 = arith.constant dense<0.000000e+00> : vector<32x128xf32>
    %54 = tpu.matmul %53, %45, %cst_60 {dimension_numbers = #tpu.dot_dimension_numbers<[1], [0], [0], [1], [0, 0, 1, 1], [], []>} : vector<32x8xf32>, vector<8x128xf32>, vector<32x128xf32> -> vector<32x128xf32>
    %55 = arith.addf %51, %54 : vector<32x128xf32>
    %c2_61 = arith.constant 2 : index
    %c0_62 = arith.constant 0 : index
    %c0_63 = arith.constant 0 : index
    %56 = vector.load %arg9[%c2_61, %c0_62, %c0_63] : memref<3x32x8xf32, #tpu.memory_space<vmem>>, vector<1x32x8xf32>
    %57 = vector.shape_cast %56 : vector<1x32x8xf32> to vector<32x8xf32>
    %cst_64 = arith.constant dense<0.000000e+00> : vector<32x128xf32>
    %58 = tpu.matmul %57, %48, %cst_64 {dimension_numbers = #tpu.dot_dimension_numbers<[1], [0], [0], [1], [0, 0, 1, 1], [], []>} : vector<32x8xf32>, vector<8x128xf32>, vector<32x128xf32> -> vector<32x128xf32>
    %59 = arith.addf %55, %58 : vector<32x128xf32>
    %c0_65 = arith.constant 0 : index
    %c0_66 = arith.constant 0 : index
    %60 = vector.load %arg10[%c0_65, %c0_66] : memref<32x1xf32, #tpu.memory_space<vmem>>, vector<32x1xf32>
    %61 = vector.broadcast %60 : vector<32x1xf32> to vector<32x128xf32>
    %62 = arith.addf %59, %61 : vector<32x128xf32>
    %cst_67 = arith.constant 0.000000e+00 : f32
    %63 = vector.broadcast %cst_67 : f32 to vector<32x128xf32>
    %64 = arith.maximumf %62, %63 : vector<32x128xf32>
    %c0_68 = arith.constant 0 : index
    %c4_69 = arith.constant 4 : index
    %65 = vector.load %arg25[%c0_68, %c4_69] : memref<32x136xf32, #tpu.memory_space<vmem>>, vector<32x128xf32>
    tpu.vector_store %arg25[%c0_68, %c4_69], %64 {strides = array<i32>} : memref<32x136xf32, #tpu.memory_space<vmem>>, vector<32x128xf32>,
    %c0_70 = arith.constant 0 : index
    %c0_71 = arith.constant 0 : index
    %66 = vector.load %arg25[%c0_70, %c0_71] : memref<32x136xf32, #tpu.memory_space<vmem>>, vector<32x128xf32>
    %c0_72 = arith.constant 0 : index
    %c8_73 = arith.constant 8 : index
    %67 = vector.load %arg25[%c0_72, %c8_73] : memref<32x136xf32, #tpu.memory_space<vmem>>, vector<32x128xf32>
    %c0_74 = arith.constant 0 : index
    %c0_75 = arith.constant 0 : index
    %c0_76 = arith.constant 0 : index
    %68 = vector.load %arg11[%c0_74, %c0_75, %c0_76] : memref<3x16x32xf32, #tpu.memory_space<vmem>>, vector<1x16x32xf32>
    %69 = vector.shape_cast %68 : vector<1x16x32xf32> to vector<16x32xf32>
    %cst_77 = arith.constant dense<0.000000e+00> : vector<16x128xf32>
    %70 = tpu.matmul %69, %66, %cst_77 {dimension_numbers = #tpu.dot_dimension_numbers<[1], [0], [0], [1], [0, 0, 1, 1], [], []>} : vector<16x32xf32>, vector<32x128xf32>, vector<16x128xf32> -> vector<16x128xf32>
    %c1_78 = arith.constant 1 : index
    %c0_79 = arith.constant 0 : index
    %c0_80 = arith.constant 0 : index
    %71 = vector.load %arg11[%c1_78, %c0_79, %c0_80] : memref<3x16x32xf32, #tpu.memory_space<vmem>>, vector<1x16x32xf32>
    %72 = vector.shape_cast %71 : vector<1x16x32xf32> to vector<16x32xf32>
    %cst_81 = arith.constant dense<0.000000e+00> : vector<16x128xf32>
    %73 = tpu.matmul %72, %64, %cst_81 {dimension_numbers = #tpu.dot_dimension_numbers<[1], [0], [0], [1], [0, 0, 1, 1], [], []>} : vector<16x32xf32>, vector<32x128xf32>, vector<16x128xf32> -> vector<16x128xf32>
    %74 = arith.addf %70, %73 : vector<16x128xf32>
    %c2_82 = arith.constant 2 : index
    %c0_83 = arith.constant 0 : index
    %c0_84 = arith.constant 0 : index
    %75 = vector.load %arg11[%c2_82, %c0_83, %c0_84] : memref<3x16x32xf32, #tpu.memory_space<vmem>>, vector<1x16x32xf32>
    %76 = vector.shape_cast %75 : vector<1x16x32xf32> to vector<16x32xf32>
    %cst_85 = arith.constant dense<0.000000e+00> : vector<16x128xf32>
    %77 = tpu.matmul %76, %67, %cst_85 {dimension_numbers = #tpu.dot_dimension_numbers<[1], [0], [0], [1], [0, 0, 1, 1], [], []>} : vector<16x32xf32>, vector<32x128xf32>, vector<16x128xf32> -> vector<16x128xf32>
    %78 = arith.addf %74, %77 : vector<16x128xf32>
    %c0_86 = arith.constant 0 : index
    %c0_87 = arith.constant 0 : index
    %79 = vector.load %arg12[%c0_86, %c0_87] : memref<16x1xf32, #tpu.memory_space<vmem>>, vector<16x1xf32>
    %80 = vector.broadcast %79 : vector<16x1xf32> to vector<16x128xf32>
    %81 = arith.addf %78, %80 : vector<16x128xf32>
    %cst_88 = arith.constant 0.000000e+00 : f32
    %82 = vector.broadcast %cst_88 : f32 to vector<16x128xf32>
    %83 = arith.maximumf %81, %82 : vector<16x128xf32>
    %84 = tpu.concatenate %43, %83 in 0 : vector<16x128xf32>, vector<16x128xf32> -> vector<32x128xf32>
    %c0_89 = arith.constant 0 : index
    %c0_90 = arith.constant 0 : index
    %85 = vector.load %arg13[%c0_89, %c0_90] : memref<32x2048xf32, #tpu.memory_space<vmem>>, vector<32x2048xf32>
    %c0_91 = arith.constant 0 : index
    %c0_92 = arith.constant 0 : index
    %c0_93 = arith.constant 0 : index
    %86 = vector.load %arg1[%c0_91, %c0_92, %c0_93] : memref<1x2048x128xf32, #tpu.memory_space<vmem>>, vector<1x2048x128xf32>
    %87 = vector.shape_cast %86 : vector<1x2048x128xf32> to vector<2048x128xf32>
    %cst_94 = arith.constant dense<0.000000e+00> : vector<32x128xf32>
    %88 = tpu.matmul %85, %87, %cst_94 {dimension_numbers = #tpu.dot_dimension_numbers<[1], [0], [0], [1], [0, 0, 1, 1], [], []>} : vector<32x2048xf32>, vector<2048x128xf32>, vector<32x128xf32> -> vector<32x128xf32>
    %c0_95 = arith.constant 0 : index
    %c0_96 = arith.constant 0 : index
    %89 = vector.load %arg14[%c0_95, %c0_96] : memref<32x32xf32, #tpu.memory_space<vmem>>, vector<32x32xf32>
    %cst_97 = arith.constant dense<0.000000e+00> : vector<32x128xf32>
    %90 = tpu.matmul %89, %84, %cst_97 {dimension_numbers = #tpu.dot_dimension_numbers<[1], [0], [0], [1], [0, 0, 1, 1], [], []>} : vector<32x32xf32>, vector<32x128xf32>, vector<32x128xf32> -> vector<32x128xf32>
    %91 = arith.addf %88, %90 : vector<32x128xf32>
    %c0_98 = arith.constant 0 : index
    %c0_99 = arith.constant 0 : index
    %92 = vector.load %arg15[%c0_98, %c0_99] : memref<32x1xf32, #tpu.memory_space<vmem>>, vector<32x1xf32>
    %93 = vector.broadcast %92 : vector<32x1xf32> to vector<32x128xf32>
    %94 = arith.addf %91, %93 : vector<32x128xf32>
    %95 = tpu.iota {dimensions = array<i32: 0>} : vector<8x1xi32>
    %c7_i32 = arith.constant 7 : i32
    %96 = vector.broadcast %c7_i32 : i32 to vector<8x1xi32>
    %97 = arith.cmpi slt, %95, %96 : vector<8x1xi32>
    %cst_100 = arith.constant 0.000000e+00 : f32
    %cst_101 = arith.constant -1.000000e+30 : f32
    %98 = vector.broadcast %cst_100 : f32 to vector<8x1xf32>
    %99 = vector.broadcast %cst_101 : f32 to vector<8x1xf32>
    %100 = arith.select %97, %98, %99 : vector<8x1xi1>, vector<8x1xf32>
    %c0_102 = arith.constant 0 : index
    %c4_103 = arith.constant 4 : index
    %101 = vector.load %arg25[%c0_102, %c4_103] : memref<32x136xf32, #tpu.memory_space<vmem>>, vector<32x128xf32>
    tpu.vector_store %arg25[%c0_102, %c4_103], %94 {strides = array<i32>} : memref<32x136xf32, #tpu.memory_space<vmem>>, vector<32x128xf32>,
    %c0_104 = arith.constant 0 : index
    %c3 = arith.constant 3 : index
    %102 = vector.load %arg25[%c0_104, %c3] : memref<32x136xf32, #tpu.memory_space<vmem>>, vector<32x128xf32>
    %c0_105 = arith.constant 0 : index
    %c5 = arith.constant 5 : index
    %103 = vector.load %arg25[%c0_105, %c5] : memref<32x136xf32, #tpu.memory_space<vmem>>, vector<32x128xf32>
    %104 = tpu.concatenate %102, %94, %103 in 0 : vector<32x128xf32>, vector<32x128xf32>, vector<32x128xf32> -> vector<96x128xf32>
    %c0_106 = arith.constant 0 : index
    %c0_107 = arith.constant 0 : index
    %c0_108 = arith.constant 0 : index
    %105 = vector.load %arg18[%c0_106, %c0_107, %c0_108] : memref<6x32x96xf32, #tpu.memory_space<vmem>>, vector<1x32x96xf32>
    %106 = vector.shape_cast %105 : vector<1x32x96xf32> to vector<32x96xf32>
    %cst_109 = arith.constant dense<0.000000e+00> : vector<32x128xf32>
    %107 = tpu.matmul %106, %104, %cst_109 {dimension_numbers = #tpu.dot_dimension_numbers<[1], [0], [0], [1], [0, 0, 1, 1], [], []>} : vector<32x96xf32>, vector<96x128xf32>, vector<32x128xf32> -> vector<32x128xf32>
    %c0_110 = arith.constant 0 : index
    %c0_111 = arith.constant 0 : index
    %c0_112 = arith.constant 0 : index
    %108 = vector.load %arg19[%c0_110, %c0_111, %c0_112] : memref<6x32x1xf32, #tpu.memory_space<vmem>>, vector<1x32x1xf32>
    %109 = vector.shape_cast %108 : vector<1x32x1xf32> to vector<32x1xf32>
    %110 = vector.broadcast %109 : vector<32x1xf32> to vector<32x128xf32>
    %111 = arith.addf %107, %110 : vector<32x128xf32>
    %cst_113 = arith.constant 0.000000e+00 : f32
    %112 = vector.broadcast %cst_113 : f32 to vector<32x128xf32>
    %113 = arith.maximumf %111, %112 : vector<32x128xf32>
    %c0_114 = arith.constant 0 : index
    %c0_115 = arith.constant 0 : index
    %c0_116 = arith.constant 0 : index
    %114 = vector.load %arg20[%c0_114, %c0_115, %c0_116] : memref<6x32x32xf32, #tpu.memory_space<vmem>>, vector<1x32x32xf32>
    %115 = vector.shape_cast %114 : vector<1x32x32xf32> to vector<32x32xf32>
    %cst_117 = arith.constant dense<0.000000e+00> : vector<32x128xf32>
    %116 = tpu.matmul %115, %113, %cst_117 {dimension_numbers = #tpu.dot_dimension_numbers<[1], [0], [0], [1], [0, 0, 1, 1], [], []>} : vector<32x32xf32>, vector<32x128xf32>, vector<32x128xf32> -> vector<32x128xf32>
    %c0_118 = arith.constant 0 : index
    %c0_119 = arith.constant 0 : index
    %c0_120 = arith.constant 0 : index
    %117 = vector.load %arg21[%c0_118, %c0_119, %c0_120] : memref<6x32x1xf32, #tpu.memory_space<vmem>>, vector<1x32x1xf32>
    %118 = vector.shape_cast %117 : vector<1x32x1xf32> to vector<32x1xf32>
    %119 = vector.broadcast %118 : vector<32x1xf32> to vector<32x128xf32>
    %120 = arith.addf %116, %119 : vector<32x128xf32>
    %121 = arith.addf %94, %120 : vector<32x128xf32>
    %122 = vector.broadcast %1 : vector<1x128xf32> to vector<32x128xf32>
    %123 = arith.mulf %121, %122 : vector<32x128xf32>
    %c0_121 = arith.constant 0 : index
    %c4_122 = arith.constant 4 : index
    %124 = vector.load %arg25[%c0_121, %c4_122] : memref<32x136xf32, #tpu.memory_space<vmem>>, vector<32x128xf32>
    tpu.vector_store %arg25[%c0_121, %c4_122], %123 {strides = array<i32>} : memref<32x136xf32, #tpu.memory_space<vmem>>, vector<32x128xf32>,
    %c0_123 = arith.constant 0 : index
    %c2_124 = arith.constant 2 : index
    %125 = vector.load %arg25[%c0_123, %c2_124] : memref<32x136xf32, #tpu.memory_space<vmem>>, vector<32x128xf32>
    %c0_125 = arith.constant 0 : index
    %c6_126 = arith.constant 6 : index
    %126 = vector.load %arg25[%c0_125, %c6_126] : memref<32x136xf32, #tpu.memory_space<vmem>>, vector<32x128xf32>
    %127 = tpu.concatenate %125, %123, %126 in 0 : vector<32x128xf32>, vector<32x128xf32>, vector<32x128xf32> -> vector<96x128xf32>
    %c1_127 = arith.constant 1 : index
    %c0_128 = arith.constant 0 : index
    %c0_129 = arith.constant 0 : index
    %128 = vector.load %arg18[%c1_127, %c0_128, %c0_129] : memref<6x32x96xf32, #tpu.memory_space<vmem>>, vector<1x32x96xf32>
    %129 = vector.shape_cast %128 : vector<1x32x96xf32> to vector<32x96xf32>
    %cst_130 = arith.constant dense<0.000000e+00> : vector<32x128xf32>
    %130 = tpu.matmul %129, %127, %cst_130 {dimension_numbers = #tpu.dot_dimension_numbers<[1], [0], [0], [1], [0, 0, 1, 1], [], []>} : vector<32x96xf32>, vector<96x128xf32>, vector<32x128xf32> -> vector<32x128xf32>
    %c1_131 = arith.constant 1 : index
    %c0_132 = arith.constant 0 : index
    %c0_133 = arith.constant 0 : index
    %131 = vector.load %arg19[%c1_131, %c0_132, %c0_133] : memref<6x32x1xf32, #tpu.memory_space<vmem>>, vector<1x32x1xf32>
    %132 = vector.shape_cast %131 : vector<1x32x1xf32> to vector<32x1xf32>
    %133 = vector.broadcast %132 : vector<32x1xf32> to vector<32x128xf32>
    %134 = arith.addf %130, %133 : vector<32x128xf32>
    %cst_134 = arith.constant 0.000000e+00 : f32
    %135 = vector.broadcast %cst_134 : f32 to vector<32x128xf32>
    %136 = arith.maximumf %134, %135 : vector<32x128xf32>
    %c1_135 = arith.constant 1 : index
    %c0_136 = arith.constant 0 : index
    %c0_137 = arith.constant 0 : index
    %137 = vector.load %arg20[%c1_135, %c0_136, %c0_137] : memref<6x32x32xf32, #tpu.memory_space<vmem>>, vector<1x32x32xf32>
    %138 = vector.shape_cast %137 : vector<1x32x32xf32> to vector<32x32xf32>
    %cst_138 = arith.constant dense<0.000000e+00> : vector<32x128xf32>
    %139 = tpu.matmul %138, %136, %cst_138 {dimension_numbers = #tpu.dot_dimension_numbers<[1], [0], [0], [1], [0, 0, 1, 1], [], []>} : vector<32x32xf32>, vector<32x128xf32>, vector<32x128xf32> -> vector<32x128xf32>
    %c1_139 = arith.constant 1 : index
    %c0_140 = arith.constant 0 : index
    %c0_141 = arith.constant 0 : index
    %140 = vector.load %arg21[%c1_139, %c0_140, %c0_141] : memref<6x32x1xf32, #tpu.memory_space<vmem>>, vector<1x32x1xf32>
    %141 = vector.shape_cast %140 : vector<1x32x1xf32> to vector<32x1xf32>
    %142 = vector.broadcast %141 : vector<32x1xf32> to vector<32x128xf32>
    %143 = arith.addf %139, %142 : vector<32x128xf32>
    %144 = arith.addf %123, %143 : vector<32x128xf32>
    %145 = vector.broadcast %1 : vector<1x128xf32> to vector<32x128xf32>
    %146 = arith.mulf %144, %145 : vector<32x128xf32>
    %c0_142 = arith.constant 0 : index
    %c4_143 = arith.constant 4 : index
    %147 = vector.load %arg25[%c0_142, %c4_143] : memref<32x136xf32, #tpu.memory_space<vmem>>, vector<32x128xf32>
    tpu.vector_store %arg25[%c0_142, %c4_143], %146 {strides = array<i32>} : memref<32x136xf32, #tpu.memory_space<vmem>>, vector<32x128xf32>,
    %c0_144 = arith.constant 0 : index
    %c0_145 = arith.constant 0 : index
    %148 = vector.load %arg25[%c0_144, %c0_145] : memref<32x136xf32, #tpu.memory_space<vmem>>, vector<32x128xf32>
    %c0_146 = arith.constant 0 : index
    %c8_147 = arith.constant 8 : index
    %149 = vector.load %arg25[%c0_146, %c8_147] : memref<32x136xf32, #tpu.memory_space<vmem>>, vector<32x128xf32>
    %150 = tpu.concatenate %148, %146, %149 in 0 : vector<32x128xf32>, vector<32x128xf32>, vector<32x128xf32> -> vector<96x128xf32>
    %c2_148 = arith.constant 2 : index
    %c0_149 = arith.constant 0 : index
    %c0_150 = arith.constant 0 : index
    %151 = vector.load %arg18[%c2_148, %c0_149, %c0_150] : memref<6x32x96xf32, #tpu.memory_space<vmem>>, vector<1x32x96xf32>
    %152 = vector.shape_cast %151 : vector<1x32x96xf32> to vector<32x96xf32>
    %cst_151 = arith.constant dense<0.000000e+00> : vector<32x128xf32>
    %153 = tpu.matmul %152, %150, %cst_151 {dimension_numbers = #tpu.dot_dimension_numbers<[1], [0], [0], [1], [0, 0, 1, 1], [], []>} : vector<32x96xf32>, vector<96x128xf32>, vector<32x128xf32> -> vector<32x128xf32>
    %c2_152 = arith.constant 2 : index
    %c0_153 = arith.constant 0 : index
    %c0_154 = arith.constant 0 : index
    %154 = vector.load %arg19[%c2_152, %c0_153, %c0_154] : memref<6x32x1xf32, #tpu.memory_space<vmem>>, vector<1x32x1xf32>
    %155 = vector.shape_cast %154 : vector<1x32x1xf32> to vector<32x1xf32>
    %156 = vector.broadcast %155 : vector<32x1xf32> to vector<32x128xf32>
    %157 = arith.addf %153, %156 : vector<32x128xf32>
    %cst_155 = arith.constant 0.000000e+00 : f32
    %158 = vector.broadcast %cst_155 : f32 to vector<32x128xf32>
    %159 = arith.maximumf %157, %158 : vector<32x128xf32>
    %c2_156 = arith.constant 2 : index
    %c0_157 = arith.constant 0 : index
    %c0_158 = arith.constant 0 : index
    %160 = vector.load %arg20[%c2_156, %c0_157, %c0_158] : memref<6x32x32xf32, #tpu.memory_space<vmem>>, vector<1x32x32xf32>
    %161 = vector.shape_cast %160 : vector<1x32x32xf32> to vector<32x32xf32>
    %cst_159 = arith.constant dense<0.000000e+00> : vector<32x128xf32>
    %162 = tpu.matmul %161, %159, %cst_159 {dimension_numbers = #tpu.dot_dimension_numbers<[1], [0], [0], [1], [0, 0, 1, 1], [], []>} : vector<32x32xf32>, vector<32x128xf32>, vector<32x128xf32> -> vector<32x128xf32>
    %c2_160 = arith.constant 2 : index
    %c0_161 = arith.constant 0 : index
    %c0_162 = arith.constant 0 : index
    %163 = vector.load %arg21[%c2_160, %c0_161, %c0_162] : memref<6x32x1xf32, #tpu.memory_space<vmem>>, vector<1x32x1xf32>
    %164 = vector.shape_cast %163 : vector<1x32x1xf32> to vector<32x1xf32>
    %165 = vector.broadcast %164 : vector<32x1xf32> to vector<32x128xf32>
    %166 = arith.addf %162, %165 : vector<32x128xf32>
    %167 = arith.addf %146, %166 : vector<32x128xf32>
    %168 = vector.broadcast %1 : vector<1x128xf32> to vector<32x128xf32>
    %169 = arith.mulf %167, %168 : vector<32x128xf32>
    %c0_163 = arith.constant 0 : index
    %c0_164 = arith.constant 0 : index
    %c0_165 = arith.constant 0 : index
    %170 = vector.load %arg22[%c0_163, %c0_164, %c0_165] : memref<2x8x32xf32, #tpu.memory_space<vmem>>, vector<1x8x32xf32>
    %171 = vector.shape_cast %170 : vector<1x8x32xf32> to vector<8x32xf32>
    %cst_166 = arith.constant dense<0.000000e+00> : vector<8x128xf32>
    %172 = tpu.matmul %171, %169, %cst_166 {dimension_numbers = #tpu.dot_dimension_numbers<[1], [0], [0], [1], [0, 0, 1, 1], [], []>} : vector<8x32xf32>, vector<32x128xf32>, vector<8x128xf32> -> vector<8x128xf32>
    %c0_167 = arith.constant 0 : index
    %c0_168 = arith.constant 0 : index
    %c0_169 = arith.constant 0 : index
    %173 = vector.load %arg23[%c0_167, %c0_168, %c0_169] : memref<2x8x1xf32, #tpu.memory_space<vmem>>, vector<1x8x1xf32>
    %174 = vector.shape_cast %173 : vector<1x8x1xf32> to vector<8x1xf32>
    %175 = vector.broadcast %174 : vector<8x1xf32> to vector<8x128xf32>
    %176 = arith.addf %172, %175 : vector<8x128xf32>
    %177 = vector.broadcast %1 : vector<1x128xf32> to vector<8x128xf32>
    %178 = arith.mulf %176, %177 : vector<8x128xf32>
    %c0_170 = arith.constant 0 : index
    %c0_171 = arith.constant 0 : index
    %c0_172 = arith.constant 0 : index
    %c0_173 = arith.constant 0 : index
    %179 = vector.load %arg24[%c0_170, %c0_171, %c0_172, %c0_173] : memref<2x1x8x128xf32, #tpu.memory_space<vmem>>, vector<1x1x8x128xf32>
    %180 = vector.shape_cast %179 : vector<1x1x8x128xf32> to vector<8x128xf32>
    %181 = vector.shape_cast %178 : vector<8x128xf32> to vector<1x1x8x128xf32>
    tpu.vector_store %arg24[%c0_170, %c0_171, %c0_172, %c0_173], %181 {strides = array<i32>} : memref<2x1x8x128xf32, #tpu.memory_space<vmem>>, vector<1x1x8x128xf32>,
    %182 = vector.broadcast %100 : vector<8x1xf32> to vector<8x128xf32>
    %183 = arith.addf %178, %182 : vector<8x128xf32>
    %cst_174 = arith.constant dense<0xFF800000> : vector<128xf32>
    %184 = vector.multi_reduction <maximumf>, %183, %cst_174 [0] : vector<8x128xf32> to vector<128xf32>
    %185 = vector.shape_cast %184 : vector<128xf32> to vector<1x128xf32>
    %186 = vector.broadcast %185 : vector<1x128xf32> to vector<8x128xf32>
    %187 = arith.subf %183, %186 : vector<8x128xf32>
    %188 = math.exp %187 : vector<8x128xf32>
    %cst_175 = arith.constant dense<0.000000e+00> : vector<128xf32>
    %189 = vector.multi_reduction <add>, %188, %cst_175 [0] : vector<8x128xf32> to vector<128xf32>
    %190 = vector.shape_cast %189 : vector<128xf32> to vector<1x128xf32>
    %191 = vector.broadcast %190 : vector<1x128xf32> to vector<8x128xf32>
    %192 = arith.divf %188, %191 : vector<8x128xf32>
    %193 = vector.broadcast %1 : vector<1x128xf32> to vector<8x128xf32>
    %194 = arith.mulf %192, %193 : vector<8x128xf32>
    %c0_176 = arith.constant 0 : index
    %c0_177 = arith.constant 0 : index
    %c0_178 = arith.constant 0 : index
    %195 = vector.load %arg16[%c0_176, %c0_177, %c0_178] : memref<1x32x8xf32, #tpu.memory_space<vmem>>, vector<1x32x8xf32>
    %196 = vector.shape_cast %195 : vector<1x32x8xf32> to vector<32x8xf32>
    %cst_179 = arith.constant dense<0.000000e+00> : vector<32x128xf32>
    %197 = tpu.matmul %196, %194, %cst_179 {dimension_numbers = #tpu.dot_dimension_numbers<[1], [0], [0], [1], [0, 0, 1, 1], [], []>} : vector<32x8xf32>, vector<8x128xf32>, vector<32x128xf32> -> vector<32x128xf32>
    %c0_180 = arith.constant 0 : index
    %c0_181 = arith.constant 0 : index
    %c0_182 = arith.constant 0 : index
    %198 = vector.load %arg17[%c0_180, %c0_181, %c0_182] : memref<1x32x1xf32, #tpu.memory_space<vmem>>, vector<1x32x1xf32>
    %199 = vector.shape_cast %198 : vector<1x32x1xf32> to vector<32x1xf32>
    %200 = vector.broadcast %199 : vector<32x1xf32> to vector<32x128xf32>
    %201 = arith.addf %197, %200 : vector<32x128xf32>
    %c0_183 = arith.constant 0 : index
    %c4_184 = arith.constant 4 : index
    %202 = vector.load %arg25[%c0_183, %c4_184] : memref<32x136xf32, #tpu.memory_space<vmem>>, vector<32x128xf32>
    tpu.vector_store %arg25[%c0_183, %c4_184], %201 {strides = array<i32>} : memref<32x136xf32, #tpu.memory_space<vmem>>, vector<32x128xf32>,
    %c0_185 = arith.constant 0 : index
    %c3_186 = arith.constant 3 : index
    %203 = vector.load %arg25[%c0_185, %c3_186] : memref<32x136xf32, #tpu.memory_space<vmem>>, vector<32x128xf32>
    %c0_187 = arith.constant 0 : index
    %c5_188 = arith.constant 5 : index
    %204 = vector.load %arg25[%c0_187, %c5_188] : memref<32x136xf32, #tpu.memory_space<vmem>>, vector<32x128xf32>
    %205 = tpu.concatenate %203, %201, %204 in 0 : vector<32x128xf32>, vector<32x128xf32>, vector<32x128xf32> -> vector<96x128xf32>
    %c3_189 = arith.constant 3 : index
    %c0_190 = arith.constant 0 : index
    %c0_191 = arith.constant 0 : index
    %206 = vector.load %arg18[%c3_189, %c0_190, %c0_191] : memref<6x32x96xf32, #tpu.memory_space<vmem>>, vector<1x32x96xf32>
    %207 = vector.shape_cast %206 : vector<1x32x96xf32> to vector<32x96xf32>
    %cst_192 = arith.constant dense<0.000000e+00> : vector<32x128xf32>
    %208 = tpu.matmul %207, %205, %cst_192 {dimension_numbers = #tpu.dot_dimension_numbers<[1], [0], [0], [1], [0, 0, 1, 1], [], []>} : vector<32x96xf32>, vector<96x128xf32>, vector<32x128xf32> -> vector<32x128xf32>
    %c3_193 = arith.constant 3 : index
    %c0_194 = arith.constant 0 : index
    %c0_195 = arith.constant 0 : index
    %209 = vector.load %arg19[%c3_193, %c0_194, %c0_195] : memref<6x32x1xf32, #tpu.memory_space<vmem>>, vector<1x32x1xf32>
    %210 = vector.shape_cast %209 : vector<1x32x1xf32> to vector<32x1xf32>
    %211 = vector.broadcast %210 : vector<32x1xf32> to vector<32x128xf32>
    %212 = arith.addf %208, %211 : vector<32x128xf32>
    %cst_196 = arith.constant 0.000000e+00 : f32
    %213 = vector.broadcast %cst_196 : f32 to vector<32x128xf32>
    %214 = arith.maximumf %212, %213 : vector<32x128xf32>
    %c3_197 = arith.constant 3 : index
    %c0_198 = arith.constant 0 : index
    %c0_199 = arith.constant 0 : index
    %215 = vector.load %arg20[%c3_197, %c0_198, %c0_199] : memref<6x32x32xf32, #tpu.memory_space<vmem>>, vector<1x32x32xf32>
    %216 = vector.shape_cast %215 : vector<1x32x32xf32> to vector<32x32xf32>
    %cst_200 = arith.constant dense<0.000000e+00> : vector<32x128xf32>
    %217 = tpu.matmul %216, %214, %cst_200 {dimension_numbers = #tpu.dot_dimension_numbers<[1], [0], [0], [1], [0, 0, 1, 1], [], []>} : vector<32x32xf32>, vector<32x128xf32>, vector<32x128xf32> -> vector<32x128xf32>
    %c3_201 = arith.constant 3 : index
    %c0_202 = arith.constant 0 : index
    %c0_203 = arith.constant 0 : index
    %218 = vector.load %arg21[%c3_201, %c0_202, %c0_203] : memref<6x32x1xf32, #tpu.memory_space<vmem>>, vector<1x32x1xf32>
    %219 = vector.shape_cast %218 : vector<1x32x1xf32> to vector<32x1xf32>
    %220 = vector.broadcast %219 : vector<32x1xf32> to vector<32x128xf32>
    %221 = arith.addf %217, %220 : vector<32x128xf32>
    %222 = arith.addf %201, %221 : vector<32x128xf32>
    %223 = vector.broadcast %1 : vector<1x128xf32> to vector<32x128xf32>
    %224 = arith.mulf %222, %223 : vector<32x128xf32>
    %c0_204 = arith.constant 0 : index
    %c4_205 = arith.constant 4 : index
    %225 = vector.load %arg25[%c0_204, %c4_205] : memref<32x136xf32, #tpu.memory_space<vmem>>, vector<32x128xf32>
    tpu.vector_store %arg25[%c0_204, %c4_205], %224 {strides = array<i32>} : memref<32x136xf32, #tpu.memory_space<vmem>>, vector<32x128xf32>,
    %c0_206 = arith.constant 0 : index
    %c2_207 = arith.constant 2 : index
    %226 = vector.load %arg25[%c0_206, %c2_207] : memref<32x136xf32, #tpu.memory_space<vmem>>, vector<32x128xf32>
    %c0_208 = arith.constant 0 : index
    %c6_209 = arith.constant 6 : index
    %227 = vector.load %arg25[%c0_208, %c6_209] : memref<32x136xf32, #tpu.memory_space<vmem>>, vector<32x128xf32>
    %228 = tpu.concatenate %226, %224, %227 in 0 : vector<32x128xf32>, vector<32x128xf32>, vector<32x128xf32> -> vector<96x128xf32>
    %c4_210 = arith.constant 4 : index
    %c0_211 = arith.constant 0 : index
    %c0_212 = arith.constant 0 : index
    %229 = vector.load %arg18[%c4_210, %c0_211, %c0_212] : memref<6x32x96xf32, #tpu.memory_space<vmem>>, vector<1x32x96xf32>
    %230 = vector.shape_cast %229 : vector<1x32x96xf32> to vector<32x96xf32>
    %cst_213 = arith.constant dense<0.000000e+00> : vector<32x128xf32>
    %231 = tpu.matmul %230, %228, %cst_213 {dimension_numbers = #tpu.dot_dimension_numbers<[1], [0], [0], [1], [0, 0, 1, 1], [], []>} : vector<32x96xf32>, vector<96x128xf32>, vector<32x128xf32> -> vector<32x128xf32>
    %c4_214 = arith.constant 4 : index
    %c0_215 = arith.constant 0 : index
    %c0_216 = arith.constant 0 : index
    %232 = vector.load %arg19[%c4_214, %c0_215, %c0_216] : memref<6x32x1xf32, #tpu.memory_space<vmem>>, vector<1x32x1xf32>
    %233 = vector.shape_cast %232 : vector<1x32x1xf32> to vector<32x1xf32>
    %234 = vector.broadcast %233 : vector<32x1xf32> to vector<32x128xf32>
    %235 = arith.addf %231, %234 : vector<32x128xf32>
    %cst_217 = arith.constant 0.000000e+00 : f32
    %236 = vector.broadcast %cst_217 : f32 to vector<32x128xf32>
    %237 = arith.maximumf %235, %236 : vector<32x128xf32>
    %c4_218 = arith.constant 4 : index
    %c0_219 = arith.constant 0 : index
    %c0_220 = arith.constant 0 : index
    %238 = vector.load %arg20[%c4_218, %c0_219, %c0_220] : memref<6x32x32xf32, #tpu.memory_space<vmem>>, vector<1x32x32xf32>
    %239 = vector.shape_cast %238 : vector<1x32x32xf32> to vector<32x32xf32>
    %cst_221 = arith.constant dense<0.000000e+00> : vector<32x128xf32>
    %240 = tpu.matmul %239, %237, %cst_221 {dimension_numbers = #tpu.dot_dimension_numbers<[1], [0], [0], [1], [0, 0, 1, 1], [], []>} : vector<32x32xf32>, vector<32x128xf32>, vector<32x128xf32> -> vector<32x128xf32>
    %c4_222 = arith.constant 4 : index
    %c0_223 = arith.constant 0 : index
    %c0_224 = arith.constant 0 : index
    %241 = vector.load %arg21[%c4_222, %c0_223, %c0_224] : memref<6x32x1xf32, #tpu.memory_space<vmem>>, vector<1x32x1xf32>
    %242 = vector.shape_cast %241 : vector<1x32x1xf32> to vector<32x1xf32>
    %243 = vector.broadcast %242 : vector<32x1xf32> to vector<32x128xf32>
    %244 = arith.addf %240, %243 : vector<32x128xf32>
    %245 = arith.addf %224, %244 : vector<32x128xf32>
    %246 = vector.broadcast %1 : vector<1x128xf32> to vector<32x128xf32>
    %247 = arith.mulf %245, %246 : vector<32x128xf32>
    %c0_225 = arith.constant 0 : index
    %c4_226 = arith.constant 4 : index
    %248 = vector.load %arg25[%c0_225, %c4_226] : memref<32x136xf32, #tpu.memory_space<vmem>>, vector<32x128xf32>
    tpu.vector_store %arg25[%c0_225, %c4_226], %247 {strides = array<i32>} : memref<32x136xf32, #tpu.memory_space<vmem>>, vector<32x128xf32>,
    %c0_227 = arith.constant 0 : index
    %c0_228 = arith.constant 0 : index
    %249 = vector.load %arg25[%c0_227, %c0_228] : memref<32x136xf32, #tpu.memory_space<vmem>>, vector<32x128xf32>
    %c0_229 = arith.constant 0 : index
    %c8_230 = arith.constant 8 : index
    %250 = vector.load %arg25[%c0_229, %c8_230] : memref<32x136xf32, #tpu.memory_space<vmem>>, vector<32x128xf32>
    %251 = tpu.concatenate %249, %247, %250 in 0 : vector<32x128xf32>, vector<32x128xf32>, vector<32x128xf32> -> vector<96x128xf32>
    %c5_231 = arith.constant 5 : index
    %c0_232 = arith.constant 0 : index
    %c0_233 = arith.constant 0 : index
    %252 = vector.load %arg18[%c5_231, %c0_232, %c0_233] : memref<6x32x96xf32, #tpu.memory_space<vmem>>, vector<1x32x96xf32>
    %253 = vector.shape_cast %252 : vector<1x32x96xf32> to vector<32x96xf32>
    %cst_234 = arith.constant dense<0.000000e+00> : vector<32x128xf32>
    %254 = tpu.matmul %253, %251, %cst_234 {dimension_numbers = #tpu.dot_dimension_numbers<[1], [0], [0], [1], [0, 0, 1, 1], [], []>} : vector<32x96xf32>, vector<96x128xf32>, vector<32x128xf32> -> vector<32x128xf32>
    %c5_235 = arith.constant 5 : index
    %c0_236 = arith.constant 0 : index
    %c0_237 = arith.constant 0 : index
    %255 = vector.load %arg19[%c5_235, %c0_236, %c0_237] : memref<6x32x1xf32, #tpu.memory_space<vmem>>, vector<1x32x1xf32>
    %256 = vector.shape_cast %255 : vector<1x32x1xf32> to vector<32x1xf32>
    %257 = vector.broadcast %256 : vector<32x1xf32> to vector<32x128xf32>
    %258 = arith.addf %254, %257 : vector<32x128xf32>
    %cst_238 = arith.constant 0.000000e+00 : f32
    %259 = vector.broadcast %cst_238 : f32 to vector<32x128xf32>
    %260 = arith.maximumf %258, %259 : vector<32x128xf32>
    %c5_239 = arith.constant 5 : index
    %c0_240 = arith.constant 0 : index
    %c0_241 = arith.constant 0 : index
    %261 = vector.load %arg20[%c5_239, %c0_240, %c0_241] : memref<6x32x32xf32, #tpu.memory_space<vmem>>, vector<1x32x32xf32>
    %262 = vector.shape_cast %261 : vector<1x32x32xf32> to vector<32x32xf32>
    %cst_242 = arith.constant dense<0.000000e+00> : vector<32x128xf32>
    %263 = tpu.matmul %262, %260, %cst_242 {dimension_numbers = #tpu.dot_dimension_numbers<[1], [0], [0], [1], [0, 0, 1, 1], [], []>} : vector<32x32xf32>, vector<32x128xf32>, vector<32x128xf32> -> vector<32x128xf32>
    %c5_243 = arith.constant 5 : index
    %c0_244 = arith.constant 0 : index
    %c0_245 = arith.constant 0 : index
    %264 = vector.load %arg21[%c5_243, %c0_244, %c0_245] : memref<6x32x1xf32, #tpu.memory_space<vmem>>, vector<1x32x1xf32>
    %265 = vector.shape_cast %264 : vector<1x32x1xf32> to vector<32x1xf32>
    %266 = vector.broadcast %265 : vector<32x1xf32> to vector<32x128xf32>
    %267 = arith.addf %263, %266 : vector<32x128xf32>
    %268 = arith.addf %247, %267 : vector<32x128xf32>
    %269 = vector.broadcast %1 : vector<1x128xf32> to vector<32x128xf32>
    %270 = arith.mulf %268, %269 : vector<32x128xf32>
    %c1_246 = arith.constant 1 : index
    %c0_247 = arith.constant 0 : index
    %c0_248 = arith.constant 0 : index
    %271 = vector.load %arg22[%c1_246, %c0_247, %c0_248] : memref<2x8x32xf32, #tpu.memory_space<vmem>>, vector<1x8x32xf32>
    %272 = vector.shape_cast %271 : vector<1x8x32xf32> to vector<8x32xf32>
    %cst_249 = arith.constant dense<0.000000e+00> : vector<8x128xf32>
    %273 = tpu.matmul %272, %270, %cst_249 {dimension_numbers = #tpu.dot_dimension_numbers<[1], [0], [0], [1], [0, 0, 1, 1], [], []>} : vector<8x32xf32>, vector<32x128xf32>, vector<8x128xf32> -> vector<8x128xf32>
    %c1_250 = arith.constant 1 : index
    %c0_251 = arith.constant 0 : index
    %c0_252 = arith.constant 0 : index
    %274 = vector.load %arg23[%c1_250, %c0_251, %c0_252] : memref<2x8x1xf32, #tpu.memory_space<vmem>>, vector<1x8x1xf32>
    %275 = vector.shape_cast %274 : vector<1x8x1xf32> to vector<8x1xf32>
    %276 = vector.broadcast %275 : vector<8x1xf32> to vector<8x128xf32>
    %277 = arith.addf %273, %276 : vector<8x128xf32>
    %278 = vector.broadcast %1 : vector<1x128xf32> to vector<8x128xf32>
    %279 = arith.mulf %277, %278 : vector<8x128xf32>
    %c1_253 = arith.constant 1 : index
    %c0_254 = arith.constant 0 : index
    %c0_255 = arith.constant 0 : index
    %c0_256 = arith.constant 0 : index
    %280 = vector.load %arg24[%c1_253, %c0_254, %c0_255, %c0_256] : memref<2x1x8x128xf32, #tpu.memory_space<vmem>>, vector<1x1x8x128xf32>
    %281 = vector.shape_cast %280 : vector<1x1x8x128xf32> to vector<8x128xf32>
    %282 = vector.shape_cast %279 : vector<8x128xf32> to vector<1x1x8x128xf32>
    tpu.vector_store %arg24[%c1_253, %c0_254, %c0_255, %c0_256], %282 {strides = array<i32>} : memref<2x1x8x128xf32, #tpu.memory_space<vmem>>, vector<1x1x8x128xf32>,
    return
  }
  func.func @transform_0(%arg0: i32) -> (i32, i32, i32) {
    %c0_i32 = arith.constant 0 : i32
    %c0_i32_0 = arith.constant 0 : i32
    %c0_i32_1 = arith.constant 0 : i32
    return %arg0, %c0_i32, %c0_i32_0 : i32, i32, i32
  }
  func.func @transform_1(%arg0: i32) -> (i32, i32, i32) {
    %c0_i32 = arith.constant 0 : i32
    %c0_i32_0 = arith.constant 0 : i32
    %c0_i32_1 = arith.constant 0 : i32
    return %arg0, %c0_i32, %c0_i32_0 : i32, i32, i32
  }
  func.func @transform_2(%arg0: i32) -> (i32, i32, i32) {
    %c0_i32 = arith.constant 0 : i32
    %c0_i32_0 = arith.constant 0 : i32
    %c0_i32_1 = arith.constant 0 : i32
    return %arg0, %c0_i32, %c0_i32_0 : i32, i32, i32
  }
  func.func @transform_3(%arg0: i32) -> (i32, i32, i32) {
    %c0_i32 = arith.constant 0 : i32
    %c0_i32_0 = arith.constant 0 : i32
    %c0_i32_1 = arith.constant 0 : i32
    return %arg0, %c0_i32, %c0_i32_0 : i32, i32, i32
  }
  func.func @transform_4(%arg0: i32) -> (i32, i32, i32) {
    %c0_i32 = arith.constant 0 : i32
    %c0_i32_0 = arith.constant 0 : i32
    %c0_i32_1 = arith.constant 0 : i32
    %c0_i32_2 = arith.constant 0 : i32
    return %c0_i32, %c0_i32_0, %c0_i32_1 : i32, i32, i32
  }
  func.func @transform_5(%arg0: i32) -> (i32, i32) {
    %c0_i32 = arith.constant 0 : i32
    %c0_i32_0 = arith.constant 0 : i32
    %c0_i32_1 = arith.constant 0 : i32
    return %c0_i32, %c0_i32_0 : i32, i32
  }
  func.func @transform_6(%arg0: i32) -> (i32, i32, i32) {
    %c0_i32 = arith.constant 0 : i32
    %c0_i32_0 = arith.constant 0 : i32
    %c0_i32_1 = arith.constant 0 : i32
    %c0_i32_2 = arith.constant 0 : i32
    return %c0_i32, %c0_i32_0, %c0_i32_1 : i32, i32, i32
  }
  func.func @transform_7(%arg0: i32) -> (i32, i32) {
    %c0_i32 = arith.constant 0 : i32
    %c0_i32_0 = arith.constant 0 : i32
    %c0_i32_1 = arith.constant 0 : i32
    return %c0_i32, %c0_i32_0 : i32, i32
  }
  func.func @transform_8(%arg0: i32) -> (i32, i32, i32) {
    %c0_i32 = arith.constant 0 : i32
    %c0_i32_0 = arith.constant 0 : i32
    %c0_i32_1 = arith.constant 0 : i32
    %c0_i32_2 = arith.constant 0 : i32
    return %c0_i32, %c0_i32_0, %c0_i32_1 : i32, i32, i32
  }
  func.func @transform_9(%arg0: i32) -> (i32, i32) {
    %c0_i32 = arith.constant 0 : i32
    %c0_i32_0 = arith.constant 0 : i32
    %c0_i32_1 = arith.constant 0 : i32
    return %c0_i32, %c0_i32_0 : i32, i32
  }
  func.func @transform_10(%arg0: i32) -> (i32, i32, i32) {
    %c0_i32 = arith.constant 0 : i32
    %c0_i32_0 = arith.constant 0 : i32
    %c0_i32_1 = arith.constant 0 : i32
    %c0_i32_2 = arith.constant 0 : i32
    return %c0_i32, %c0_i32_0, %c0_i32_1 : i32, i32, i32
  }
  func.func @transform_11(%arg0: i32) -> (i32, i32) {
    %c0_i32 = arith.constant 0 : i32
    %c0_i32_0 = arith.constant 0 : i32
    %c0_i32_1 = arith.constant 0 : i32
    return %c0_i32, %c0_i32_0 : i32, i32
  }
  func.func @transform_12(%arg0: i32) -> (i32, i32) {
    %c0_i32 = arith.constant 0 : i32
    %c0_i32_0 = arith.constant 0 : i32
    %c0_i32_1 = arith.constant 0 : i32
    return %c0_i32, %c0_i32_0 : i32, i32
  }
  func.func @transform_13(%arg0: i32) -> (i32, i32) {
    %c0_i32 = arith.constant 0 : i32
    %c0_i32_0 = arith.constant 0 : i32
    %c0_i32_1 = arith.constant 0 : i32
    return %c0_i32, %c0_i32_0 : i32, i32
  }
  func.func @transform_14(%arg0: i32) -> (i32, i32) {
    %c0_i32 = arith.constant 0 : i32
    %c0_i32_0 = arith.constant 0 : i32
    %c0_i32_1 = arith.constant 0 : i32
    return %c0_i32, %c0_i32_0 : i32, i32
  }
  func.func @transform_15(%arg0: i32) -> (i32, i32, i32) {
    %c0_i32 = arith.constant 0 : i32
    %c0_i32_0 = arith.constant 0 : i32
    %c0_i32_1 = arith.constant 0 : i32
    %c0_i32_2 = arith.constant 0 : i32
    return %c0_i32, %c0_i32_0, %c0_i32_1 : i32, i32, i32
  }
  func.func @transform_16(%arg0: i32) -> (i32, i32, i32) {
    %c0_i32 = arith.constant 0 : i32
    %c0_i32_0 = arith.constant 0 : i32
    %c0_i32_1 = arith.constant 0 : i32
    %c0_i32_2 = arith.constant 0 : i32
    return %c0_i32, %c0_i32_0, %c0_i32_1 : i32, i32, i32
  }
  func.func @transform_17(%arg0: i32) -> (i32, i32, i32) {
    %c0_i32 = arith.constant 0 : i32
    %c0_i32_0 = arith.constant 0 : i32
    %c0_i32_1 = arith.constant 0 : i32
    %c0_i32_2 = arith.constant 0 : i32
    return %c0_i32, %c0_i32_0, %c0_i32_1 : i32, i32, i32
  }
  func.func @transform_18(%arg0: i32) -> (i32, i32, i32) {
    %c0_i32 = arith.constant 0 : i32
    %c0_i32_0 = arith.constant 0 : i32
    %c0_i32_1 = arith.constant 0 : i32
    %c0_i32_2 = arith.constant 0 : i32
    return %c0_i32, %c0_i32_0, %c0_i32_1 : i32, i32, i32
  }
  func.func @transform_19(%arg0: i32) -> (i32, i32, i32) {
    %c0_i32 = arith.constant 0 : i32
    %c0_i32_0 = arith.constant 0 : i32
    %c0_i32_1 = arith.constant 0 : i32
    %c0_i32_2 = arith.constant 0 : i32
    return %c0_i32, %c0_i32_0, %c0_i32_1 : i32, i32, i32
  }
  func.func @transform_20(%arg0: i32) -> (i32, i32, i32) {
    %c0_i32 = arith.constant 0 : i32
    %c0_i32_0 = arith.constant 0 : i32
    %c0_i32_1 = arith.constant 0 : i32
    %c0_i32_2 = arith.constant 0 : i32
    return %c0_i32, %c0_i32_0, %c0_i32_1 : i32, i32, i32
  }
  func.func @transform_21(%arg0: i32) -> (i32, i32, i32) {
    %c0_i32 = arith.constant 0 : i32
    %c0_i32_0 = arith.constant 0 : i32
    %c0_i32_1 = arith.constant 0 : i32
    %c0_i32_2 = arith.constant 0 : i32
    return %c0_i32, %c0_i32_0, %c0_i32_1 : i32, i32, i32
  }
  func.func @transform_22(%arg0: i32) -> (i32, i32, i32) {
    %c0_i32 = arith.constant 0 : i32
    %c0_i32_0 = arith.constant 0 : i32
    %c0_i32_1 = arith.constant 0 : i32
    %c0_i32_2 = arith.constant 0 : i32
    return %c0_i32, %c0_i32_0, %c0_i32_1 : i32, i32, i32
  }
  func.func @transform_23(%arg0: i32) -> (i32, i32, i32, i32) {
    %c0_i32 = arith.constant 0 : i32
    %c0_i32_0 = arith.constant 0 : i32
    %c0_i32_1 = arith.constant 0 : i32
    %c0_i32_2 = arith.constant 0 : i32
    return %c0_i32, %arg0, %c0_i32_0, %c0_i32_1 : i32, i32, i32, i32
  }
}

</mosaic_0001>

<bundles_post_ra>
// kernel: multimodal_classifier_forward.1
= control target key start
LH: loop header
LB: loop body
LE: loop exit
PB: predicated region body
PF: predicated region fallthrough
CT: control target
= control target key end

     0   :  { %s9088_s0 = inlined_call_operand.vmem [shape: f32[2,2048,128], index: 0, kind: input, shape index: {}]   ;;  %s9089_s1 = inlined_call_operand.vmem [shape: f32[2,8,128], index: 1, kind: input, shape index: {}]   ;;  %s9090_s2 = inlined_call_operand.vmem [shape: f32[2,8,128], index: 2, kind: input, shape index: {}]   ;;  %s9091_s3 = inlined_call_operand.vmem [shape: f32[2,1,128], index: 3, kind: input, shape index: {}]   ;;  %s9092_s4 = inlined_call_operand.vmem [shape: f32[3,32,8], index: 4, kind: input, shape index: {}]   ;;  %s9093_s5 = inlined_call_operand.vmem [shape: f32[32,1], index: 5, kind: input, shape index: {}]   ;;  %s9094_s6 = inlined_call_operand.vmem [shape: f32[3,16,32], index: 6, kind: input, shape index: {}]   ;;  %s9095_s7 = inlined_call_operand.vmem [shape: f32[16,1], index: 7, kind: input, shape index: {}]   ;;  %s9096_s8 = inlined_call_operand.vmem [shape: f32[3,32,8], index: 8, kind: input, shape index: {}]   ;;  %s9097_s9 = inlined_call_operand.vmem [shape: f32[32,1], index: 9, kind: input, shape index: {}]   ;;  %s9098_s10 = inlined_call_operand.vmem [shape: f32[3,16,32], index: 10, kind: input, shape index: {}]   ;;  %s9099_s11 = inlined_call_operand.vmem [shape: f32[16,1], index: 11, kind: input, shape index: {}]   ;;  %s9100_s12 = inlined_call_operand.vmem [shape: f32[32,2048], index: 12, kind: input, shape index: {}]   ;;  %s9101_s13 = inlined_call_operand.vmem [shape: f32[32,32], index: 13, kind: input, shape index: {}]   ;;  %s9102_s14 = inlined_call_operand.vmem [shape: f32[32,1], index: 14, kind: input, shape index: {}]   ;;  %s9103_s15 = inlined_call_operand.vmem [shape: f32[1,32,8], index: 15, kind: input, shape index: {}]   ;;  %s9104_s16 = inlined_call_operand.vmem [shape: f32[1,32,1], index: 16, kind: input, shape index: {}]   ;;  %s9105_s17 = inlined_call_operand.vmem [shape: f32[6,32,96], index: 17, kind: input, shape index: {}]   ;;  %s9106_s18 = inlined_call_operand.vmem [shape: f32[6,32,1], index: 18, kind: input, shape index: {}]   ;;  %s9107_s19 = inlined_call_operand.vmem [shape: f32[6,32,32], index: 19, kind: input, shape index: {}]   ;;  %s9108_s20 = inlined_call_operand.vmem [shape: f32[6,32,1], index: 20, kind: input, shape index: {}]   ;;  %s9109_s21 = inlined_call_operand.vmem [shape: f32[2,8,32], index: 21, kind: input, shape index: {}]   ;;  %s9110_s22 = inlined_call_operand.vmem [shape: f32[2,8,1], index: 22, kind: input, shape index: {}]   ;;  %s9111_s23 = inlined_call_operand.vmem [shape: f32[2,2,8,128], index: 23, kind: output, shape index: {}]  }
   0x1   :  { %9139 = sst [smem:[#allocation14_spill]] %s9088_s0 }
   0x2   :  { %9140 = sst [smem:[#allocation15_spill]] %s9089_s1 }
   0x3   :  { %9141 = sst [smem:[#allocation16_spill]] %s9090_s2 }
   0x4   :  { %9142 = sst [smem:[#allocation17_spill]] %s9091_s3 }
   0x5   :  { %9143 = sst [smem:[#allocation18_spill]] %s9092_s4 }
   0x6   :  { %9144 = sst [smem:[#allocation19_spill]] %s9093_s5 }
   0x7   :  { %9145 = sst [smem:[#allocation20_spill]] %s9094_s6 }
   0x8   :  { %9146 = sst [smem:[#allocation21_spill]] %s9095_s7 }
   0x9   :  { %9147 = sst [smem:[#allocation22_spill]] %s9096_s8 }
   0xa   :  { %9148 = sst [smem:[#allocation23_spill]] %s9097_s9 }
   0xb   :  { %9149 = sst [smem:[#allocation24_spill]] %s9111_s23 }
   0xc   :  { %s7400_s4 = smov 0   ;;  %s7402_s30 = smov 0  }
   0xd   :  { %s7404_s24 = smov 0  }
   0xe LB: > { %9150 = sst [smem:[#allocation4_spill]] %s7262_s30  ;;  %s7413_s25 = sadd.s32 4294967295, %s7266_s24   ;;  %s7266_s24 = sphi %s7404_s24, %s9190_s24   ;;  %s7262_s30 = sphi %s7402_s30, %s9192_s30   ;;  %s7258_s4 = sphi %s7400_s4, %s9191_s4  }
   0xf   : > { %s7415_s5 = sadd.s32 1, %s7266_s24   ;;  %s543_s26 = sadd.s32 1, %s7262_s30 }
  0x10   : > { %9151 = sst [smem:[#allocation5_spill]] %s7415_s5  ;;  %s540_s1 = ssub.s32 %s7266_s24, %s7415_s5 }
  0x11   : > { %p541_p0 = scmp.eq.s32.totalorder %s540_s1, 0  ;;  %p553_p1 = scmp.ne.s32.totalorder %s7262_s30, %s7258_s4 }
  0x12   : > { %p554_p2 = scmp.eq.s32.totalorder %s7413_s25, 1  ;;  %p5981_p3 = scmp.ge.s32.totalorder %s7266_s24, 1 }
  0x13   : > { %s7423_s2 = scalar_select %p541_p0, %s7262_s30, %s543_s26  }
  0x14   : > { %p7425_p4 = por %p554_p2, %p553_p1  ;;  %p663_p5 = scmp.lt.s32.totalorder %s7266_s24, 3 }
  0x15   : > { %9152 = sst [smem:[#allocation6_spill]] %s7423_s2 }
  0x16   : > { %p664_p6 = pnand %p5981_p3, %p663_p5 }
  0x18   : > { %667 = sbr.rel (%p664_p6) target bundleno = 7100 (0x1bbc), region = 112 }
  0x1d   : > { %p737_p7 = scmp.lt.s32.totalorder %s7413_s25, 1  ;;  %vm755_vm0 = vcmask 64512   ;;  %v9129_v0 = vmov 0.0   ;;  %s9154_s3 = sld [smem:[#allocation15_spill]]  ;;  %vm768_vm1 = vcmask 1047584   ;;  %vm770_vm2 = vcmask 31744  }
  0x1e   : > { %754 = vst [vmem:[#allocation2] sm:$0xff] %v9129_v0  ;;  %756 = vst.msk [vmem:[#allocation2 + $0x8] sm:$0xff] %vm755_vm0, %v9129_v0  ;;  %s9155_s26 = sld [smem:[#allocation18_spill]]  ;;  %s9120_s5 = smov 4   ;;  %v7270_v11 = vmov 0   ;;  %vm886_vm3 = vcmask 1031168  }
  0x1f   : > { %757 = vst [vmem:[#allocation2 + $0x10] sm:$0xff] %v9129_v0  ;;  %758 = vst.msk [vmem:[#allocation2 + $0x18] sm:$0xff] %vm755_vm0, %v9129_v0  ;;  %s7443_s27 = scalar_select %p737_p7, %s7413_s25, 1  ;;  %7237 = vset.pattern.permute.xlu1 %v7270_v11  ;;  %7238 = vset.pattern.permute.xlu0 %v7270_v11  ;;  %vm995_vm4 = vcmask 998400   ;;  %vm1168_vm5 = vcmask 261120   ;;  %vm1358_vm6 = vcmask 982016  }
  0x20   : > { %759 = vst [vmem:[#allocation2 + $0x20] sm:$0xff] %v9129_v0  ;;  %760 = vst.msk [vmem:[#allocation2 + $0x28] sm:$0xff] %vm755_vm0, %v9129_v0  ;;  %s9122_s28 = smov 126   ;;  %s7272_s29 = smov 122   ;;  %vm3453_vm7 = vcmask 785408   ;;  %vm3432_vm8 = vcmask 1022976  }
  0x21   : > { %761 = vst [vmem:[#allocation2 + $0x30] sm:$0xff] %v9129_v0  ;;  %762 = vst.msk [vmem:[#allocation2 + $0x38] sm:$0xff] %vm755_vm0, %v9129_v0  ;;  %s9119_s7 = sshll.u32 %s7443_s27, 3  ;;  %s9156_s30 = sld [smem:[#allocation19_spill]]  ;;  %vm3758_vm9 = vcmask 1014784   ;;  %vm7278_vm10 = vmmov 0  }
  0x22   : > { %s9159_s23 = sshll.u32 %s7443_s27, 3  ;;  %s9160_s24 = sld [smem:[#allocation16_spill]] }
  0x23   : > { %s745_s0 = scalar_lea.vmem %s9154_s3, %s9119_s7  ;;  %s9124_s3 = smov 120  }
  0x24   : > { %v763_v1 = vld [vmem:[%s745_s0] sm:$0xff]  ;;  %v5988_v3 = vld [vmem:[%s9155_s26 + $0x28] sm:$0xff]  ;;  %v5989_v4 = vld [vmem:[%s9155_s26 + $0x30] sm:$0xff]  ;;  %s9163_s8 = sld [smem:[#allocation22_spill]]  ;;  %s9164_s7 = smov 126  }
  0x25   : > { %v5987_v2 = vld [vmem:[%s9155_s26 + $0x20] sm:$0xff]  ;;  %765 = vrot.lane.b32.xlu0 %v763_v1, %s9120_s5  ;;  %6779 = vmatprep.subr.mxu0 %v763_v1  ;;  %v5990_v5 = vld [vmem:[%s9155_s26 + $0x38] sm:$0xff]  ;;  %v775_v19 = vld [vmem:[%s9155_s26 + $0x8] sm:$0xff]  ;;  %s9158_s5 = smov 4   ;;  %s9165_s9 = sld [smem:[#allocation23_spill]] }
  0x26   : > { %6780 = vmatpush3.msra.mxu0 %v763_v1  ;;  %6781 = vmatprep.mubr.msk.f32.mxu0 %vm755_vm0, %v5987_v2  ;;  %v774_v6 = vld [vmem:[%s9155_s26] sm:$0xff]  ;;  %v776_v20 = vld [vmem:[%s9155_s26 + $0x10] sm:$0xff]  ;;  %v777_v24 = vld [vmem:[%s9155_s26 + $0x18] sm:$0xff]  ;;  %s9167_s0 = sld [smem:[#allocation21_spill]] }
  0x27   : > { %6782 = vmatmul.mubr.msk.f32.vlgmr.msra.gmra.mxu0 %vm755_vm0, %v5988_v3  ;;  %6789 = vmatprep.mubr.msk.f32.mxu1 %vm755_vm0, %v774_v6  ;;  %v5999_v8 = vld [vmem:[%s9155_s26 + $0x40] sm:$0xff]  ;;  %s9157_s2 = smov %s9156_s30  ;;  %v1102_v12 = vld [vmem:[%s9156_s30 + $0x18] sm:$0xff]  ;;  %v6000_v25 = vld [vmem:[%s9155_s26 + $0x48] sm:$0xff]  ;;  %s9161_s30 = sld [smem:[#allocation20_spill]] }
  0x28   : > { %6784 = vmatprep.mubr.msk.f32.mxu0 %vm755_vm0, %v5989_v4  ;;  %v1099_v13 = vld [vmem:[%s9157_s2] sm:$0xff]  ;;  %v1101_v14 = vld [vmem:[%s9157_s2 + $0x10] sm:$0xff]  ;;  %v1100_v15 = vld [vmem:[%s9157_s2 + $0x8] sm:$0xff]  ;;  %s749_s1 = scalar_lea.vmem %s9160_s24, %s9159_s23  ;;  %s9131_s24 = smov 125  }
  0x29   : > { %v6001_v26 = vld [vmem:[%s9155_s26 + $0x50] sm:$0xff]  ;;  %v6002_v27 = vld [vmem:[%s9155_s26 + $0x58] sm:$0xff]  ;;  %v1466_v60 = vld [vmem:[%s749_s1] sm:$0xff]  ;;  %s9135_s26 = smov 2  }
  0x2b   : > { %6785 = vmatmul.mubr.msk.f32.gmra.mxu0 %vm755_vm0, %v5990_v5 }
  0x2c   : > { %6797 = vmatprep.mubr.msk.f32.mxu0 %vm755_vm0, %v5999_v8 }
  0x2d   : > { %s9162_s23 = smov %s9161_s30  ;;  %v6007_v63 = vld [vmem:[%s9161_s30 + $0x10] sm:$0xff] }
  0x2e   : > { %v6008_v2 = vld [vmem:[%s9162_s23 + $0x18] sm:$0xff]  ;;  %v1163_v4 = vld [vmem:[%s9162_s23] sm:$0xff] }
  0x97   : > { %v766_v7 = vpop.permute.xlu0 %765 }
  0x98   : > { %769 = vst.msk [vmem:[#allocation2] sm:$0xff] %vm768_vm1, %v766_v7 }
  0x99   : > { %771 = vst.msk [vmem:[#allocation2 + $0x8] sm:$0xff] %vm770_vm2, %v766_v7 }
  0x9f   : > { %v772_v10 = vld [vmem:[#allocation2] sm:$0xff] }
  0xa0   : > { %v773_v9 = vld [vmem:[#allocation2 + $0x8] sm:$0xff]  ;;  %882 = vrot.lane.b32.xlu0 %v772_v10, %s9122_s28 }
  0xa1   : > { %884 = vrot.lane.b32.xlu1 %v773_v9, %s9122_s28  ;;  %s9166_s28 = smov 120  }
  0xa4   : > { %993 = vrot.lane.b32.xlu0 %v773_v9, %s7272_s29 }
  0xa5   : > { %991 = vrot.lane.b32.xlu1 %v772_v10, %s7272_s29 }
  0xa8   : > { %1105 = vperm.xlu0 %7238, %v1099_v13  }
  0xa9   : > { %1120 = vperm.xlu1 %7237, %v1102_v12   ;;  %v6013_v12 = vld [vmem:[%s9162_s23 + $0x20] sm:$0xff] }
  0xad   : > { %1115 = vperm.xlu1 %7237, %v1101_v14   ;;  %v1164_v14 = vld [vmem:[%s9162_s23 + $0x8] sm:$0xff] }
  0xb1   : > { %1110 = vperm.xlu1 %7237, %v1100_v15  }
  0xe7   : > { %v6783_v28 = vpop.f32.mrf.mxu0 }
  0xe9   : > { %v861_v29 = vpop.f32.mrf.mxu0 }
  0xeb   : > { %v6786_v31 = vpop.f32.mrf.mxu0 }
  0xed   : > { %v871_v33 = vpop.f32.mrf.mxu0 }
 0x112   : > { %v883_v17 = vpop.permute.xlu0 %882 }
 0x113   : > { %v885_v16 = vpop.permute.xlu1 %884 }
 0x114   : > { %v887_v18 = vsel %vm886_vm3, %v883_v17, %v885_v16  ;;  %v6017_v16 = vld [vmem:[%s9163_s8 + $0x20] sm:$0xff]  ;;  %v6018_v17 = vld [vmem:[%s9163_s8 + $0x28] sm:$0xff] }
 0x115   : > { %6787 = vmatprep.subr.mxu1 %v887_v18 }
 0x116   : > { %6788 = vmatpush3.msra.mxu1 %v887_v18  ;;  %v994_v22 = vpop.permute.xlu0 %993  ;;  %v6019_v18 = vld [vmem:[%s9163_s8 + $0x30] sm:$0xff] }
 0x117   : > { %v992_v21 = vpop.permute.xlu1 %991  ;;  %6790 = vmatmul.mubr.msk.f32.vlgmr.msra.gmra.mxu1 %vm755_vm0, %v775_v19 }
 0x118   : > { %v996_v23 = vsel %vm995_vm4, %v992_v21, %v994_v22  ;;  %6792 = vmatprep.mubr.msk.f32.mxu1 %vm755_vm0, %v776_v20  ;;  %v6020_v21 = vld [vmem:[%s9163_s8 + $0x38] sm:$0xff]  ;;  %v6029_v22 = vld [vmem:[%s9163_s8 + $0x40] sm:$0xff] }
 0x119   : > { %6795 = vmatprep.subr.mxu0 %v996_v23 }
 0x11a   : > { %6796 = vmatpush3.msra.mxu0 %v996_v23  ;;  %v1800_v23 = vld [vmem:[%s9165_s9 + $0x10] sm:$0xff] }
 0x11b   : > { %6793 = vmatmul.mubr.msk.f32.gmra.mxu1 %vm755_vm0, %v777_v24  ;;  %6798 = vmatmul.mubr.msk.f32.vlgmr.msra.gmra.mxu0 %vm755_vm0, %v6000_v25  ;;  %v1801_v24 = vld [vmem:[%s9165_s9 + $0x18] sm:$0xff]  ;;  %v1798_v25 = vld [vmem:[%s9165_s9] sm:$0xff] }
 0x11c   : > { %6800 = vmatprep.mubr.msk.f32.mxu0 %vm755_vm0, %v6001_v26  ;;  %6811 = vmatprep.mubr.msk.f32.mxu1 %vm1168_vm5, %v6007_v63  ;;  %v1799_v26 = vld [vmem:[%s9165_s9 + $0x8] sm:$0xff]  ;;  %s6193_s9 = sshll.u32 %s7443_s27, 11 }
 0x11f   : > { %6801 = vmatmul.mubr.msk.f32.gmra.mxu0 %vm755_vm0, %v6002_v27 }
 0x120   : > { %6822 = vmatprep.mubr.msk.f32.mxu0 %vm1168_vm5, %v1163_v4 }
 0x123   : > { %v1106_v40 = vpop.permute.xlu0 %1105 }
 0x124   : > { %v1121_v30 = vpop.permute.xlu1 %1120 }
 0x128   : > { %v1116_v35 = vpop.permute.xlu1 %1115 }
 0x12c   : > { %v1111_v50 = vpop.permute.xlu1 %1110 }
 0x1d7   : > { %v6791_v32 = vpop.f32.mrf.mxu1 }
 0x1d8   : > { %v973_v38 = vadd.f32 %v6791_v32, %v6783_v28 }
 0x1d9   : > { %v967_v34 = vpop.f32.mrf.mxu1 }
 0x1da   : > { %v968_v39 = vadd.f32 %v967_v34, %v861_v29 }
 0x1db   : > { %v6794_v36 = vpop.f32.mrf.mxu1  ;;  %v6799_v37 = vpop.f32.mrf.mxu0 }
 0x1dc   : > { %v983_v43 = vadd.f32 %v6794_v36, %v6786_v31  ;;  %v1096_v44 = vadd.f32 %v6799_v37, %v973_v38 }
 0x1dd   : > { %v977_v41 = vpop.f32.mrf.mxu1  ;;  %v1076_v42 = vpop.f32.mrf.mxu0 }
 0x1de   : > { %v1095_v45 = vadd.f32 %v1076_v42, %v968_v39  ;;  %v978_v47 = vadd.f32 %v977_v41, %v871_v33  ;;  %v1124_v52 = vadd.f32 %v1111_v50, %v1096_v44  ;;  %v6014_v39 = vld [vmem:[%s9162_s23 + $0x28] sm:$0xff] }
 0x1df   : > { %v6802_v46 = vpop.f32.mrf.mxu0  ;;  %v1476_v44 = vld [vmem:[%s9163_s8 + $0x8] sm:$0xff] }
 0x1e0   : > { %v1123_v48 = vadd.f32 %v1106_v40, %v1095_v45  ;;  %v1098_v49 = vadd.f32 %v6802_v46, %v983_v43  ;;  %v1128_v58 = vmax.f32 %v1124_v52, 0.0  ;;  %v1475_v40 = vld [vmem:[%s9163_s8] sm:$0xff]  ;;  %v1477_v45 = vld [vmem:[%s9163_s8 + $0x10] sm:$0xff]  ;;  %v6030_v50 = vld [vmem:[%s9163_s8 + $0x48] sm:$0xff] }
 0x1e1   : > { %v1086_v51 = vpop.f32.mrf.mxu0  ;;  %v6032_v52 = vld [vmem:[%s9163_s8 + $0x58] sm:$0xff] }
 0x1e2   : > { %v1127_v53 = vmax.f32 %v1123_v48, 0.0  ;;  %v1126_v54 = vadd.f32 %v1121_v30, %v1098_v49  ;;  %v1097_v55 = vadd.f32 %v1086_v51, %v978_v47  ;;  %v1478_v49 = vld [vmem:[%s9163_s8 + $0x18] sm:$0xff]  ;;  %v6031_v51 = vld [vmem:[%s9163_s8 + $0x50] sm:$0xff]  ;;  %s9185_s8 = smov 3  }
 0x1e4   : > { %v1130_v56 = vmax.f32 %v1126_v54, 0.0  ;;  %v1125_v57 = vadd.f32 %v1116_v35, %v1097_v55  ;;  %1135 = vrot.lane.b32.xlu1 %v1127_v53, %s9158_s5 }
 0x1e6   : > { %v1129_v59 = vmax.f32 %v1125_v57, 0.0  ;;  %1141 = vrot.lane.b32.xlu0 %v1130_v56, %s9158_s5  ;;  %6803 = vmatprep.subr.mxu1 %v1130_v56 }
 0x1e7   : > { %6804 = vmatpush3.msra.mxu1 %v1130_v56 }
 0x1e8   : > { %1137 = vrot.lane.b32.xlu1 %v1128_v58, %s9158_s5  ;;  %6805 = vmatprep.subr.mxu1 %v1129_v59 }
 0x1e9   : > { %6806 = vmatpush3.msra.mxu1 %v1129_v59 }
 0x1ea   : > { %1139 = vrot.lane.b32.xlu0 %v1129_v59, %s9158_s5  ;;  %6807 = vmatprep.subr.mxu1 %v1128_v58 }
 0x1eb   : > { %6808 = vmatpush3.msra.mxu1 %v1128_v58 }
 0x1ec   : > { %6809 = vmatprep.subr.mxu1 %v1127_v53 }
 0x1ed   : > { %6810 = vmatpush3.msra.mxu1 %v1127_v53 }
 0x1ee   : > { %1468 = vrot.lane.b32.xlu0 %v1466_v60, %s9158_s5  ;;  %6812 = vmatmul.mubr.msk.f32.vlgmr.msra.gmra.mxu1 %vm1168_vm5, %v6008_v2 }
 0x1ef   : > { %6833 = vmatprep.mubr.msk.f32.mxu1 %vm1168_vm5, %v6013_v12 }
 0x256   : > { %v1136_v61 = vpop.permute.xlu1 %1135 }
 0x257   : > { %1147 = vst.msk [vmem:[#allocation2] sm:$0xff] %vm768_vm1, %v1136_v61 }
 0x258   : > { %1148 = vst.msk [vmem:[#allocation2 + $0x8] sm:$0xff] %vm770_vm2, %v1136_v61  ;;  %v1142_v62 = vpop.permute.xlu0 %1141 }
 0x259   : > { %1153 = vst.msk [vmem:[#allocation2 + $0x30] sm:$0xff] %vm768_vm1, %v1142_v62 }
 0x25a   : > { %1154 = vst.msk [vmem:[#allocation2 + $0x38] sm:$0xff] %vm770_vm2, %v1142_v62  ;;  %v1138_v1 = vpop.permute.xlu1 %1137 }
 0x25b   : > { %1149 = vst.msk [vmem:[#allocation2 + $0x10] sm:$0xff] %vm768_vm1, %v1138_v1 }
 0x25c   : > { %1150 = vst.msk [vmem:[#allocation2 + $0x18] sm:$0xff] %vm770_vm2, %v1138_v1  ;;  %v1140_v3 = vpop.permute.xlu0 %1139 }
 0x25d   : > { %1151 = vst.msk [vmem:[#allocation2 + $0x20] sm:$0xff] %vm768_vm1, %v1140_v3 }
 0x25e   : > { %1152 = vst.msk [vmem:[#allocation2 + $0x28] sm:$0xff] %vm770_vm2, %v1140_v3  ;;  %v1155_v6 = vld [vmem:[#allocation2] sm:$0xff] }
 0x25f   : > { %v1159_v8 = vld [vmem:[#allocation2 + $0x8] sm:$0xff] }
 0x260   : > { %v1158_v5 = vld [vmem:[#allocation2 + $0x30] sm:$0xff]  ;;  %v1469_v7 = vpop.permute.xlu0 %1468 }
 0x261   : > { %6814 = vmatprep.subr.mxu0 %v1158_v5  ;;  %1471 = vst.msk [vmem:[#allocation2] sm:$0xff] %vm768_vm1, %v1469_v7  ;;  %v1162_v13 = vld [vmem:[#allocation2 + $0x38] sm:$0xff] }
 0x262   : > { %1472 = vst.msk [vmem:[#allocation2 + $0x8] sm:$0xff] %vm770_vm2, %v1469_v7  ;;  %6815 = vmatpush3.msra.mxu0 %v1158_v5  ;;  %v1156_v9 = vld [vmem:[#allocation2 + $0x10] sm:$0xff] }
 0x263   : > { %v1160_v10 = vld [vmem:[#allocation2 + $0x18] sm:$0xff]  ;;  %1346 = vrot.lane.b32.xlu1 %v1156_v9, %s9124_s3 }
 0x264   : > { %1348 = vrot.lane.b32.xlu0 %v1160_v10, %s9124_s3  ;;  %v1157_v11 = vld [vmem:[#allocation2 + $0x20] sm:$0xff] }
 0x265   : > { %6816 = vmatprep.subr.mxu0 %v1157_v11  ;;  %v1161_v15 = vld [vmem:[#allocation2 + $0x28] sm:$0xff] }
 0x266   : > { %6817 = vmatpush3.msra.mxu0 %v1157_v11 }
 0x267   : > { %1354 = vrot.lane.b32.xlu1 %v1158_v5, %s9124_s3  ;;  %6818 = vmatprep.subr.mxu0 %v1156_v9 }
 0x268   : > { %1356 = vrot.lane.b32.xlu0 %v1162_v13, %s9124_s3  ;;  %6819 = vmatpush3.msra.mxu0 %v1156_v9  ;;  %v1473_v20 = vld [vmem:[#allocation2] sm:$0xff] }
 0x269   : > { %6820 = vmatprep.subr.mxu0 %v1155_v6  ;;  %v1474_v19 = vld [vmem:[#allocation2 + $0x8] sm:$0xff] }
 0x26a   : > { %6821 = vmatpush3.msra.mxu0 %v1155_v6 }
 0x26b   : > { %1350 = vrot.lane.b32.xlu1 %v1157_v11, %s9124_s3  ;;  %6823 = vmatmul.mubr.msk.f32.vlgmr.msra.gmra.mxu0 %vm1168_vm5, %v1164_v14 }
 0x26c   : > { %1352 = vrot.lane.b32.xlu0 %v1161_v15, %s9124_s3  ;;  %6836 = vmatprep.subr.mxu0 %v1466_v60 }
 0x26d   : > { %6838 = vmatprep.mubr.msk.f32.mxu0 %vm755_vm0, %v6017_v16  ;;  %6837 = vmatpush3.msra.mxu0 %v1466_v60 }
 0x26f   : > { %1342 = vrot.lane.b32.xlu1 %v1155_v6, %s9124_s3  ;;  %6839 = vmatmul.mubr.msk.f32.vlgmr.msra.gmra.mxu0 %vm755_vm0, %v6018_v17 }
 0x270   : > { %1344 = vrot.lane.b32.xlu0 %v1159_v8, %s9124_s3  ;;  %6841 = vmatprep.mubr.msk.f32.mxu0 %vm755_vm0, %v6019_v18  ;;  %s9133_s3 = smov 3  }
 0x273   : > { %1583 = vrot.lane.b32.xlu1 %v1473_v20, %s9164_s7  ;;  %6842 = vmatmul.mubr.msk.f32.gmra.mxu0 %vm755_vm0, %v6020_v21 }
 0x274   : > { %1585 = vrot.lane.b32.xlu0 %v1474_v19, %s9164_s7  ;;  %6854 = vmatprep.mubr.msk.f32.mxu0 %vm755_vm0, %v6029_v22 }
 0x277   : > { %1691 = vrot.lane.b32.xlu1 %v1473_v20, %s7272_s29 }
 0x278   : > { %1693 = vrot.lane.b32.xlu0 %v1474_v19, %s7272_s29  ;;  %s9168_s29 = sld [smem:[#allocation14_spill]] }
 0x27b   : > { %1819 = vperm.xlu1 %7237, %v1801_v24  }
 0x27c   : > { %1814 = vperm.xlu0 %7238, %v1800_v23  }
 0x27e   : > { %s7716_s2 = scalar_lea.vmem %s9168_s29, %s6193_s9  ;;  %s9183_s9 = sld [smem:[#allocation17_spill]] }
 0x27f   : > { %1809 = vperm.xlu1 %7237, %v1799_v26  }
 0x280   : > { %1804 = vperm.xlu0 %7238, %v1798_v25  }
 0x284   : > { %s8343_s30 = scalar_lea.vmem %s9183_s9, %s7443_s27  ;;  %s9137_s27 = smov 124  }
 0x285   : > { %s9186_s9 = smov 125  }
 0x2ae   : > { %v6813_v53 = vpop.f32.mrf.mxu1 }
 0x2b0   : > { %v1241_v58 = vpop.f32.mrf.mxu1 }
 0x2d5   : > { %v1347_v27 = vpop.permute.xlu1 %1346 }
 0x2d6   : > { %v1349_v28 = vpop.permute.xlu0 %1348 }
 0x2d7   : > { %v1360_v36 = vsel %vm1358_vm6, %v1347_v27, %v1349_v28 }
 0x2d9   : > { %v1355_v29 = vpop.permute.xlu1 %1354 }
 0x2da   : > { %v1357_v30 = vpop.permute.xlu0 %1356 }
 0x2db   : > { %v1362_v31 = vsel %vm1358_vm6, %v1355_v29, %v1357_v30 }
 0x2dc   : > { %6825 = vmatprep.subr.mxu1 %v1362_v31 }
 0x2dd   : > { %6826 = vmatpush3.msra.mxu1 %v1362_v31  ;;  %v1351_v33 = vpop.permute.xlu1 %1350 }
 0x2de   : > { %v1353_v32 = vpop.permute.xlu0 %1352 }
 0x2df   : > { %v1361_v34 = vsel %vm1358_vm6, %v1351_v33, %v1353_v32 }
 0x2e0   : > { %6827 = vmatprep.subr.mxu1 %v1361_v34 }
 0x2e1   : > { %6828 = vmatpush3.msra.mxu1 %v1361_v34  ;;  %v1343_v37 = vpop.permute.xlu1 %1342 }
 0x2e2   : > { %v1345_v35 = vpop.permute.xlu0 %1344  ;;  %6829 = vmatprep.subr.mxu1 %v1360_v36 }
 0x2e3   : > { %6830 = vmatpush3.msra.mxu1 %v1360_v36  ;;  %v1359_v38 = vsel %vm1358_vm6, %v1343_v37, %v1345_v35  ;;  %v6037_v35 = vld [vmem:[%s9098_s10 + $0x10] sm:$0xff]  ;;  %v1862_v36 = vld [vmem:[%s9098_s10] sm:$0xff] }
 0x2e4   : > { %6831 = vmatprep.subr.mxu1 %v1359_v38 }
 0x2e5   : > { %6832 = vmatpush3.msra.mxu1 %v1359_v38  ;;  %v1584_v42 = vpop.permute.xlu1 %1583  ;;  %v6038_v38 = vld [vmem:[%s9098_s10 + $0x18] sm:$0xff] }
 0x2e6   : > { %v1586_v41 = vpop.permute.xlu0 %1585  ;;  %6834 = vmatmul.mubr.msk.f32.vlgmr.msra.gmra.mxu1 %vm1168_vm5, %v6014_v39 }
 0x2e7   : > { %v1587_v43 = vsel %vm886_vm3, %v1584_v42, %v1586_v41  ;;  %6846 = vmatprep.mubr.msk.f32.mxu1 %vm755_vm0, %v1475_v40 }
 0x2e8   : > { %6844 = vmatprep.subr.mxu1 %v1587_v43 }
 0x2e9   : > { %6845 = vmatpush3.msra.mxu1 %v1587_v43  ;;  %v1692_v47 = vpop.permute.xlu1 %1691 }
 0x2ea   : > { %v1694_v46 = vpop.permute.xlu0 %1693  ;;  %6847 = vmatmul.mubr.msk.f32.vlgmr.msra.gmra.mxu1 %vm755_vm0, %v1476_v44  ;;  %v1863_v44 = vld [vmem:[%s9098_s10 + $0x8] sm:$0xff] }
 0x2eb   : > { %v1695_v48 = vsel %vm995_vm4, %v1692_v47, %v1694_v46  ;;  %6849 = vmatprep.mubr.msk.f32.mxu1 %vm755_vm0, %v1477_v45  ;;  %v6043_v45 = vld [vmem:[%s9098_s10 + $0x20] sm:$0xff] }
 0x2ec   : > { %6852 = vmatprep.subr.mxu0 %v1695_v48 }
 0x2ed   : > { %6853 = vmatpush3.msra.mxu0 %v1695_v48 }
 0x2ee   : > { %6850 = vmatmul.mubr.msk.f32.gmra.mxu1 %vm755_vm0, %v1478_v49  ;;  %6855 = vmatmul.mubr.msk.f32.vlgmr.msra.gmra.mxu0 %vm755_vm0, %v6030_v50  ;;  %v2148_v49 = vld [vmem:[%s9099_s11 + $0x8] sm:$0xff]  ;;  %v2147_v50 = vld [vmem:[%s9099_s11] sm:$0xff] }
 0x2ef   : > { %6857 = vmatprep.mubr.msk.f32.mxu0 %vm755_vm0, %v6031_v51  ;;  %6868 = vmatprep.mubr.msk.f32.mxu1 %vm1168_vm5, %v6037_v35  ;;  %v1451_v51 = vld [vmem:[%s9167_s0 + $0x8] sm:$0xff]  ;;  %v2245_v35 = vld [vmem:[%s7716_s2 + $0x90] sm:$0xff] }
 0x2f2   : > { %6858 = vmatmul.mubr.msk.f32.gmra.mxu0 %vm755_vm0, %v6032_v52  ;;  %v1450_v52 = vld [vmem:[%s9167_s0] sm:$0xff]  ;;  %s6190_s0 = sshll.u32 (%p7425_p4), %s7413_s25, 3 }
 0x2f3   : > { %6879 = vmatprep.mubr.msk.f32.mxu0 %vm1168_vm5, %v1862_v36  ;;  %v2229_v36 = vld [vmem:[%s7716_s2 + $0x10] sm:$0xff] }
 0x2f6   : > { %v1820_v8 = vpop.permute.xlu1 %1819 }
 0x2f7   : > { %v1815_v13 = vpop.permute.xlu0 %1814 }
 0x2fa   : > { %v1810_v23 = vpop.permute.xlu1 %1809 }
 0x2fb   : > { %v1805_v27 = vpop.permute.xlu0 %1804 }
 0x32b   : > { %v6824_v54 = vpop.f32.mrf.mxu0 }
 0x32c   : > { %v1328_v55 = vadd.f32 %v6824_v54, %v6813_v53  ;;  %v3267_v53 = vld [vmem:[%s9102_s14 + $0x18] sm:$0xff]  ;;  %v3266_v54 = vld [vmem:[%s9102_s14 + $0x10] sm:$0xff] }
 0x32d   : > { %v1322_v56 = vpop.f32.mrf.mxu0 }
 0x32e   : > { %v1323_v61 = vadd.f32 %v1322_v56, %v1241_v58  ;;  %v3264_v56 = vld [vmem:[%s9102_s14] sm:$0xff] }
 0x32f   : > { %v6840_v57 = vpop.f32.mrf.mxu0 }
 0x331   : > { %v1562_v59 = vpop.f32.mrf.mxu0 }
 0x333   : > { %v6843_v1 = vpop.f32.mrf.mxu0 }
 0x335   : > { %v1572_v4 = vpop.f32.mrf.mxu0 }
 0x3a6   : > { %v6835_v60 = vpop.f32.mrf.mxu1 }
 0x3a7   : > { %v7642_v62 = vadd.f32 %v6835_v60, %v1328_v55  ;;  %v3265_v55 = vld [vmem:[%s9102_s14 + $0x8] sm:$0xff] }
 0x3a8   : > { %v1439_v63 = vpop.f32.mrf.mxu1 }
 0x3a9   : > { %v7644_v2 = vadd.f32 %v1439_v63, %v1323_v61 }
 0x3aa   : > { %v6848_v3 = vpop.f32.mrf.mxu1 }
 0x3ab   : > { %v1673_v11 = vadd.f32 %v6848_v3, %v6840_v57 }
 0x3ac   : > { %v1667_v5 = vpop.f32.mrf.mxu1 }
 0x3ad   : > { %v1668_v15 = vadd.f32 %v1667_v5, %v1562_v59 }
 0x3ae   : > { %v6851_v6 = vpop.f32.mrf.mxu1  ;;  %v6856_v7 = vpop.f32.mrf.mxu0 }
 0x3af   : > { %v1683_v12 = vadd.f32 %v6851_v6, %v6843_v1  ;;  %v1795_v16 = vadd.f32 %v6856_v7, %v1673_v11  ;;  %v2257_v11 = vld [vmem:[%s7716_s2 + $0xf0] sm:$0xff] }
 0x3b0   : > { %v1677_v9 = vpop.f32.mrf.mxu1  ;;  %v1775_v10 = vpop.f32.mrf.mxu0 }
 0x3b1   : > { %v1678_v17 = vadd.f32 %v1677_v9, %v1572_v4  ;;  %v1794_v20 = vadd.f32 %v1775_v10, %v1668_v15  ;;  %v1823_v24 = vadd.f32 %v1810_v23, %v1795_v16  ;;  %v2258_v9 = vld [vmem:[%s7716_s2 + $0xf8] sm:$0xff]  ;;  %v2255_v15 = vld [vmem:[%s7716_s2 + $0xe0] sm:$0xff] }
 0x3b2   : > { %v6859_v14 = vpop.f32.mrf.mxu0  ;;  %v2242_v10 = vld [vmem:[%s7716_s2 + $0x78] sm:$0xff]  ;;  %v2239_v16 = vld [vmem:[%s7716_s2 + $0x60] sm:$0xff] }
 0x3b3   : > { %v1797_v18 = vadd.f32 %v6859_v14, %v1683_v12  ;;  %v1822_v28 = vadd.f32 %v1805_v27, %v1794_v20  ;;  %v1827_v30 = vmax.f32 %v1823_v24, 0.0  ;;  %v2241_v12 = vld [vmem:[%s7716_s2 + $0x70] sm:$0xff]  ;;  %v2240_v14 = vld [vmem:[%s7716_s2 + $0x68] sm:$0xff]  ;;  %v2251_v23 = vld [vmem:[%s7716_s2 + $0xc0] sm:$0xff] }
 0x3b4   : > { %v1785_v19 = vpop.f32.mrf.mxu0  ;;  %v2237_v20 = vld [vmem:[%s7716_s2 + $0x50] sm:$0xff]  ;;  %v2235_v24 = vld [vmem:[%s7716_s2 + $0x40] sm:$0xff] }
 0x3b5   : > { %v1825_v21 = vadd.f32 %v1820_v8, %v1797_v18  ;;  %v1796_v22 = vadd.f32 %v1785_v19, %v1678_v17  ;;  %v1826_v31 = vmax.f32 %v1822_v28, 0.0  ;;  %v6044_v8 = vld [vmem:[%s9098_s10 + $0x28] sm:$0xff]  ;;  %v2254_v17 = vld [vmem:[%s7716_s2 + $0xd8] sm:$0xff]  ;;  %v2253_v19 = vld [vmem:[%s7716_s2 + $0xd0] sm:$0xff] }
 0x3b6   : > { %v2238_v18 = vld [vmem:[%s7716_s2 + $0x58] sm:$0xff]  ;;  %v2249_v27 = vld [vmem:[%s7716_s2 + $0xb0] sm:$0xff] }
 0x3b7   : > { %v1829_v25 = vmax.f32 %v1825_v21, 0.0  ;;  %v1824_v26 = vadd.f32 %v1815_v13, %v1796_v22  ;;  %v2256_v13 = vld [vmem:[%s7716_s2 + $0xe8] sm:$0xff]  ;;  %v2233_v28 = vld [vmem:[%s7716_s2 + $0x30] sm:$0xff] }
 0x3b8   : > { %v2252_v21 = vld [vmem:[%s7716_s2 + $0xc8] sm:$0xff] }
 0x3b9   : > { %v1828_v29 = vmax.f32 %v1824_v26, 0.0  ;;  %1840 = vrot.lane.b32.xlu1 %v1829_v25, %s9158_s5  ;;  %6860 = vmatprep.subr.mxu1 %v1829_v25  ;;  %v2236_v22 = vld [vmem:[%s7716_s2 + $0x48] sm:$0xff]  ;;  %v2234_v26 = vld [vmem:[%s7716_s2 + $0x38] sm:$0xff] }
 0x3ba   : > { %6861 = vmatpush3.msra.mxu1 %v1829_v25  ;;  %v2250_v25 = vld [vmem:[%s7716_s2 + $0xb8] sm:$0xff] }
 0x3bb   : > { %1838 = vrot.lane.b32.xlu0 %v1828_v29, %s9158_s5  ;;  %6862 = vmatprep.subr.mxu1 %v1828_v29 }
 0x3bc   : > { %6863 = vmatpush3.msra.mxu1 %v1828_v29  ;;  %v2248_v29 = vld [vmem:[%s7716_s2 + $0xa8] sm:$0xff] }
 0x3bd   : > { %1836 = vrot.lane.b32.xlu1 %v1827_v30, %s9158_s5  ;;  %6864 = vmatprep.subr.mxu1 %v1827_v30 }
 0x3be   : > { %6865 = vmatpush3.msra.mxu1 %v1827_v30  ;;  %v2232_v30 = vld [vmem:[%s7716_s2 + $0x28] sm:$0xff] }
 0x3bf   : > { %1834 = vrot.lane.b32.xlu0 %v1826_v31, %s9158_s5  ;;  %6866 = vmatprep.subr.mxu1 %v1826_v31 }
 0x3c0   : > { %6867 = vmatpush3.msra.mxu1 %v1826_v31  ;;  %v2247_v31 = vld [vmem:[%s7716_s2 + $0xa0] sm:$0xff] }
 0x3c1   : > { %6869 = vmatmul.mubr.msk.f32.vlgmr.msra.gmra.mxu1 %vm1168_vm5, %v6038_v38  ;;  %v2228_v38 = vld [vmem:[%s7716_s2 + $0x8] sm:$0xff] }
 0x3c2   : > { %6890 = vmatprep.mubr.msk.f32.mxu1 %vm1168_vm5, %v6043_v45  ;;  %v2483_v45 = vld [vmem:[%s9101_s13] sm:$0xff] }
 0x42b   : > { %v1841_v32 = vpop.permute.xlu1 %1840 }
 0x42c   : > { %1852 = vst.msk [vmem:[#allocation2 + $0x30] sm:$0xff] %vm768_vm1, %v1841_v32 }
 0x42d   : > { %1853 = vst.msk [vmem:[#allocation2 + $0x38] sm:$0xff] %vm770_vm2, %v1841_v32  ;;  %v1839_v33 = vpop.permute.xlu0 %1838  ;;  %v2231_v32 = vld [vmem:[%s7716_s2 + $0x20] sm:$0xff] }
 0x42e   : > { %1850 = vst.msk [vmem:[#allocation2 + $0x20] sm:$0xff] %vm768_vm1, %v1839_v33 }
 0x42f   : > { %1851 = vst.msk [vmem:[#allocation2 + $0x28] sm:$0xff] %vm770_vm2, %v1839_v33  ;;  %v1837_v34 = vpop.permute.xlu1 %1836  ;;  %v2246_v33 = vld [vmem:[%s7716_s2 + $0x98] sm:$0xff] }
 0x430   : > { %1848 = vst.msk [vmem:[#allocation2 + $0x10] sm:$0xff] %vm768_vm1, %v1837_v34 }
 0x431   : > { %1849 = vst.msk [vmem:[#allocation2 + $0x18] sm:$0xff] %vm770_vm2, %v1837_v34  ;;  %v1835_v37 = vpop.permute.xlu0 %1834  ;;  %v2230_v34 = vld [vmem:[%s7716_s2 + $0x18] sm:$0xff] }
 0x432   : > { %1846 = vst.msk [vmem:[#allocation2] sm:$0xff] %vm768_vm1, %v1835_v37 }
 0x433   : > { %1847 = vst.msk [vmem:[#allocation2 + $0x8] sm:$0xff] %vm770_vm2, %v1835_v37  ;;  %v1857_v39 = vld [vmem:[#allocation2 + $0x30] sm:$0xff]  ;;  %v2244_v37 = vld [vmem:[%s7716_s2 + $0x88] sm:$0xff] }
 0x434   : > { %6871 = vmatprep.subr.mxu0 %v1857_v39  ;;  %v1861_v46 = vld [vmem:[#allocation2 + $0x38] sm:$0xff] }
 0x435   : > { %6872 = vmatpush3.msra.mxu0 %v1857_v39  ;;  %v1856_v40 = vld [vmem:[#allocation2 + $0x20] sm:$0xff] }
 0x436   : > { %6873 = vmatprep.subr.mxu0 %v1856_v40  ;;  %v1860_v47 = vld [vmem:[#allocation2 + $0x28] sm:$0xff] }
 0x437   : > { %6874 = vmatpush3.msra.mxu0 %v1856_v40  ;;  %v1855_v41 = vld [vmem:[#allocation2 + $0x10] sm:$0xff] }
 0x438   : > { %v1859_v42 = vld [vmem:[#allocation2 + $0x18] sm:$0xff]  ;;  %2044 = vrot.lane.b32.xlu1 %v1855_v41, %s9166_s28  ;;  %6875 = vmatprep.subr.mxu0 %v1855_v41 }
 0x439   : > { %2046 = vrot.lane.b32.xlu0 %v1859_v42, %s9166_s28  ;;  %6876 = vmatpush3.msra.mxu0 %v1855_v41  ;;  %v1854_v43 = vld [vmem:[#allocation2] sm:$0xff]  ;;  %v2164_v41 = vld [vmem:[%s9100_s12 + $0x8] sm:$0xff] }
 0x43a   : > { %6877 = vmatprep.subr.mxu0 %v1854_v43  ;;  %v1858_v48 = vld [vmem:[#allocation2 + $0x8] sm:$0xff]  ;;  %v2163_v42 = vld [vmem:[%s9100_s12] sm:$0xff] }
 0x43b   : > { %6878 = vmatpush3.msra.mxu0 %v1854_v43 }
 0x43c   : > { %2052 = vrot.lane.b32.xlu1 %v1857_v39, %s9166_s28  ;;  %6880 = vmatmul.mubr.msk.f32.vlgmr.msra.gmra.mxu0 %vm1168_vm5, %v1863_v44  ;;  %v2243_v39 = vld [vmem:[%s7716_s2 + $0x80] sm:$0xff] }
 0x43d   : > { %2054 = vrot.lane.b32.xlu0 %v1861_v46, %s9166_s28  ;;  %v2179_v44 = vld [vmem:[%s9100_s12 + $0x80] sm:$0xff]  ;;  %6901 = vmatprep.mubr.msk.f32.mxu0 %vm1168_vm5, %v2483_v45  ;;  %v2322_v46 = vld [vmem:[%s7716_s2 + $0x2f8] sm:$0xff] }
 0x43e   : > { %v2378_v45 = vld [vmem:[%s7716_s2 + $0x4b8] sm:$0xff] }
 0x440   : > { %2048 = vrot.lane.b32.xlu1 %v1856_v40, %s9166_s28  ;;  %v2227_v40 = vld [vmem:[%s7716_s2] sm:$0xff] }
 0x441   : > { %2050 = vrot.lane.b32.xlu0 %v1860_v47, %s9166_s28  ;;  %v2306_v47 = vld [vmem:[%s7716_s2 + $0x278] sm:$0xff] }
 0x444   : > { %2040 = vrot.lane.b32.xlu1 %v1854_v43, %s9166_s28  ;;  %v2180_v43 = vld [vmem:[%s9100_s12 + $0x88] sm:$0xff] }
 0x445   : > { %2042 = vrot.lane.b32.xlu0 %v1858_v48, %s9166_s28  ;;  %v2321_v48 = vld [vmem:[%s7716_s2 + $0x2f0] sm:$0xff] }
 0x448   : > { %2156 = vperm.xlu1 %7237, %v2148_v49   ;;  %v2305_v49 = vld [vmem:[%s7716_s2 + $0x270] sm:$0xff] }
 0x449   : > { %2151 = vperm.xlu0 %7238, %v2147_v50   ;;  %v2320_v50 = vld [vmem:[%s7716_s2 + $0x2e8] sm:$0xff] }
 0x44c   : > { %1459 = vperm.xlu1 %7237, %v1451_v51   ;;  %v2304_v51 = vld [vmem:[%s7716_s2 + $0x268] sm:$0xff] }
 0x44d   : > { %1454 = vperm.xlu0 %7238, %v1450_v52   ;;  %v2319_v52 = vld [vmem:[%s7716_s2 + $0x2e0] sm:$0xff] }
 0x450   : > { %3285 = vperm.xlu1 %7237, %v3267_v53   ;;  %v2303_v53 = vld [vmem:[%s7716_s2 + $0x260] sm:$0xff] }
 0x451   : > { %3280 = vperm.xlu0 %7238, %v3266_v54   ;;  %v2318_v54 = vld [vmem:[%s7716_s2 + $0x2d8] sm:$0xff] }
 0x454   : > { %3275 = vperm.xlu1 %7237, %v3265_v55   ;;  %v2302_v55 = vld [vmem:[%s7716_s2 + $0x258] sm:$0xff] }
 0x455   : > { %3270 = vperm.xlu0 %7238, %v3264_v56   ;;  %v2317_v56 = vld [vmem:[%s7716_s2 + $0x2d0] sm:$0xff] }
 0x4aa   : > { %v2045_v57 = vpop.permute.xlu1 %2044 }
 0x4ab   : > { %v2047_v58 = vpop.permute.xlu0 %2046 }
 0x4ac   : > { %v2057_v5 = vsel %vm1358_vm6, %v2045_v57, %v2047_v58  ;;  %v2301_v57 = vld [vmem:[%s7716_s2 + $0x250] sm:$0xff]  ;;  %v2316_v58 = vld [vmem:[%s7716_s2 + $0x2c8] sm:$0xff] }
 0x4ae   : > { %v2053_v59 = vpop.permute.xlu1 %2052 }
 0x4af   : > { %v2055_v60 = vpop.permute.xlu0 %2054 }
 0x4b0   : > { %v2059_v61 = vsel %vm1358_vm6, %v2053_v59, %v2055_v60  ;;  %v2300_v59 = vld [vmem:[%s7716_s2 + $0x248] sm:$0xff]  ;;  %v2315_v60 = vld [vmem:[%s7716_s2 + $0x2c0] sm:$0xff] }
 0x4b1   : > { %6882 = vmatprep.subr.mxu1 %v2059_v61 }
 0x4b2   : > { %6883 = vmatpush3.msra.mxu1 %v2059_v61  ;;  %v2049_v63 = vpop.permute.xlu1 %2048  ;;  %v2299_v61 = vld [vmem:[%s7716_s2 + $0x240] sm:$0xff] }
 0x4b3   : > { %v2051_v1 = vpop.permute.xlu0 %2050 }
 0x4b4   : > { %v2058_v3 = vsel %vm1358_vm6, %v2049_v63, %v2051_v1  ;;  %v2314_v63 = vld [vmem:[%s7716_s2 + $0x2b8] sm:$0xff] }
 0x4b5   : > { %6884 = vmatprep.subr.mxu1 %v2058_v3  ;;  %v2298_v1 = vld [vmem:[%s7716_s2 + $0x238] sm:$0xff] }
 0x4b6   : > { %6885 = vmatpush3.msra.mxu1 %v2058_v3  ;;  %v2041_v4 = vpop.permute.xlu1 %2040  ;;  %v2196_v3 = vld [vmem:[%s9100_s12 + $0x108] sm:$0xff] }
 0x4b7   : > { %v2043_v6 = vpop.permute.xlu0 %2042  ;;  %6886 = vmatprep.subr.mxu1 %v2057_v5 }
 0x4b8   : > { %6887 = vmatpush3.msra.mxu1 %v2057_v5  ;;  %v2056_v7 = vsel %vm1358_vm6, %v2041_v4, %v2043_v6  ;;  %v2313_v4 = vld [vmem:[%s7716_s2 + $0x2b0] sm:$0xff]  ;;  %v2195_v5 = vld [vmem:[%s9100_s12 + $0x100] sm:$0xff] }
 0x4b9   : > { %6888 = vmatprep.subr.mxu1 %v2056_v7  ;;  %v2297_v6 = vld [vmem:[%s7716_s2 + $0x230] sm:$0xff] }
 0x4ba   : > { %6889 = vmatpush3.msra.mxu1 %v2056_v7  ;;  %v2312_v7 = vld [vmem:[%s7716_s2 + $0x2a8] sm:$0xff] }
 0x4bb   : > { %6891 = vmatmul.mubr.msk.f32.vlgmr.msra.gmra.mxu1 %vm1168_vm5, %v6044_v8  ;;  %6268 = vmatprep.subr.mxu1 %v2258_v9  ;;  %v2296_v8 = vld [vmem:[%s7716_s2 + $0x228] sm:$0xff] }
 0x4bc   : > { %6269 = vmatpush3.msra.mxu1 %v2242_v10  ;;  %2648 = vmatprep.mubr.f32.mxu1 %v2164_v41  ;;  %v2212_v9 = vld [vmem:[%s9100_s12 + $0x188] sm:$0xff]  ;;  %v2311_v10 = vld [vmem:[%s7716_s2 + $0x2a0] sm:$0xff] }
 0x4bd   : > { %6270 = vmatprep.subr.mxu1 %v2257_v11  ;;  %v2211_v11 = vld [vmem:[%s9100_s12 + $0x180] sm:$0xff]  ;;  %v2380_v41 = vld [vmem:[%s7716_s2 + $0x4c8] sm:$0xff] }
 0x4be   : > { %6271 = vmatpush3.msra.mxu1 %v2241_v12  ;;  %v2295_v12 = vld [vmem:[%s7716_s2 + $0x220] sm:$0xff] }
 0x4bf   : > { %6272 = vmatprep.subr.mxu1 %v2256_v13  ;;  %v2310_v13 = vld [vmem:[%s7716_s2 + $0x298] sm:$0xff] }
 0x4c0   : > { %6273 = vmatpush3.msra.mxu1 %v2240_v14  ;;  %v2294_v14 = vld [vmem:[%s7716_s2 + $0x218] sm:$0xff] }
 0x4c1   : > { %6274 = vmatprep.subr.mxu1 %v2255_v15  ;;  %v2309_v15 = vld [vmem:[%s7716_s2 + $0x290] sm:$0xff] }
 0x4c2   : > { %6275 = vmatpush3.msra.mxu1 %v2239_v16  ;;  %v2293_v16 = vld [vmem:[%s7716_s2 + $0x210] sm:$0xff] }
 0x4c3   : > { %6276 = vmatprep.subr.mxu1 %v2254_v17  ;;  %v2308_v17 = vld [vmem:[%s7716_s2 + $0x288] sm:$0xff] }
 0x4c4   : > { %6277 = vmatpush3.msra.mxu1 %v2238_v18  ;;  %v2292_v18 = vld [vmem:[%s7716_s2 + $0x208] sm:$0xff] }
 0x4c5   : > { %6278 = vmatprep.subr.mxu1 %v2253_v19  ;;  %v2307_v19 = vld [vmem:[%s7716_s2 + $0x280] sm:$0xff] }
 0x4c6   : > { %6279 = vmatpush3.msra.mxu1 %v2237_v20  ;;  %v2291_v20 = vld [vmem:[%s7716_s2 + $0x200] sm:$0xff] }
 0x4c7   : > { %6280 = vmatprep.subr.mxu1 %v2252_v21  ;;  %v2168_v21 = vld [vmem:[%s9100_s12 + $0x28] sm:$0xff] }
 0x4c8   : > { %6281 = vmatpush3.msra.mxu1 %v2236_v22  ;;  %v2167_v22 = vld [vmem:[%s9100_s12 + $0x20] sm:$0xff] }
 0x4c9   : > { %6282 = vmatprep.subr.mxu1 %v2251_v23  ;;  %v2386_v23 = vld [vmem:[%s7716_s2 + $0x4f8] sm:$0xff] }
 0x4ca   : > { %6283 = vmatpush3.msra.mxu1 %v2235_v24  ;;  %v2370_v24 = vld [vmem:[%s7716_s2 + $0x478] sm:$0xff] }
 0x4cb   : > { %6284 = vmatprep.subr.mxu1 %v2250_v25  ;;  %v2385_v25 = vld [vmem:[%s7716_s2 + $0x4f0] sm:$0xff] }
 0x4cc   : > { %6285 = vmatpush3.msra.mxu1 %v2234_v26  ;;  %v2184_v26 = vld [vmem:[%s9100_s12 + $0xa8] sm:$0xff] }
 0x4cd   : > { %6286 = vmatprep.subr.mxu1 %v2249_v27  ;;  %v2369_v27 = vld [vmem:[%s7716_s2 + $0x470] sm:$0xff] }
 0x4ce   : > { %6287 = vmatpush3.msra.mxu1 %v2233_v28  ;;  %v2183_v28 = vld [vmem:[%s9100_s12 + $0xa0] sm:$0xff] }
 0x4cf   : > { %6288 = vmatprep.subr.mxu1 %v2248_v29  ;;  %v2384_v29 = vld [vmem:[%s7716_s2 + $0x4e8] sm:$0xff] }
 0x4d0   : > { %6289 = vmatpush3.msra.mxu1 %v2232_v30  ;;  %v2368_v30 = vld [vmem:[%s7716_s2 + $0x468] sm:$0xff] }
 0x4d1   : > { %6290 = vmatprep.subr.mxu1 %v2247_v31  ;;  %v2383_v31 = vld [vmem:[%s7716_s2 + $0x4e0] sm:$0xff] }
 0x4d2   : > { %6291 = vmatpush3.msra.mxu1 %v2231_v32  ;;  %v2200_v32 = vld [vmem:[%s9100_s12 + $0x128] sm:$0xff] }
 0x4d3   : > { %6292 = vmatprep.subr.mxu1 %v2246_v33  ;;  %v2367_v33 = vld [vmem:[%s7716_s2 + $0x460] sm:$0xff] }
 0x4d4   : > { %6293 = vmatpush3.msra.mxu1 %v2230_v34  ;;  %v2199_v34 = vld [vmem:[%s9100_s12 + $0x120] sm:$0xff] }
 0x4d5   : > { %6294 = vmatprep.subr.mxu1 %v2245_v35  ;;  %v2382_v35 = vld [vmem:[%s7716_s2 + $0x4d8] sm:$0xff] }
 0x4d6   : > { %6295 = vmatpush3.msra.mxu1 %v2229_v36  ;;  %v2366_v36 = vld [vmem:[%s7716_s2 + $0x458] sm:$0xff] }
 0x4d7   : > { %6296 = vmatprep.subr.mxu1 %v2244_v37  ;;  %v2381_v37 = vld [vmem:[%s7716_s2 + $0x4d0] sm:$0xff] }
 0x4d8   : > { %6297 = vmatpush3.msra.mxu1 %v2228_v38  ;;  %v2216_v38 = vld [vmem:[%s9100_s12 + $0x1a8] sm:$0xff] }
 0x4d9   : > { %6298 = vmatprep.subr.mxu1 %v2243_v39  ;;  %v2365_v39 = vld [vmem:[%s7716_s2 + $0x450] sm:$0xff] }
 0x4da   : > { %6299 = vmatpush3.msra.mxu1 %v2227_v40  ;;  %v2215_v40 = vld [vmem:[%s9100_s12 + $0x1a0] sm:$0xff] }
 0x4db   : > { %2649 = vmatmul.mubr.f32.vlgmr.msra.gmra.mxu1 %v2163_v42  ;;  %6356 = vmatprep.subr.mxu1 %v2322_v46  ;;  %v2364_v42 = vld [vmem:[%s7716_s2 + $0x448] sm:$0xff]  ;;  %v2362_v46 = vld [vmem:[%s7716_s2 + $0x438] sm:$0xff] }
 0x4dc   : > { %2653 = vmatprep.mubr.f32.mxu1 %v2180_v43  ;;  %6357 = vmatpush3.msra.mxu1 %v2306_v47  ;;  %v2379_v43 = vld [vmem:[%s7716_s2 + $0x4c0] sm:$0xff]  ;;  %v2377_v47 = vld [vmem:[%s7716_s2 + $0x4b0] sm:$0xff] }
 0x4dd   : > { %6358 = vmatprep.subr.mxu1 %v2321_v48  ;;  %v2361_v48 = vld [vmem:[%s7716_s2 + $0x430] sm:$0xff] }
 0x4de   : > { %6359 = vmatpush3.msra.mxu1 %v2305_v49  ;;  %v2376_v49 = vld [vmem:[%s7716_s2 + $0x4a8] sm:$0xff] }
 0x4df   : > { %2654 = vmatmul.mubr.f32.gmra.mxu1 %v2179_v44  ;;  %6360 = vmatprep.subr.mxu1 %v2320_v50  ;;  %v2363_v44 = vld [vmem:[%s7716_s2 + $0x440] sm:$0xff]  ;;  %v2360_v50 = vld [vmem:[%s7716_s2 + $0x428] sm:$0xff] }
 0x4e0   : > { %6361 = vmatpush3.msra.mxu1 %v2304_v51  ;;  %2658 = vmatprep.mubr.f32.mxu1 %v2196_v3  ;;  %v2375_v51 = vld [vmem:[%s7716_s2 + $0x4a0] sm:$0xff]  ;;  %v2434_v3 = vld [vmem:[%s7716_s2 + $0x678] sm:$0xff] }
 0x4e1   : > { %6362 = vmatprep.subr.mxu1 %v2319_v52  ;;  %v2359_v52 = vld [vmem:[%s7716_s2 + $0x420] sm:$0xff] }
 0x4e2   : > { %6363 = vmatpush3.msra.mxu1 %v2303_v53  ;;  %v2374_v53 = vld [vmem:[%s7716_s2 + $0x498] sm:$0xff] }
 0x4e3   : > { %6364 = vmatprep.subr.mxu1 %v2318_v54  ;;  %2659 = vmatmul.mubr.f32.gmra.mxu1 %v2195_v5  ;;  %v2358_v54 = vld [vmem:[%s7716_s2 + $0x418] sm:$0xff]  ;;  %v2188_v5 = vld [vmem:[%s9100_s12 + $0xc8] sm:$0xff] }
 0x4e4   : > { %6365 = vmatpush3.msra.mxu1 %v2302_v55  ;;  %2663 = vmatprep.mubr.f32.mxu1 %v2212_v9  ;;  %v2373_v55 = vld [vmem:[%s7716_s2 + $0x490] sm:$0xff]  ;;  %v2432_v9 = vld [vmem:[%s7716_s2 + $0x668] sm:$0xff] }
 0x4e5   : > { %6366 = vmatprep.subr.mxu1 %v2317_v56  ;;  %v2357_v56 = vld [vmem:[%s7716_s2 + $0x410] sm:$0xff] }
 0x4e6   : > { %6367 = vmatpush3.msra.mxu1 %v2301_v57  ;;  %v2372_v57 = vld [vmem:[%s7716_s2 + $0x488] sm:$0xff] }
 0x4e7   : > { %6368 = vmatprep.subr.mxu1 %v2316_v58  ;;  %2664 = vmatmul.mubr.f32.gmra.mxu1 %v2211_v11  ;;  %v2356_v58 = vld [vmem:[%s7716_s2 + $0x408] sm:$0xff] }
 0x4e8   : > { %6369 = vmatpush3.msra.mxu1 %v2300_v59  ;;  %2818 = vmatprep.mubr.f32.mxu1 %v2168_v21  ;;  %v2371_v59 = vld [vmem:[%s7716_s2 + $0x480] sm:$0xff]  ;;  %v2204_v11 = vld [vmem:[%s9100_s12 + $0x148] sm:$0xff] }
 0x4e9   : > { %6370 = vmatprep.subr.mxu1 %v2315_v60  ;;  %v2355_v60 = vld [vmem:[%s7716_s2 + $0x400] sm:$0xff]  ;;  %v2428_v21 = vld [vmem:[%s7716_s2 + $0x648] sm:$0xff] }
 0x4ea   : > { %6371 = vmatpush3.msra.mxu1 %v2299_v61  ;;  %v2172_v61 = vld [vmem:[%s9100_s12 + $0x48] sm:$0xff] }
 0x4eb   : > { %6372 = vmatprep.subr.mxu1 %v2314_v63  ;;  %v2171_v63 = vld [vmem:[%s9100_s12 + $0x40] sm:$0xff] }
 0x4ec   : > { %6373 = vmatpush3.msra.mxu1 %v2298_v1  ;;  %v2450_v1 = vld [vmem:[%s7716_s2 + $0x6f8] sm:$0xff] }
 0x4ed   : > { %6374 = vmatprep.subr.mxu1 %v2313_v4  ;;  %v2449_v4 = vld [vmem:[%s7716_s2 + $0x6f0] sm:$0xff] }
 0x4ee   : > { %6375 = vmatpush3.msra.mxu1 %v2297_v6  ;;  %v2433_v6 = vld [vmem:[%s7716_s2 + $0x670] sm:$0xff] }
 0x4ef   : > { %6376 = vmatprep.subr.mxu1 %v2312_v7  ;;  %v2187_v7 = vld [vmem:[%s9100_s12 + $0xc0] sm:$0xff] }
 0x4f0   : > { %6377 = vmatpush3.msra.mxu1 %v2296_v8  ;;  %v2448_v8 = vld [vmem:[%s7716_s2 + $0x6e8] sm:$0xff] }
 0x4f1   : > { %6378 = vmatprep.subr.mxu1 %v2311_v10  ;;  %v2447_v10 = vld [vmem:[%s7716_s2 + $0x6e0] sm:$0xff] }
 0x4f2   : > { %6379 = vmatpush3.msra.mxu1 %v2295_v12  ;;  %v2431_v12 = vld [vmem:[%s7716_s2 + $0x660] sm:$0xff] }
 0x4f3   : > { %6380 = vmatprep.subr.mxu1 %v2310_v13  ;;  %v2203_v13 = vld [vmem:[%s9100_s12 + $0x140] sm:$0xff] }
 0x4f4   : > { %6381 = vmatpush3.msra.mxu1 %v2294_v14  ;;  %v2446_v14 = vld [vmem:[%s7716_s2 + $0x6d8] sm:$0xff] }
 0x4f5   : > { %6382 = vmatprep.subr.mxu1 %v2309_v15  ;;  %v2430_v15 = vld [vmem:[%s7716_s2 + $0x658] sm:$0xff] }
 0x4f6   : > { %6383 = vmatpush3.msra.mxu1 %v2293_v16  ;;  %v2445_v16 = vld [vmem:[%s7716_s2 + $0x6d0] sm:$0xff] }
 0x4f7   : > { %6384 = vmatprep.subr.mxu1 %v2308_v17  ;;  %v2220_v17 = vld [vmem:[%s9100_s12 + $0x1c8] sm:$0xff] }
 0x4f8   : > { %6385 = vmatpush3.msra.mxu1 %v2292_v18  ;;  %v2429_v18 = vld [vmem:[%s7716_s2 + $0x650] sm:$0xff] }
 0x4f9   : > { %6386 = vmatprep.subr.mxu1 %v2307_v19  ;;  %v2219_v19 = vld [vmem:[%s9100_s12 + $0x1c0] sm:$0xff] }
 0x4fa   : > { %6387 = vmatpush3.msra.mxu1 %v2291_v20  ;;  %v2444_v20 = vld [vmem:[%s7716_s2 + $0x6c8] sm:$0xff] }
 0x4fb   : > { %2819 = vmatmul.mubr.f32.vlgmr.msra.gmra.mxu1 %v2167_v22  ;;  %6444 = vmatprep.subr.mxu1 %v2386_v23  ;;  %v2443_v22 = vld [vmem:[%s7716_s2 + $0x6c0] sm:$0xff] }
 0x4fc   : > { %6445 = vmatpush3.msra.mxu1 %v2370_v24  ;;  %2823 = vmatprep.mubr.f32.mxu1 %v2184_v26  ;;  %v2427_v23 = vld [vmem:[%s7716_s2 + $0x640] sm:$0xff]  ;;  %v2442_v24 = vld [vmem:[%s7716_s2 + $0x6b8] sm:$0xff]  ;;  %v2441_v26 = vld [vmem:[%s7716_s2 + $0x6b0] sm:$0xff] }
 0x4fd   : > { %6446 = vmatprep.subr.mxu1 %v2385_v25  ;;  %v2426_v25 = vld [vmem:[%s7716_s2 + $0x638] sm:$0xff] }
 0x4fe   : > { %6447 = vmatpush3.msra.mxu1 %v2369_v27  ;;  %v2425_v27 = vld [vmem:[%s7716_s2 + $0x630] sm:$0xff] }
 0x4ff   : > { %2824 = vmatmul.mubr.f32.gmra.mxu1 %v2183_v28  ;;  %6448 = vmatprep.subr.mxu1 %v2384_v29  ;;  %v2440_v28 = vld [vmem:[%s7716_s2 + $0x6a8] sm:$0xff] }
 0x500   : > { %6449 = vmatpush3.msra.mxu1 %v2368_v30  ;;  %2828 = vmatprep.mubr.f32.mxu1 %v2200_v32  ;;  %v2424_v29 = vld [vmem:[%s7716_s2 + $0x628] sm:$0xff]  ;;  %v2439_v30 = vld [vmem:[%s7716_s2 + $0x6a0] sm:$0xff]  ;;  %v2438_v32 = vld [vmem:[%s7716_s2 + $0x698] sm:$0xff] }
 0x501   : > { %6450 = vmatprep.subr.mxu1 %v2383_v31  ;;  %v2423_v31 = vld [vmem:[%s7716_s2 + $0x620] sm:$0xff] }
 0x502   : > { %6451 = vmatpush3.msra.mxu1 %v2367_v33  ;;  %v2422_v33 = vld [vmem:[%s7716_s2 + $0x618] sm:$0xff] }
 0x503   : > { %2829 = vmatmul.mubr.f32.gmra.mxu1 %v2199_v34  ;;  %6452 = vmatprep.subr.mxu1 %v2382_v35  ;;  %v2437_v34 = vld [vmem:[%s7716_s2 + $0x690] sm:$0xff] }
 0x504   : > { %6453 = vmatpush3.msra.mxu1 %v2366_v36  ;;  %2833 = vmatprep.mubr.f32.mxu1 %v2216_v38  ;;  %v2421_v35 = vld [vmem:[%s7716_s2 + $0x610] sm:$0xff]  ;;  %v2436_v36 = vld [vmem:[%s7716_s2 + $0x688] sm:$0xff]  ;;  %v2435_v38 = vld [vmem:[%s7716_s2 + $0x680] sm:$0xff] }
 0x505   : > { %6454 = vmatprep.subr.mxu1 %v2381_v37  ;;  %v2420_v37 = vld [vmem:[%s7716_s2 + $0x608] sm:$0xff] }
 0x506   : > { %6455 = vmatpush3.msra.mxu1 %v2365_v39  ;;  %v2419_v39 = vld [vmem:[%s7716_s2 + $0x600] sm:$0xff] }
 0x507   : > { %2834 = vmatmul.mubr.f32.gmra.mxu1 %v2215_v40  ;;  %6456 = vmatprep.subr.mxu1 %v2380_v41  ;;  %v2176_v40 = vld [vmem:[%s9100_s12 + $0x68] sm:$0xff]  ;;  %v2175_v41 = vld [vmem:[%s9100_s12 + $0x60] sm:$0xff] }
 0x508   : > { %6457 = vmatpush3.msra.mxu1 %v2364_v42  ;;  %2988 = vmatprep.mubr.f32.mxu1 %v2172_v61  ;;  %v2192_v42 = vld [vmem:[%s9100_s12 + $0xe8] sm:$0xff] }
 0x509   : > { %6458 = vmatprep.subr.mxu1 %v2379_v43  ;;  %v2191_v43 = vld [vmem:[%s9100_s12 + $0xe0] sm:$0xff] }
 0x50a   : > { %6459 = vmatpush3.msra.mxu1 %v2363_v44  ;;  %v2208_v44 = vld [vmem:[%s9100_s12 + $0x168] sm:$0xff] }
 0x50b   : > { %6460 = vmatprep.subr.mxu1 %v2378_v45  ;;  %v2207_v45 = vld [vmem:[%s9100_s12 + $0x160] sm:$0xff] }
 0x50c   : > { %6461 = vmatpush3.msra.mxu1 %v2362_v46  ;;  %v6870_v46 = vpop.f32.mrf.mxu1 }
 0x50d   : > { %6462 = vmatprep.subr.mxu1 %v2377_v47  ;;  %v6881_v47 = vpop.f32.mrf.mxu0 }
 0x50e   : > { %6463 = vmatpush3.msra.mxu1 %v2361_v48  ;;  %v2224_v48 = vld [vmem:[%s9100_s12 + $0x1e8] sm:$0xff] }
 0x50f   : > { %6464 = vmatprep.subr.mxu1 %v2376_v49  ;;  %v2157_v49 = vpop.permute.xlu1 %2156 }
 0x510   : > { %6465 = vmatpush3.msra.mxu1 %v2360_v50  ;;  %v2223_v50 = vld [vmem:[%s9100_s12 + $0x1e0] sm:$0xff] }
 0x511   : > { %6466 = vmatprep.subr.mxu1 %v2375_v51  ;;  %v2152_v51 = vpop.permute.xlu0 %2151 }
 0x512   : > { %6467 = vmatpush3.msra.mxu1 %v2359_v52  ;;  %v1939_v52 = vpop.f32.mrf.mxu1 }
 0x513   : > { %6468 = vmatprep.subr.mxu1 %v2374_v53  ;;  %v2020_v53 = vpop.f32.mrf.mxu0 }
 0x514   : > { %6469 = vmatpush3.msra.mxu1 %v2358_v54  ;;  %v2026_v54 = vadd.f32 %v6881_v47, %v6870_v46  ;;  %v2182_v46 = vld [vmem:[%s9100_s12 + $0x98] sm:$0xff]  ;;  %v2353_v47 = vld [vmem:[%s7716_s2 + $0x3f0] sm:$0xff] }
 0x515   : > { %6470 = vmatprep.subr.mxu1 %v2373_v55 }
 0x516   : > { %6471 = vmatpush3.msra.mxu1 %v2357_v56  ;;  %v2021_v56 = vadd.f32 %v2020_v53, %v1939_v52  ;;  %v2198_v52 = vld [vmem:[%s9100_s12 + $0x118] sm:$0xff]  ;;  %v2351_v53 = vld [vmem:[%s7716_s2 + $0x3e0] sm:$0xff] }
 0x517   : > { %6472 = vmatprep.subr.mxu1 %v2372_v57 }
 0x518   : > { %6473 = vmatpush3.msra.mxu1 %v2356_v58  ;;  %v1460_v58 = vpop.permute.xlu1 %1459 }
 0x519   : > { %6474 = vmatprep.subr.mxu1 %v2371_v59 }
 0x51a   : > { %6475 = vmatpush3.msra.mxu1 %v2355_v60 }
 0x51b   : > { %2989 = vmatmul.mubr.f32.vlgmr.msra.gmra.mxu1 %v2171_v63  ;;  %6532 = vmatprep.subr.mxu1 %v2450_v1  ;;  %v1455_v63 = vpop.permute.xlu0 %1454  ;;  %v1463_v1 = vadd.f32 %v1460_v58, %v7642_v62  ;;  %v2484_v62 = vld [vmem:[%s9101_s13 + $0x8] sm:$0xff]  ;;  %v2214_v58 = vld [vmem:[%s9100_s12 + $0x198] sm:$0xff] }
 0x51c   : > { %6533 = vmatpush3.msra.mxu1 %v2434_v3  ;;  %2993 = vmatprep.mubr.f32.mxu1 %v2188_v5  ;;  %v1462_v5 = vadd.f32 %v1455_v63, %v7644_v2  ;;  %v2274_v2 = vld [vmem:[%s7716_s2 + $0x178] sm:$0xff]  ;;  %v2348_v63 = vld [vmem:[%s7716_s2 + $0x3c8] sm:$0xff] }
 0x51d   : > { %6534 = vmatprep.subr.mxu1 %v2449_v4 }
 0x51e   : > { %6535 = vmatpush3.msra.mxu1 %v2433_v6 }
 0x51f   : > { %2994 = vmatmul.mubr.f32.gmra.mxu1 %v2187_v7  ;;  %6536 = vmatprep.subr.mxu1 %v2448_v8  ;;  %v1465_v7 = vmax.f32 %v1463_v1, 0.0  ;;  %v1464_v8 = vmax.f32 %v1462_v5, 0.0  ;;  %v2332_v1 = vld [vmem:[%s7716_s2 + $0x348] sm:$0xff]  ;;  %v2331_v5 = vld [vmem:[%s7716_s2 + $0x340] sm:$0xff] }
 0x520   : > { %6537 = vmatpush3.msra.mxu1 %v2432_v9  ;;  %2998 = vmatprep.mubr.f32.mxu1 %v2204_v11  ;;  %v2290_v9 = vld [vmem:[%s7716_s2 + $0x1f8] sm:$0xff]  ;;  %v2289_v11 = vld [vmem:[%s7716_s2 + $0x1f0] sm:$0xff] }
 0x521   : > { %6538 = vmatprep.subr.mxu1 %v2447_v10  ;;  %v2485_v10 = vld [vmem:[%s9101_s13 + $0x10] sm:$0xff] }
 0x522   : > { %6539 = vmatpush3.msra.mxu1 %v2431_v12  ;;  %v2273_v12 = vld [vmem:[%s7716_s2 + $0x170] sm:$0xff] }
 0x523   : > { %2999 = vmatmul.mubr.f32.gmra.mxu1 %v2203_v13  ;;  %6540 = vmatprep.subr.mxu1 %v2446_v14  ;;  %v2288_v13 = vld [vmem:[%s7716_s2 + $0x1e8] sm:$0xff]  ;;  %v2486_v14 = vld [vmem:[%s9101_s13 + $0x18] sm:$0xff] }
 0x524   : > { %6541 = vmatpush3.msra.mxu1 %v2430_v15  ;;  %3003 = vmatprep.mubr.f32.mxu1 %v2220_v17  ;;  %v2272_v15 = vld [vmem:[%s7716_s2 + $0x168] sm:$0xff]  ;;  %v2287_v17 = vld [vmem:[%s7716_s2 + $0x1e0] sm:$0xff] }
 0x525   : > { %6542 = vmatprep.subr.mxu1 %v2445_v16  ;;  %v2166_v16 = vld [vmem:[%s9100_s12 + $0x18] sm:$0xff] }
 0x526   : > { %6543 = vmatpush3.msra.mxu1 %v2429_v18  ;;  %v2271_v18 = vld [vmem:[%s7716_s2 + $0x160] sm:$0xff] }
 0x527   : > { %3004 = vmatmul.mubr.f32.gmra.mxu1 %v2219_v19  ;;  %6544 = vmatprep.subr.mxu1 %v2444_v20  ;;  %v2286_v19 = vld [vmem:[%s7716_s2 + $0x1d8] sm:$0xff] }
 0x528   : > { %6545 = vmatpush3.msra.mxu1 %v2428_v21  ;;  %3158 = vmatprep.mubr.f32.mxu1 %v2176_v40  ;;  %v2270_v20 = vld [vmem:[%s7716_s2 + $0x158] sm:$0xff]  ;;  %v2285_v21 = vld [vmem:[%s7716_s2 + $0x1d0] sm:$0xff]  ;;  %v2260_v40 = vld [vmem:[%s7716_s2 + $0x108] sm:$0xff] }
 0x529   : > { %6546 = vmatprep.subr.mxu1 %v2443_v22  ;;  %v2269_v22 = vld [vmem:[%s7716_s2 + $0x150] sm:$0xff] }
 0x52a   : > { %6547 = vmatpush3.msra.mxu1 %v2427_v23  ;;  %v2284_v23 = vld [vmem:[%s7716_s2 + $0x1c8] sm:$0xff] }
 0x52b   : > { %6548 = vmatprep.subr.mxu1 %v2442_v24  ;;  %v2268_v24 = vld [vmem:[%s7716_s2 + $0x148] sm:$0xff] }
 0x52c   : > { %6549 = vmatpush3.msra.mxu1 %v2426_v25  ;;  %v2283_v25 = vld [vmem:[%s7716_s2 + $0x1c0] sm:$0xff] }
 0x52d   : > { %6550 = vmatprep.subr.mxu1 %v2441_v26  ;;  %v2267_v26 = vld [vmem:[%s7716_s2 + $0x140] sm:$0xff] }
 0x52e   : > { %6551 = vmatpush3.msra.mxu1 %v2425_v27  ;;  %v2282_v27 = vld [vmem:[%s7716_s2 + $0x1b8] sm:$0xff] }
 0x52f   : > { %6552 = vmatprep.subr.mxu1 %v2440_v28  ;;  %v2266_v28 = vld [vmem:[%s7716_s2 + $0x138] sm:$0xff] }
 0x530   : > { %6553 = vmatpush3.msra.mxu1 %v2424_v29  ;;  %v2281_v29 = vld [vmem:[%s7716_s2 + $0x1b0] sm:$0xff] }
 0x531   : > { %6554 = vmatprep.subr.mxu1 %v2439_v30  ;;  %v2265_v30 = vld [vmem:[%s7716_s2 + $0x130] sm:$0xff] }
 0x532   : > { %6555 = vmatpush3.msra.mxu1 %v2423_v31  ;;  %v2280_v31 = vld [vmem:[%s7716_s2 + $0x1a8] sm:$0xff] }
 0x533   : > { %6556 = vmatprep.subr.mxu1 %v2438_v32  ;;  %v2264_v32 = vld [vmem:[%s7716_s2 + $0x128] sm:$0xff] }
 0x534   : > { %6557 = vmatpush3.msra.mxu1 %v2422_v33  ;;  %v2279_v33 = vld [vmem:[%s7716_s2 + $0x1a0] sm:$0xff] }
 0x535   : > { %6558 = vmatprep.subr.mxu1 %v2437_v34  ;;  %v2263_v34 = vld [vmem:[%s7716_s2 + $0x120] sm:$0xff] }
 0x536   : > { %6559 = vmatpush3.msra.mxu1 %v2421_v35  ;;  %v2278_v35 = vld [vmem:[%s7716_s2 + $0x198] sm:$0xff] }
 0x537   : > { %6560 = vmatprep.subr.mxu1 %v2436_v36  ;;  %v2262_v36 = vld [vmem:[%s7716_s2 + $0x118] sm:$0xff] }
 0x538   : > { %6561 = vmatpush3.msra.mxu1 %v2420_v37  ;;  %v2277_v37 = vld [vmem:[%s7716_s2 + $0x190] sm:$0xff] }
 0x539   : > { %6562 = vmatprep.subr.mxu1 %v2435_v38  ;;  %v2261_v38 = vld [vmem:[%s7716_s2 + $0x110] sm:$0xff] }
 0x53a   : > { %6563 = vmatpush3.msra.mxu1 %v2419_v39  ;;  %v2276_v39 = vld [vmem:[%s7716_s2 + $0x188] sm:$0xff] }
 0x53b   : > { %3159 = vmatmul.mubr.f32.vlgmr.msra.gmra.mxu1 %v2175_v41  ;;  %v2275_v41 = vld [vmem:[%s7716_s2 + $0x180] sm:$0xff] }
 0x53c   : > { %3163 = vmatprep.mubr.f32.mxu1 %v2192_v42  ;;  %v2259_v42 = vld [vmem:[%s7716_s2 + $0x100] sm:$0xff] }
 0x53f   : > { %3164 = vmatmul.mubr.f32.gmra.mxu1 %v2191_v43  ;;  %v2165_v43 = vld [vmem:[%s9100_s12 + $0x10] sm:$0xff] }
 0x540   : > { %3168 = vmatprep.mubr.f32.mxu1 %v2208_v44  ;;  %v2354_v44 = vld [vmem:[%s7716_s2 + $0x3f8] sm:$0xff] }
 0x543   : > { %3169 = vmatmul.mubr.f32.gmra.mxu1 %v2207_v45  ;;  %v2338_v45 = vld [vmem:[%s7716_s2 + $0x378] sm:$0xff] }
 0x544   : > { %3173 = vmatprep.mubr.f32.mxu1 %v2224_v48  ;;  %v2337_v48 = vld [vmem:[%s7716_s2 + $0x370] sm:$0xff] }
 0x547   : > { %3174 = vmatmul.mubr.f32.gmra.mxu1 %v2223_v50  ;;  %v2352_v50 = vld [vmem:[%s7716_s2 + $0x3e8] sm:$0xff] }
 0x57b   : > { %v6892_v55 = vpop.f32.mrf.mxu1 }
 0x57c   : > { %v2146_v57 = vadd.f32 %v6892_v55, %v2026_v54  ;;  %v2335_v54 = vld [vmem:[%s7716_s2 + $0x360] sm:$0xff]  ;;  %v2197_v55 = vld [vmem:[%s9100_s12 + $0x110] sm:$0xff] }
 0x57d   : > { %v2136_v59 = vpop.f32.mrf.mxu1 }
 0x57e   : > { %v2160_v60 = vadd.f32 %v2157_v49, %v2146_v57  ;;  %v2145_v61 = vadd.f32 %v2136_v59, %v2021_v56  ;;  %v2181_v49 = vld [vmem:[%s9100_s12 + $0x90] sm:$0xff]  ;;  %v2350_v56 = vld [vmem:[%s7716_s2 + $0x3d8] sm:$0xff] }
 0x57f   : > { %v2334_v57 = vld [vmem:[%s7716_s2 + $0x358] sm:$0xff]  ;;  %v2349_v59 = vld [vmem:[%s7716_s2 + $0x3d0] sm:$0xff] }
 0x580   : > { %v2162_v3 = vmax.f32 %v2160_v60, 0.0  ;;  %v2159_v4 = vadd.f32 %v2152_v51, %v2145_v61  ;;  %v2336_v51 = vld [vmem:[%s7716_s2 + $0x368] sm:$0xff]  ;;  %v2333_v60 = vld [vmem:[%s7716_s2 + $0x350] sm:$0xff] }
 0x581   : > { %v2213_v61 = vld [vmem:[%s9100_s12 + $0x190] sm:$0xff] }
 0x582   : > { %v2161_v6 = vmax.f32 %v2159_v4, 0.0  ;;  %6893 = vmatprep.subr.mxu0 %v2162_v3  ;;  %v2347_v4 = vld [vmem:[%s7716_s2 + $0x3c0] sm:$0xff] }
 0x583   : > { %6894 = vmatpush3.msra.mxu0 %v2162_v3  ;;  %v2170_v3 = vld [vmem:[%s9100_s12 + $0x38] sm:$0xff] }
 0x584   : > { %6895 = vmatprep.subr.mxu0 %v2161_v6 }
 0x585   : > { %6896 = vmatpush3.msra.mxu0 %v2161_v6  ;;  %v2346_v6 = vld [vmem:[%s7716_s2 + $0x3b8] sm:$0xff] }
 0x586   : > { %6897 = vmatprep.subr.mxu0 %v1465_v7 }
 0x587   : > { %6898 = vmatpush3.msra.mxu0 %v1465_v7  ;;  %v2330_v7 = vld [vmem:[%s7716_s2 + $0x338] sm:$0xff] }
 0x588   : > { %6899 = vmatprep.subr.mxu0 %v1464_v8 }
 0x589   : > { %6900 = vmatpush3.msra.mxu0 %v1464_v8  ;;  %v2345_v8 = vld [vmem:[%s7716_s2 + $0x3b0] sm:$0xff] }
 0x58a   : > { %6902 = vmatmul.mubr.msk.f32.vlgmr.msra.gmra.mxu0 %vm1168_vm5, %v2484_v62  ;;  %6312 = vmatprep.subr.mxu0 %v2290_v9  ;;  %v2329_v62 = vld [vmem:[%s7716_s2 + $0x330] sm:$0xff]  ;;  %v2344_v9 = vld [vmem:[%s7716_s2 + $0x3a8] sm:$0xff] }
 0x58b   : > { %6313 = vmatpush3.msra.mxu0 %v2274_v2  ;;  %6904 = vmatprep.mubr.msk.f32.mxu0 %vm1168_vm5, %v2485_v10  ;;  %v2328_v2 = vld [vmem:[%s7716_s2 + $0x328] sm:$0xff]  ;;  %v2343_v10 = vld [vmem:[%s7716_s2 + $0x3a0] sm:$0xff] }
 0x58c   : > { %6314 = vmatprep.subr.mxu0 %v2289_v11  ;;  %v2327_v11 = vld [vmem:[%s7716_s2 + $0x320] sm:$0xff] }
 0x58d   : > { %6315 = vmatpush3.msra.mxu0 %v2273_v12  ;;  %v2342_v12 = vld [vmem:[%s7716_s2 + $0x398] sm:$0xff] }
 0x58e   : > { %6316 = vmatprep.subr.mxu0 %v2288_v13  ;;  %6905 = vmatmul.mubr.msk.f32.gmra.mxu0 %vm1168_vm5, %v2486_v14  ;;  %v2326_v13 = vld [vmem:[%s7716_s2 + $0x318] sm:$0xff]  ;;  %v2341_v14 = vld [vmem:[%s7716_s2 + $0x390] sm:$0xff] }
 0x58f   : > { %6317 = vmatpush3.msra.mxu0 %v2272_v15  ;;  %2733 = vmatprep.mubr.f32.mxu0 %v2166_v16  ;;  %v2325_v15 = vld [vmem:[%s7716_s2 + $0x310] sm:$0xff]  ;;  %v2340_v16 = vld [vmem:[%s7716_s2 + $0x388] sm:$0xff] }
 0x590   : > { %6318 = vmatprep.subr.mxu0 %v2287_v17  ;;  %v2324_v17 = vld [vmem:[%s7716_s2 + $0x308] sm:$0xff] }
 0x591   : > { %6319 = vmatpush3.msra.mxu0 %v2271_v18  ;;  %v2339_v18 = vld [vmem:[%s7716_s2 + $0x380] sm:$0xff] }
 0x592   : > { %6320 = vmatprep.subr.mxu0 %v2286_v19  ;;  %v2323_v19 = vld [vmem:[%s7716_s2 + $0x300] sm:$0xff] }
 0x593   : > { %6321 = vmatpush3.msra.mxu0 %v2270_v20  ;;  %v2169_v20 = vld [vmem:[%s9100_s12 + $0x30] sm:$0xff] }
 0x594   : > { %6322 = vmatprep.subr.mxu0 %v2285_v21  ;;  %v2418_v21 = vld [vmem:[%s7716_s2 + $0x5f8] sm:$0xff] }
 0x595   : > { %6323 = vmatpush3.msra.mxu0 %v2269_v22  ;;  %v2402_v22 = vld [vmem:[%s7716_s2 + $0x578] sm:$0xff] }
 0x596   : > { %6324 = vmatprep.subr.mxu0 %v2284_v23  ;;  %v2186_v23 = vld [vmem:[%s9100_s12 + $0xb8] sm:$0xff] }
 0x597   : > { %6325 = vmatpush3.msra.mxu0 %v2268_v24  ;;  %v2417_v24 = vld [vmem:[%s7716_s2 + $0x5f0] sm:$0xff] }
 0x598   : > { %6326 = vmatprep.subr.mxu0 %v2283_v25  ;;  %v2401_v25 = vld [vmem:[%s7716_s2 + $0x570] sm:$0xff] }
 0x599   : > { %6327 = vmatpush3.msra.mxu0 %v2267_v26  ;;  %v2185_v26 = vld [vmem:[%s9100_s12 + $0xb0] sm:$0xff] }
 0x59a   : > { %6328 = vmatprep.subr.mxu0 %v2282_v27  ;;  %v2416_v27 = vld [vmem:[%s7716_s2 + $0x5e8] sm:$0xff] }
 0x59b   : > { %6329 = vmatpush3.msra.mxu0 %v2266_v28  ;;  %v2400_v28 = vld [vmem:[%s7716_s2 + $0x568] sm:$0xff] }
 0x59c   : > { %6330 = vmatprep.subr.mxu0 %v2281_v29  ;;  %v2202_v29 = vld [vmem:[%s9100_s12 + $0x138] sm:$0xff] }
 0x59d   : > { %6331 = vmatpush3.msra.mxu0 %v2265_v30  ;;  %v2415_v30 = vld [vmem:[%s7716_s2 + $0x5e0] sm:$0xff] }
 0x59e   : > { %6332 = vmatprep.subr.mxu0 %v2280_v31  ;;  %v2399_v31 = vld [vmem:[%s7716_s2 + $0x560] sm:$0xff] }
 0x59f   : > { %6333 = vmatpush3.msra.mxu0 %v2264_v32  ;;  %v2201_v32 = vld [vmem:[%s9100_s12 + $0x130] sm:$0xff] }
 0x5a0   : > { %6334 = vmatprep.subr.mxu0 %v2279_v33  ;;  %v2414_v33 = vld [vmem:[%s7716_s2 + $0x5d8] sm:$0xff] }
 0x5a1   : > { %6335 = vmatpush3.msra.mxu0 %v2263_v34  ;;  %v2398_v34 = vld [vmem:[%s7716_s2 + $0x558] sm:$0xff] }
 0x5a2   : > { %6336 = vmatprep.subr.mxu0 %v2278_v35  ;;  %v2218_v35 = vld [vmem:[%s9100_s12 + $0x1b8] sm:$0xff] }
 0x5a3   : > { %6337 = vmatpush3.msra.mxu0 %v2262_v36  ;;  %v2413_v36 = vld [vmem:[%s7716_s2 + $0x5d0] sm:$0xff] }
 0x5a4   : > { %6338 = vmatprep.subr.mxu0 %v2277_v37  ;;  %v2397_v37 = vld [vmem:[%s7716_s2 + $0x550] sm:$0xff] }
 0x5a5   : > { %6339 = vmatpush3.msra.mxu0 %v2261_v38  ;;  %v2217_v38 = vld [vmem:[%s9100_s12 + $0x1b0] sm:$0xff] }
 0x5a6   : > { %6340 = vmatprep.subr.mxu0 %v2276_v39  ;;  %v2412_v39 = vld [vmem:[%s7716_s2 + $0x5c8] sm:$0xff] }
 0x5a7   : > { %6341 = vmatpush3.msra.mxu0 %v2260_v40  ;;  %v2396_v40 = vld [vmem:[%s7716_s2 + $0x548] sm:$0xff] }
 0x5a8   : > { %6342 = vmatprep.subr.mxu0 %v2275_v41  ;;  %v2174_v41 = vld [vmem:[%s9100_s12 + $0x58] sm:$0xff] }
 0x5a9   : > { %6343 = vmatpush3.msra.mxu0 %v2259_v42  ;;  %v2411_v42 = vld [vmem:[%s7716_s2 + $0x5c0] sm:$0xff] }
 0x5aa   : > { %2734 = vmatmul.mubr.f32.vlgmr.msra.gmra.mxu0 %v2165_v43  ;;  %6400 = vmatprep.subr.mxu0 %v2354_v44  ;;  %v2395_v43 = vld [vmem:[%s7716_s2 + $0x540] sm:$0xff]  ;;  %v2410_v44 = vld [vmem:[%s7716_s2 + $0x5b8] sm:$0xff] }
 0x5ab   : > { %6401 = vmatpush3.msra.mxu0 %v2338_v45  ;;  %2738 = vmatprep.mubr.f32.mxu0 %v2182_v46  ;;  %v2394_v45 = vld [vmem:[%s7716_s2 + $0x538] sm:$0xff]  ;;  %v2409_v46 = vld [vmem:[%s7716_s2 + $0x5b0] sm:$0xff] }
 0x5ac   : > { %6402 = vmatprep.subr.mxu0 %v2353_v47  ;;  %v2393_v47 = vld [vmem:[%s7716_s2 + $0x530] sm:$0xff] }
 0x5ad   : > { %6403 = vmatpush3.msra.mxu0 %v2337_v48  ;;  %v2408_v48 = vld [vmem:[%s7716_s2 + $0x5a8] sm:$0xff] }
 0x5ae   : > { %2739 = vmatmul.mubr.f32.gmra.mxu0 %v2181_v49  ;;  %6404 = vmatprep.subr.mxu0 %v2352_v50  ;;  %v2392_v49 = vld [vmem:[%s7716_s2 + $0x528] sm:$0xff]  ;;  %v2407_v50 = vld [vmem:[%s7716_s2 + $0x5a0] sm:$0xff] }
 0x5af   : > { %6405 = vmatpush3.msra.mxu0 %v2336_v51  ;;  %2743 = vmatprep.mubr.f32.mxu0 %v2198_v52  ;;  %v2391_v51 = vld [vmem:[%s7716_s2 + $0x520] sm:$0xff]  ;;  %v2406_v52 = vld [vmem:[%s7716_s2 + $0x598] sm:$0xff] }
 0x5b0   : > { %6406 = vmatprep.subr.mxu0 %v2351_v53  ;;  %v2390_v53 = vld [vmem:[%s7716_s2 + $0x518] sm:$0xff] }
 0x5b1   : > { %6407 = vmatpush3.msra.mxu0 %v2335_v54  ;;  %v2405_v54 = vld [vmem:[%s7716_s2 + $0x590] sm:$0xff] }
 0x5b2   : > { %2744 = vmatmul.mubr.f32.gmra.mxu0 %v2197_v55  ;;  %6408 = vmatprep.subr.mxu0 %v2350_v56  ;;  %v2389_v55 = vld [vmem:[%s7716_s2 + $0x510] sm:$0xff]  ;;  %v2404_v56 = vld [vmem:[%s7716_s2 + $0x588] sm:$0xff] }
 0x5b3   : > { %6409 = vmatpush3.msra.mxu0 %v2334_v57  ;;  %2748 = vmatprep.mubr.f32.mxu0 %v2214_v58  ;;  %v2388_v57 = vld [vmem:[%s7716_s2 + $0x508] sm:$0xff]  ;;  %v2403_v58 = vld [vmem:[%s7716_s2 + $0x580] sm:$0xff] }
 0x5b4   : > { %6410 = vmatprep.subr.mxu0 %v2349_v59  ;;  %v2387_v59 = vld [vmem:[%s7716_s2 + $0x500] sm:$0xff] }
 0x5b5   : > { %6411 = vmatpush3.msra.mxu0 %v2333_v60  ;;  %v2173_v60 = vld [vmem:[%s9100_s12 + $0x50] sm:$0xff] }
 0x5b6   : > { %2749 = vmatmul.mubr.f32.gmra.mxu0 %v2213_v61  ;;  %6412 = vmatprep.subr.mxu0 %v2348_v63  ;;  %v2482_v61 = vld [vmem:[%s7716_s2 + $0x7f8] sm:$0xff] }
 0x5b7   : > { %6413 = vmatpush3.msra.mxu0 %v2332_v1  ;;  %2903 = vmatprep.mubr.f32.mxu0 %v2170_v3  ;;  %v2466_v63 = vld [vmem:[%s7716_s2 + $0x778] sm:$0xff]  ;;  %v2481_v3 = vld [vmem:[%s7716_s2 + $0x7f0] sm:$0xff] }
 0x5b8   : > { %6414 = vmatprep.subr.mxu0 %v2347_v4  ;;  %v2190_v1 = vld [vmem:[%s9100_s12 + $0xd8] sm:$0xff]  ;;  %v2465_v4 = vld [vmem:[%s7716_s2 + $0x770] sm:$0xff] }
 0x5b9   : > { %6415 = vmatpush3.msra.mxu0 %v2331_v5  ;;  %v2189_v5 = vld [vmem:[%s9100_s12 + $0xd0] sm:$0xff] }
 0x5ba   : > { %6416 = vmatprep.subr.mxu0 %v2346_v6  ;;  %v2480_v6 = vld [vmem:[%s7716_s2 + $0x7e8] sm:$0xff] }
 0x5bb   : > { %6417 = vmatpush3.msra.mxu0 %v2330_v7  ;;  %v2464_v7 = vld [vmem:[%s7716_s2 + $0x768] sm:$0xff] }
 0x5bc   : > { %6418 = vmatprep.subr.mxu0 %v2345_v8  ;;  %v2206_v8 = vld [vmem:[%s9100_s12 + $0x158] sm:$0xff] }
 0x5bd   : > { %6419 = vmatpush3.msra.mxu0 %v2329_v62  ;;  %v2479_v62 = vld [vmem:[%s7716_s2 + $0x7e0] sm:$0xff] }
 0x5be   : > { %6420 = vmatprep.subr.mxu0 %v2344_v9  ;;  %v2463_v9 = vld [vmem:[%s7716_s2 + $0x760] sm:$0xff] }
 0x5bf   : > { %6421 = vmatpush3.msra.mxu0 %v2328_v2  ;;  %v2205_v2 = vld [vmem:[%s9100_s12 + $0x150] sm:$0xff] }
 0x5c0   : > { %6422 = vmatprep.subr.mxu0 %v2343_v10  ;;  %v2478_v10 = vld [vmem:[%s7716_s2 + $0x7d8] sm:$0xff] }
 0x5c1   : > { %6423 = vmatpush3.msra.mxu0 %v2327_v11  ;;  %v2462_v11 = vld [vmem:[%s7716_s2 + $0x758] sm:$0xff] }
 0x5c2   : > { %6424 = vmatprep.subr.mxu0 %v2342_v12  ;;  %v2222_v12 = vld [vmem:[%s9100_s12 + $0x1d8] sm:$0xff] }
 0x5c3   : > { %6425 = vmatpush3.msra.mxu0 %v2326_v13  ;;  %v2477_v13 = vld [vmem:[%s7716_s2 + $0x7d0] sm:$0xff] }
 0x5c4   : > { %6426 = vmatprep.subr.mxu0 %v2341_v14  ;;  %v2461_v14 = vld [vmem:[%s7716_s2 + $0x750] sm:$0xff] }
 0x5c5   : > { %6427 = vmatpush3.msra.mxu0 %v2325_v15  ;;  %v2221_v15 = vld [vmem:[%s9100_s12 + $0x1d0] sm:$0xff] }
 0x5c6   : > { %6428 = vmatprep.subr.mxu0 %v2340_v16  ;;  %v2476_v16 = vld [vmem:[%s7716_s2 + $0x7c8] sm:$0xff] }
 0x5c7   : > { %6429 = vmatpush3.msra.mxu0 %v2324_v17  ;;  %v2460_v17 = vld [vmem:[%s7716_s2 + $0x748] sm:$0xff] }
 0x5c8   : > { %6430 = vmatprep.subr.mxu0 %v2339_v18  ;;  %v2178_v18 = vld [vmem:[%s9100_s12 + $0x78] sm:$0xff] }
 0x5c9   : > { %6431 = vmatpush3.msra.mxu0 %v2323_v19  ;;  %v2475_v19 = vld [vmem:[%s7716_s2 + $0x7c0] sm:$0xff] }
 0x5ca   : > { %2904 = vmatmul.mubr.f32.vlgmr.msra.gmra.mxu0 %v2169_v20  ;;  %6488 = vmatprep.subr.mxu0 %v2418_v21  ;;  %v2459_v20 = vld [vmem:[%s7716_s2 + $0x740] sm:$0xff]  ;;  %v2474_v21 = vld [vmem:[%s7716_s2 + $0x7b8] sm:$0xff] }
 0x5cb   : > { %6489 = vmatpush3.msra.mxu0 %v2402_v22  ;;  %2908 = vmatprep.mubr.f32.mxu0 %v2186_v23  ;;  %v2458_v22 = vld [vmem:[%s7716_s2 + $0x738] sm:$0xff]  ;;  %v2473_v23 = vld [vmem:[%s7716_s2 + $0x7b0] sm:$0xff] }
 0x5cc   : > { %6490 = vmatprep.subr.mxu0 %v2417_v24  ;;  %v2457_v24 = vld [vmem:[%s7716_s2 + $0x730] sm:$0xff] }
 0x5cd   : > { %6491 = vmatpush3.msra.mxu0 %v2401_v25  ;;  %v2472_v25 = vld [vmem:[%s7716_s2 + $0x7a8] sm:$0xff] }
 0x5ce   : > { %2909 = vmatmul.mubr.f32.gmra.mxu0 %v2185_v26  ;;  %6492 = vmatprep.subr.mxu0 %v2416_v27  ;;  %v2456_v26 = vld [vmem:[%s7716_s2 + $0x728] sm:$0xff]  ;;  %v2471_v27 = vld [vmem:[%s7716_s2 + $0x7a0] sm:$0xff] }
 0x5cf   : > { %6493 = vmatpush3.msra.mxu0 %v2400_v28  ;;  %2913 = vmatprep.mubr.f32.mxu0 %v2202_v29  ;;  %v2455_v28 = vld [vmem:[%s7716_s2 + $0x720] sm:$0xff]  ;;  %v2470_v29 = vld [vmem:[%s7716_s2 + $0x798] sm:$0xff] }
 0x5d0   : > { %6494 = vmatprep.subr.mxu0 %v2415_v30  ;;  %v2454_v30 = vld [vmem:[%s7716_s2 + $0x718] sm:$0xff] }
 0x5d1   : > { %6495 = vmatpush3.msra.mxu0 %v2399_v31  ;;  %v2469_v31 = vld [vmem:[%s7716_s2 + $0x790] sm:$0xff] }
 0x5d2   : > { %2914 = vmatmul.mubr.f32.gmra.mxu0 %v2201_v32  ;;  %6496 = vmatprep.subr.mxu0 %v2414_v33  ;;  %v2453_v32 = vld [vmem:[%s7716_s2 + $0x710] sm:$0xff]  ;;  %v2468_v33 = vld [vmem:[%s7716_s2 + $0x788] sm:$0xff] }
 0x5d3   : > { %6497 = vmatpush3.msra.mxu0 %v2398_v34  ;;  %2918 = vmatprep.mubr.f32.mxu0 %v2218_v35  ;;  %v2452_v34 = vld [vmem:[%s7716_s2 + $0x708] sm:$0xff]  ;;  %v2467_v35 = vld [vmem:[%s7716_s2 + $0x780] sm:$0xff] }
 0x5d4   : > { %6498 = vmatprep.subr.mxu0 %v2413_v36  ;;  %v2451_v36 = vld [vmem:[%s7716_s2 + $0x700] sm:$0xff] }
 0x5d5   : > { %6499 = vmatpush3.msra.mxu0 %v2397_v37  ;;  %v2177_v37 = vld [vmem:[%s9100_s12 + $0x70] sm:$0xff] }
 0x5d6   : > { %2919 = vmatmul.mubr.f32.gmra.mxu0 %v2217_v38  ;;  %6500 = vmatprep.subr.mxu0 %v2412_v39  ;;  %v2194_v38 = vld [vmem:[%s9100_s12 + $0xf8] sm:$0xff]  ;;  %v2193_v39 = vld [vmem:[%s9100_s12 + $0xf0] sm:$0xff] }
 0x5d7   : > { %6501 = vmatpush3.msra.mxu0 %v2396_v40  ;;  %3073 = vmatprep.mubr.f32.mxu0 %v2174_v41  ;;  %v2210_v40 = vld [vmem:[%s9100_s12 + $0x178] sm:$0xff]  ;;  %v2209_v41 = vld [vmem:[%s9100_s12 + $0x170] sm:$0xff] }
 0x5d8   : > { %6502 = vmatprep.subr.mxu0 %v2411_v42  ;;  %v2226_v42 = vld [vmem:[%s9100_s12 + $0x1f8] sm:$0xff] }
 0x5d9   : > { %6503 = vmatpush3.msra.mxu0 %v2395_v43  ;;  %v2225_v43 = vld [vmem:[%s9100_s12 + $0x1f0] sm:$0xff] }
 0x5da   : > { %6504 = vmatprep.subr.mxu0 %v2410_v44  ;;  %v6300_v44 = vpop.f32.mrf.mxu1 }
 0x5db   : > { %6505 = vmatpush3.msra.mxu0 %v2394_v45 }
 0x5dc   : > { %6506 = vmatprep.subr.mxu0 %v2409_v46  ;;  %v6301_v45 = vpop.f32.mrf.mxu1 }
 0x5dd   : > { %6507 = vmatpush3.msra.mxu0 %v2393_v47 }
 0x5de   : > { %6508 = vmatprep.subr.mxu0 %v2408_v48  ;;  %v6303_v47 = vpop.f32.mrf.mxu1 }
 0x5df   : > { %6509 = vmatpush3.msra.mxu0 %v2392_v49 }
 0x5e0   : > { %6510 = vmatprep.subr.mxu0 %v2407_v50  ;;  %v6304_v50 = vpop.f32.mrf.mxu1 }
 0x5e1   : > { %6511 = vmatpush3.msra.mxu0 %v2391_v51 }
 0x5e2   : > { %6512 = vmatprep.subr.mxu0 %v2406_v52  ;;  %v6306_v51 = vpop.f32.mrf.mxu1 }
 0x5e3   : > { %6513 = vmatpush3.msra.mxu0 %v2390_v53 }
 0x5e4   : > { %6514 = vmatprep.subr.mxu0 %v2405_v54  ;;  %v6307_v53 = vpop.f32.mrf.mxu1 }
 0x5e5   : > { %6515 = vmatpush3.msra.mxu0 %v2389_v55 }
 0x5e6   : > { %6516 = vmatprep.subr.mxu0 %v2404_v56  ;;  %v6309_v55 = vpop.f32.mrf.mxu1 }
 0x5e7   : > { %6517 = vmatpush3.msra.mxu0 %v2388_v57 }
 0x5e8   : > { %6518 = vmatprep.subr.mxu0 %v2403_v58  ;;  %v6310_v57 = vpop.f32.mrf.mxu1 }
 0x5e9   : > { %6519 = vmatpush3.msra.mxu0 %v2387_v59 }
 0x5ea   : > { %3074 = vmatmul.mubr.f32.vlgmr.msra.gmra.mxu0 %v2173_v60  ;;  %6576 = vmatprep.subr.mxu0 %v2482_v61  ;;  %v6388_v59 = vpop.f32.mrf.mxu1 }
 0x5eb   : > { %6577 = vmatpush3.msra.mxu0 %v2466_v63  ;;  %3078 = vmatprep.mubr.f32.mxu0 %v2190_v1 }
 0x5ec   : > { %6578 = vmatprep.subr.mxu0 %v2481_v3  ;;  %v6389_v61 = vpop.f32.mrf.mxu1 }
 0x5ed   : > { %6579 = vmatpush3.msra.mxu0 %v2465_v4 }
 0x5ee   : > { %3079 = vmatmul.mubr.f32.gmra.mxu0 %v2189_v5  ;;  %6580 = vmatprep.subr.mxu0 %v2480_v6  ;;  %v6391_v1 = vpop.f32.mrf.mxu1 }
 0x5ef   : > { %6581 = vmatpush3.msra.mxu0 %v2464_v7  ;;  %3083 = vmatprep.mubr.f32.mxu0 %v2206_v8 }
 0x5f0   : > { %6582 = vmatprep.subr.mxu0 %v2479_v62  ;;  %v6392_v4 = vpop.f32.mrf.mxu1 }
 0x5f1   : > { %6583 = vmatpush3.msra.mxu0 %v2463_v9 }
 0x5f2   : > { %3084 = vmatmul.mubr.f32.gmra.mxu0 %v2205_v2  ;;  %6584 = vmatprep.subr.mxu0 %v2478_v10  ;;  %v6394_v6 = vpop.f32.mrf.mxu1 }
 0x5f3   : > { %6585 = vmatpush3.msra.mxu0 %v2462_v11  ;;  %3088 = vmatprep.mubr.f32.mxu0 %v2222_v12 }
 0x5f4   : > { %6586 = vmatprep.subr.mxu0 %v2477_v13  ;;  %v6395_v8 = vpop.f32.mrf.mxu1 }
 0x5f5   : > { %6587 = vmatpush3.msra.mxu0 %v2461_v14 }
 0x5f6   : > { %3089 = vmatmul.mubr.f32.gmra.mxu0 %v2221_v15  ;;  %6588 = vmatprep.subr.mxu0 %v2476_v16  ;;  %v6397_v9 = vpop.f32.mrf.mxu1 }
 0x5f7   : > { %6589 = vmatpush3.msra.mxu0 %v2460_v17  ;;  %3243 = vmatprep.mubr.f32.mxu0 %v2178_v18 }
 0x5f8   : > { %6590 = vmatprep.subr.mxu0 %v2475_v19  ;;  %v6398_v10 = vpop.f32.mrf.mxu1 }
 0x5f9   : > { %6591 = vmatpush3.msra.mxu0 %v2459_v20 }
 0x5fa   : > { %6592 = vmatprep.subr.mxu0 %v2474_v21  ;;  %v6476_v12 = vpop.f32.mrf.mxu1 }
 0x5fb   : > { %6593 = vmatpush3.msra.mxu0 %v2458_v22 }
 0x5fc   : > { %6594 = vmatprep.subr.mxu0 %v2473_v23  ;;  %v6477_v14 = vpop.f32.mrf.mxu1 }
 0x5fd   : > { %6595 = vmatpush3.msra.mxu0 %v2457_v24 }
 0x5fe   : > { %6596 = vmatprep.subr.mxu0 %v2472_v25  ;;  %v8192_v16 = vpop.f32.mrf.mxu1 }
 0x5ff   : > { %6597 = vmatpush3.msra.mxu0 %v2456_v26  ;;  %9170 = vst [vmem:[#allocation8_spill] sm:$0xff] %v8192_v16 }
 0x600   : > { %6598 = vmatprep.subr.mxu0 %v2471_v27  ;;  %v6480_v18 = vpop.f32.mrf.mxu1 }
 0x601   : > { %6599 = vmatpush3.msra.mxu0 %v2455_v28 }
 0x602   : > { %6600 = vmatprep.subr.mxu0 %v2470_v29  ;;  %v6482_v20 = vpop.f32.mrf.mxu1 }
 0x603   : > { %6601 = vmatpush3.msra.mxu0 %v2454_v30 }
 0x604   : > { %6602 = vmatprep.subr.mxu0 %v2469_v31  ;;  %v6483_v22 = vpop.f32.mrf.mxu1 }
 0x605   : > { %6603 = vmatpush3.msra.mxu0 %v2453_v32 }
 0x606   : > { %6604 = vmatprep.subr.mxu0 %v2468_v33  ;;  %v6485_v24 = vpop.f32.mrf.mxu1  ;;  %v6308_v33 = vadd.f32 %v6307_v53, %v6306_v51 }
 0x607   : > { %6605 = vmatpush3.msra.mxu0 %v2452_v34 }
 0x608   : > { %6606 = vmatprep.subr.mxu0 %v2467_v35  ;;  %v6486_v26 = vpop.f32.mrf.mxu1  ;;  %v6302_v35 = vadd.f32 %v6301_v45, %v6300_v44  ;;  %v6399_v45 = vadd.f32 %v6398_v10, %v6397_v9 }
 0x609   : > { %6607 = vmatpush3.msra.mxu0 %v2451_v36  ;;  %v6487_v9 = vadd.f32 %v6486_v26, %v6485_v24 }
 0x60a   : > { %3244 = vmatmul.mubr.f32.vlgmr.msra.gmra.mxu0 %v2177_v37  ;;  %v8196_v28 = vpop.f32.mrf.mxu1 }
 0x60b   : > { %3248 = vmatprep.mubr.f32.mxu0 %v2194_v38  ;;  %9172 = vst [vmem:[#allocation10_spill] sm:$0xff] %v8196_v28  ;;  %v6311_v38 = vadd.f32 %v6310_v57, %v6309_v55  ;;  %v6396_v28 = vadd.f32 %v6395_v8, %v6394_v6  ;;  %v6484_v6 = vadd.f32 %v6483_v22, %v6482_v20 }
 0x60c   : > { %v6565_v30 = vpop.f32.mrf.mxu1 }
 0x60e   : > { %3249 = vmatmul.mubr.f32.gmra.mxu0 %v2193_v39  ;;  %v8200_v32 = vpop.f32.mrf.mxu1 }
 0x60f   : > { %3253 = vmatprep.mubr.f32.mxu0 %v2210_v40  ;;  %9174 = vst [vmem:[#allocation12_spill] sm:$0xff] %v8200_v32  ;;  %v6390_v32 = vadd.f32 %v6389_v61, %v6388_v59 }
 0x610   : > { %v8202_v37 = vpop.f32.mrf.mxu1 }
 0x611   : > { %9175 = vst [vmem:[#allocation13_spill] sm:$0xff] %v8202_v37 }
 0x612   : > { %3254 = vmatmul.mubr.f32.gmra.mxu0 %v2209_v41 }
 0x613   : > { %3258 = vmatprep.mubr.f32.mxu0 %v2226_v42 }
 0x616   : > { %3259 = vmatmul.mubr.f32.gmra.mxu0 %v2225_v43  ;;  %v6305_v43 = vadd.f32 %v6304_v50, %v6303_v47 }
 0x64a   : > { %v8190_v46 = vpop.f32.mrf.mxu0 }
 0x64b   : > { %9169 = vst [vmem:[#allocation7_spill] sm:$0xff] %v8190_v46 }
 0x64c   : > { %v2565_v48 = vpop.f32.mrf.mxu0 }
 0x64d   : > { %v2651_v0 = vadd.f32 %v6302_v35, %v2565_v48  ;;  %v3281_v35 = vpop.permute.xlu0 %3280 }
 0x64e   : > { %v6906_v49 = vpop.f32.mrf.mxu0 }
 0x64f   : > { %v2666_v16 = vadd.f32 %v6906_v49, %v6311_v38  ;;  %v9181_v38 = vld [vmem:[#allocation12_spill] sm:$0xff] }
 0x650   : > { %v2575_v52 = vpop.f32.mrf.mxu0 }
 0x651   : > { %v2661_v39 = vadd.f32 %v6308_v33, %v2575_v52 }
 0x66a   : > { %v6344_v54 = vpop.f32.mrf.mxu0 }
 0x66c   : > { %v6345_v56 = vpop.f32.mrf.mxu0 }
 0x66d   : > { %v6346_v40 = vadd.f32 %v6345_v56, %v6344_v54  ;;  %v6393_v56 = vadd.f32 %v6392_v4, %v6391_v1  ;;  %v9177_v1 = vld [vmem:[#allocation8_spill] sm:$0xff] }
 0x66e   : > { %v6347_v58 = vpop.f32.mrf.mxu0  ;;  %v6481_v4 = vadd.f32 %v6480_v18, %v9177_v1 }
 0x66f   : > { %v2736_v46 = vadd.f32 %v6346_v40, %v2651_v0 }
 0x670   : > { %v6348_v60 = vpop.f32.mrf.mxu0 }
 0x671   : > { %v6349_v51 = vadd.f32 %v6348_v60, %v6347_v58  ;;  %v2821_v48 = vadd.f32 %v6390_v32, %v2736_v46  ;;  %v6478_v58 = vadd.f32 %v6477_v14, %v6476_v12 }
 0x672   : > { %v6350_v63 = vpop.f32.mrf.mxu0 }
 0x674   : > { %v6351_v3 = vpop.f32.mrf.mxu0 }
 0x675   : > { %v6352_v36 = vadd.f32 %v6351_v3, %v6350_v63  ;;  %v9176_v3 = vld [vmem:[#allocation7_spill] sm:$0xff] }
 0x676   : > { %v6353_v5 = vpop.f32.mrf.mxu0  ;;  %v2656_v37 = vadd.f32 %v9176_v3, %v6305_v43 }
 0x678   : > { %v6354_v7 = vpop.f32.mrf.mxu0  ;;  %v2741_v50 = vadd.f32 %v6349_v51, %v2656_v37 }
 0x679   : > { %v6355_v41 = vadd.f32 %v6354_v7, %v6353_v5 }
 0x67b   : > { %v2751_v44 = vadd.f32 %v6355_v41, %v2666_v16 }
 0x67d   : > { %v2836_v49 = vadd.f32 %v6399_v45, %v2751_v44  ;;  %v3286_v45 = vpop.permute.xlu1 %3285 }
 0x68a   : > { %v6432_v62 = vpop.f32.mrf.mxu0 }
 0x68c   : > { %v6433_v2 = vpop.f32.mrf.mxu0 }
 0x68d   : > { %v6434_v52 = vadd.f32 %v6433_v2, %v6432_v62 }
 0x68e   : > { %v6435_v11 = vpop.f32.mrf.mxu0 }
 0x68f   : > { %v2906_v59 = vadd.f32 %v6434_v52, %v2821_v48 }
 0x690   : > { %v6436_v13 = vpop.f32.mrf.mxu0 }
 0x691   : > { %v6437_v60 = vadd.f32 %v6436_v13, %v6435_v11  ;;  %v9178_v13 = vld [vmem:[#allocation10_spill] sm:$0xff] }
 0x692   : > { %v6438_v15 = vpop.f32.mrf.mxu0  ;;  %v6566_v14 = vadd.f32 %v6565_v30, %v9178_v13  ;;  %v3370_v13 = vld [vmem:[%s9106_s18 + $0x10] sm:$0xff] }
 0x694   : > { %v6439_v17 = vpop.f32.mrf.mxu0 }
 0x695   : > { %v6440_v53 = vadd.f32 %v6439_v17, %v6438_v15  ;;  %v2826_v15 = vadd.f32 %v6393_v56, %v2741_v50  ;;  %v2991_v17 = vadd.f32 %v6478_v58, %v2906_v59 }
 0x696   : > { %v6441_v19 = vpop.f32.mrf.mxu0 }
 0x698   : > { %v6442_v21 = vpop.f32.mrf.mxu0 }
 0x699   : > { %v6443_v57 = vadd.f32 %v6442_v21, %v6441_v19  ;;  %v2911_v19 = vadd.f32 %v6437_v60, %v2826_v15 }
 0x69b   : > { %v2921_v8 = vadd.f32 %v6443_v57, %v2836_v49  ;;  %v3276_v57 = vpop.permute.xlu1 %3275 }
 0x6aa   : > { %v6520_v23 = vpop.f32.mrf.mxu0 }
 0x6ac   : > { %v6521_v25 = vpop.f32.mrf.mxu0 }
 0x6ad   : > { %v6522_v2 = vadd.f32 %v6521_v25, %v6520_v23  ;;  %v2996_v25 = vadd.f32 %v6481_v4, %v2911_v19 }
 0x6ae   : > { %v8194_v27 = vpop.f32.mrf.mxu0 }
 0x6af   : > { %9171 = vst [vmem:[#allocation9_spill] sm:$0xff] %v8194_v27  ;;  %v2746_v27 = vadd.f32 %v6352_v36, %v2661_v39  ;;  %v3076_v11 = vadd.f32 %v6522_v2, %v2991_v17  ;;  %v9182_v39 = vld [vmem:[#allocation13_spill] sm:$0xff] }
 0x6b0   : > { %v8198_v29 = vpop.f32.mrf.mxu0  ;;  %v6569_v40 = vadd.f32 %v9182_v39, %v9181_v38 }
 0x6b1   : > { %9173 = vst [vmem:[#allocation11_spill] sm:$0xff] %v8198_v29  ;;  %v6570_v29 = vpop.f32.mrf.mxu1  ;;  %v2831_v55 = vadd.f32 %v6396_v28, %v2746_v27  ;;  %v3006_v27 = vadd.f32 %v6487_v9, %v2921_v8  ;;  %v3161_v37 = vadd.f32 %v6566_v14, %v3076_v11  ;;  %v3364_v11 = vld [vmem:[%s9105_s17] sm:$0xff]  ;;  %v3371_v14 = vld [vmem:[%s9106_s18 + $0x18] sm:$0xff] }
 0x6b2   : > { %v6526_v31 = vpop.f32.mrf.mxu0  ;;  %6931 = vmatprep.mubr.msk.f32.mxu1 %vm3453_vm7, %v3364_v11 }
 0x6b3   : > { %v6571_v54 = vpop.f32.mrf.mxu1  ;;  %v2916_v5 = vadd.f32 %v6440_v53, %v2831_v55  ;;  %v3271_v55 = vpop.permute.xlu0 %3270 }
 0x6b4   : > { %v6527_v34 = vpop.f32.mrf.mxu0  ;;  %v6572_v21 = vadd.f32 %v6571_v54, %v6570_v29 }
 0x6b5   : > { %v6528_v61 = vadd.f32 %v6527_v34, %v6526_v31  ;;  %v6573_v7 = vpop.f32.mrf.mxu1  ;;  %v3001_v62 = vadd.f32 %v6484_v6, %v2916_v5 }
 0x6b6   : > { %v6529_v42 = vpop.f32.mrf.mxu0  ;;  %v9179_v28 = vld [vmem:[#allocation9_spill] sm:$0xff] }
 0x6b7   : > { %v3086_v20 = vadd.f32 %v6528_v61, %v3001_v62  ;;  %v6574_v22 = vpop.f32.mrf.mxu1 }
 0x6b8   : > { %v6530_v63 = vpop.f32.mrf.mxu0  ;;  %v9180_v24 = vld [vmem:[#allocation11_spill] sm:$0xff]  ;;  %v6575_v32 = vadd.f32 %v6574_v22, %v6573_v7 }
 0x6b9   : > { %v6531_v16 = vadd.f32 %v6530_v63, %v6529_v42  ;;  %v6525_v26 = vadd.f32 %v9180_v24, %v9179_v28  ;;  %v3171_v18 = vadd.f32 %v6572_v21, %v3086_v20  ;;  %v3368_v28 = vld [vmem:[%s9106_s18] sm:$0xff]  ;;  %v3369_v24 = vld [vmem:[%s9106_s18 + $0x8] sm:$0xff] }
 0x6bb   : > { %v3091_v31 = vadd.f32 %v6531_v16, %v3006_v27  ;;  %v3081_v29 = vadd.f32 %v6525_v26, %v2996_v25  ;;  %v3561_v26 = vld [vmem:[%s9108_s20 + $0x10] sm:$0xff] }
 0x6bd   : > { %v3176_v42 = vadd.f32 %v6575_v32, %v3091_v31  ;;  %v3166_v63 = vadd.f32 %v6569_v40, %v3081_v29  ;;  %v3562_v31 = vld [vmem:[%s9108_s20 + $0x18] sm:$0xff]  ;;  %v3559_v32 = vld [vmem:[%s9108_s20] sm:$0xff] }
 0x6ca   : > { %v6608_v47 = vpop.f32.mrf.mxu0 }
 0x6cc   : > { %v6609_v0 = vpop.f32.mrf.mxu0 }
 0x6cd   : > { %v6610_v33 = vadd.f32 %v6609_v0, %v6608_v47 }
 0x6ce   : > { %v6611_v10 = vpop.f32.mrf.mxu0 }
 0x6cf   : > { %v3246_v43 = vadd.f32 %v6610_v33, %v3161_v37 }
 0x6d0   : > { %v6612_v46 = vpop.f32.mrf.mxu0 }
 0x6d1   : > { %v6613_v51 = vadd.f32 %v6612_v46, %v6611_v10  ;;  %v8217_v56 = vadd.f32 %v3271_v55, %v3246_v43 }
 0x6d2   : > { %v6614_v12 = vpop.f32.mrf.mxu0 }
 0x6d3   : > { %v3251_v52 = vadd.f32 %v6613_v51, %v3166_v63 }
 0x6d4   : > { %v6615_v23 = vpop.f32.mrf.mxu0 }
 0x6d5   : > { %v6616_v34 = vadd.f32 %v6615_v23, %v6614_v12  ;;  %v8223_v47 = vadd.f32 %v3276_v57, %v3251_v52  ;;  %v3560_v23 = vld [vmem:[%s9108_s20 + $0x8] sm:$0xff] }
 0x6d6   : > { %v6617_v36 = vpop.f32.mrf.mxu0 }
 0x6d7   : > { %v3256_v41 = vadd.f32 %v6616_v34, %v3171_v18 }
 0x6d8   : > { %v6618_v30 = vpop.f32.mrf.mxu0 }
 0x6d9   : > { %v6619_v53 = vadd.f32 %v6618_v30, %v6617_v36  ;;  %v8211_v44 = vadd.f32 %v3281_v35, %v3256_v41 }
 0x6db   : > { %v3261_v3 = vadd.f32 %v6619_v53, %v3176_v42  ;;  %3304 = vrot.lane.b32.xlu0 %v8211_v44, %s9158_s5 }
 0x6dd   : > { %v8215_v54 = vadd.f32 %v3286_v45, %v3261_v3 }
 0x6df   : > { %3306 = vrot.lane.b32.xlu1 %v8215_v54, %s9158_s5  ;;  %3300 = vrot.lane.b32.xlu0 %v8217_v56, %s9158_s5 }
 0x6e3   : > { %3302 = vrot.lane.b32.xlu1 %v8223_v47, %s9158_s5 }
 0x74d   : > { %v3305_v48 = vpop.permute.xlu0 %3304 }
 0x74e   : > { %3316 = vst.msk [vmem:[#allocation2 + $0x20] sm:$0xff] %vm768_vm1, %v3305_v48 }
 0x74f   : > { %3317 = vst.msk [vmem:[#allocation2 + $0x28] sm:$0xff] %vm770_vm2, %v3305_v48 }
 0x751   : > { %v3307_v50 = vpop.permute.xlu1 %3306  ;;  %v3301_v5 = vpop.permute.xlu0 %3300 }
 0x752   : > { %3318 = vst.msk [vmem:[#allocation2 + $0x30] sm:$0xff] %vm768_vm1, %v3307_v50  ;;  %3312 = vst.msk [vmem:[#allocation2] sm:$0xff] %vm768_vm1, %v3301_v5 }
 0x753   : > { %3319 = vst.msk [vmem:[#allocation2 + $0x38] sm:$0xff] %vm770_vm2, %v3307_v50  ;;  %3313 = vst.msk [vmem:[#allocation2 + $0x8] sm:$0xff] %vm770_vm2, %v3301_v5 }
 0x755   : > { %v3303_v6 = vpop.permute.xlu1 %3302  ;;  %v3324_v49 = vld [vmem:[#allocation2 + $0x20] sm:$0xff] }
 0x756   : > { %v3325_v0 = vld [vmem:[#allocation2 + $0x28] sm:$0xff]  ;;  %3314 = vst.msk [vmem:[#allocation2 + $0x10] sm:$0xff] %vm768_vm1, %v3303_v6  ;;  %3352 = vrot.lane.b32.xlu1 %v3324_v49, %s9164_s7 }
 0x757   : > { %3315 = vst.msk [vmem:[#allocation2 + $0x18] sm:$0xff] %vm770_vm2, %v3303_v6  ;;  %3354 = vrot.lane.b32.xlu0 %v3325_v0, %s9164_s7 }
 0x759   : > { %v3326_v59 = vld [vmem:[#allocation2 + $0x30] sm:$0xff]  ;;  %v3320_v8 = vld [vmem:[#allocation2] sm:$0xff] }
 0x75a   : > { %v3327_v58 = vld [vmem:[#allocation2 + $0x38] sm:$0xff]  ;;  %3356 = vrot.lane.b32.xlu1 %v3326_v59, %s9164_s7  ;;  %v3321_v7 = vld [vmem:[#allocation2 + $0x8] sm:$0xff] }
 0x75b   : > { %3358 = vrot.lane.b32.xlu0 %v3327_v58, %s9164_s7 }
 0x75d   : > { %v3322_v60 = vld [vmem:[#allocation2 + $0x10] sm:$0xff] }
 0x75e   : > { %v3323_v61 = vld [vmem:[#allocation2 + $0x18] sm:$0xff]  ;;  %3348 = vrot.lane.b32.xlu1 %v3322_v60, %s9164_s7 }
 0x75f   : > { %3350 = vrot.lane.b32.xlu0 %v3323_v61, %s9164_s7 }
 0x762   : > { %3344 = vrot.lane.b32.xlu1 %v3320_v8, %s9164_s7 }
 0x763   : > { %3346 = vrot.lane.b32.xlu0 %v3321_v7, %s9164_s7 }
 0x766   : > { %3334 = vrot.lane.b32.xlu1 %v8215_v54, %s9133_s3 }
 0x767   : > { %3332 = vrot.lane.b32.xlu0 %v8211_v44, %s9133_s3 }
 0x76a   : > { %3330 = vrot.lane.b32.xlu1 %v8223_v47, %s9133_s3 }
 0x76b   : > { %3328 = vrot.lane.b32.xlu0 %v8217_v56, %s9133_s3 }
 0x7c8   : > { %v3353_v9 = vpop.permute.xlu1 %3352 }
 0x7c9   : > { %v3355_v10 = vpop.permute.xlu0 %3354 }
 0x7ca   : > { %v3362_v19 = vsel %vm886_vm3, %v3353_v9, %v3355_v10 }
 0x7cc   : > { %v3357_v15 = vpop.permute.xlu1 %3356 }
 0x7cd   : > { %v3359_v62 = vpop.permute.xlu0 %3358 }
 0x7ce   : > { %v3363_v20 = vsel %vm886_vm3, %v3357_v15, %v3359_v62 }
 0x7d0   : > { %v3349_v2 = vpop.permute.xlu1 %3348 }
 0x7d1   : > { %v3351_v1 = vpop.permute.xlu0 %3350 }
 0x7d2   : > { %v3361_v17 = vsel %vm886_vm3, %v3349_v2, %v3351_v1 }
 0x7d4   : > { %v3345_v4 = vpop.permute.xlu1 %3344 }
 0x7d5   : > { %v3347_v16 = vpop.permute.xlu0 %3346 }
 0x7d6   : > { %3418 = vrot.lane.b32.xlu0 %v3347_v16, %s9131_s24  ;;  %v3360_v46 = vsel %vm886_vm3, %v3345_v4, %v3347_v16 }
 0x7d7   : > { %3416 = vrot.lane.b32.xlu1 %v3360_v46, %s9131_s24 }
 0x7d8   : > { %v3335_v22 = vpop.permute.xlu1 %3334 }
 0x7d9   : > { %v3333_v21 = vpop.permute.xlu0 %3332 }
 0x7da   : > { %3422 = vrot.lane.b32.xlu0 %v3351_v1, %s9131_s24 }
 0x7db   : > { %3420 = vrot.lane.b32.xlu1 %v3361_v17, %s9131_s24 }
 0x7dc   : > { %v3331_v12 = vpop.permute.xlu1 %3330 }
 0x7dd   : > { %v3329_v27 = vpop.permute.xlu0 %3328 }
 0x7de   : > { %3426 = vrot.lane.b32.xlu0 %v3355_v10, %s9131_s24 }
 0x7df   : > { %3424 = vrot.lane.b32.xlu1 %v3362_v19, %s9131_s24 }
 0x7e2   : > { %3430 = vrot.lane.b32.xlu0 %v3359_v62, %s9131_s24 }
 0x7e3   : > { %3428 = vrot.lane.b32.xlu1 %v3363_v20, %s9131_s24 }
 0x7e6   : > { %3412 = vrot.lane.b32.xlu0 %v3333_v21, %s9131_s24 }
 0x7e7   : > { %3414 = vrot.lane.b32.xlu1 %v3335_v22, %s9131_s24  ;;  %v3556_v22 = vld [vmem:[%s9107_s19 + $0x8] sm:$0xff] }
 0x7ea   : > { %3408 = vrot.lane.b32.xlu0 %v3329_v27, %s9131_s24  ;;  %v3557_v27 = vld [vmem:[%s9107_s19 + $0x10] sm:$0xff] }
 0x7eb   : > { %3410 = vrot.lane.b32.xlu1 %v3331_v12, %s9131_s24  ;;  %v3558_v12 = vld [vmem:[%s9107_s19 + $0x18] sm:$0xff] }
 0x7ee   : > { %3406 = vrot.lane.b32.xlu0 %v3327_v58, %s9131_s24  ;;  %v3367_v58 = vld [vmem:[%s9105_s17 + $0x18] sm:$0xff] }
 0x7ef   : > { %3404 = vrot.lane.b32.xlu1 %v3326_v59, %s9131_s24  ;;  %v3366_v59 = vld [vmem:[%s9105_s17 + $0x10] sm:$0xff] }
 0x7f2   : > { %3402 = vrot.lane.b32.xlu0 %v3325_v0, %s9131_s24  ;;  %v3365_v0 = vld [vmem:[%s9105_s17 + $0x8] sm:$0xff] }
 0x7f3   : > { %3400 = vrot.lane.b32.xlu1 %v3324_v49, %s9131_s24 }
 0x7f6   : > { %3398 = vrot.lane.b32.xlu0 %v3323_v61, %s9131_s24 }
 0x7f7   : > { %3396 = vrot.lane.b32.xlu1 %v3322_v60, %s9131_s24  ;;  %v3555_v60 = vld [vmem:[%s9107_s19] sm:$0xff] }
 0x7f8   : > { %6945 = vmatprep.mubr.msk.f32.mxu0 %vm1168_vm5, %v3555_v60 }
 0x7fa   : > { %3394 = vrot.lane.b32.xlu0 %v3321_v7, %s9131_s24 }
 0x7fb   : > { %3392 = vrot.lane.b32.xlu1 %v3320_v8, %s9131_s24 }
 0x7fe   : > { %3384 = vperm.xlu0 %7238, %v3370_v13  }
 0x7ff   : > { %3389 = vperm.xlu1 %7237, %v3371_v14  }
 0x802   : > { %3374 = vperm.xlu0 %7238, %v3368_v28  }
 0x803   : > { %3379 = vperm.xlu1 %7237, %v3369_v24  }
 0x806   : > { %3575 = vperm.xlu0 %7238, %v3561_v26  }
 0x807   : > { %3580 = vperm.xlu1 %7237, %v3562_v31  }
 0x80a   : > { %3565 = vperm.xlu0 %7238, %v3559_v32  }
 0x80b   : > { %3570 = vperm.xlu1 %7237, %v3560_v23  }
 0x848   : > { %v3419_v25 = vpop.permute.xlu0 %3418 }
 0x849   : > { %v3417_v18 = vpop.permute.xlu1 %3416 }
 0x84a   : > { %v3437_v43 = vsel %vm3432_vm8, %v3417_v18, %v3419_v25 }
 0x84c   : > { %v3423_v33 = vpop.permute.xlu0 %3422 }
 0x84d   : > { %v3421_v34 = vpop.permute.xlu1 %3420 }
 0x84e   : > { %v3438_v42 = vsel %vm3432_vm8, %v3421_v34, %v3423_v33 }
 0x850   : > { %v3427_v35 = vpop.permute.xlu0 %3426 }
 0x851   : > { %v3425_v36 = vpop.permute.xlu1 %3424 }
 0x852   : > { %v3439_v40 = vsel %vm3432_vm8, %v3425_v36, %v3427_v35  ;;  %v8347_v35 = vld [vmem:[%s8343_s30] ss:$0 sm:$0xff] }
 0x854   : > { %v3431_v37 = vpop.permute.xlu0 %3430 }
 0x855   : > { %v3429_v29 = vpop.permute.xlu1 %3428 }
 0x856   : > { %v3440_v38 = vsel %vm3432_vm8, %v3429_v29, %v3431_v37 }
 0x857   : > { %6907 = vmatprep.subr.mxu1 %v3440_v38 }
 0x858   : > { %6908 = vmatpush3.msra.mxu1 %v3440_v38  ;;  %v3413_v39 = vpop.permute.xlu0 %3412 }
 0x859   : > { %v3415_v41 = vpop.permute.xlu1 %3414  ;;  %6909 = vmatprep.subr.mxu1 %v3439_v40 }
 0x85a   : > { %6910 = vmatpush3.msra.mxu1 %v3439_v40 }
 0x85b   : > { %6911 = vmatprep.subr.mxu1 %v3438_v42 }
 0x85c   : > { %6912 = vmatpush3.msra.mxu1 %v3438_v42  ;;  %v3409_v30 = vpop.permute.xlu0 %3408 }
 0x85d   : > { %v3411_v51 = vpop.permute.xlu1 %3410  ;;  %6913 = vmatprep.subr.mxu1 %v3437_v43 }
 0x85e   : > { %6914 = vmatpush3.msra.mxu1 %v3437_v43 }
 0x85f   : > { %6915 = vmatprep.subr.mxu1 %v3415_v41 }
 0x860   : > { %6916 = vmatpush3.msra.mxu1 %v3415_v41  ;;  %v3407_v53 = vpop.permute.xlu0 %3406 }
 0x861   : > { %v3405_v45 = vpop.permute.xlu1 %3404  ;;  %6917 = vmatprep.subr.mxu1 %v3413_v39 }
 0x862   : > { %6918 = vmatpush3.msra.mxu1 %v3413_v39  ;;  %v3436_v55 = vsel %vm3432_vm8, %v3405_v45, %v3407_v53 }
 0x863   : > { %6919 = vmatprep.subr.mxu1 %v3411_v51 }
 0x864   : > { %6920 = vmatpush3.msra.mxu1 %v3411_v51  ;;  %v3403_v63 = vpop.permute.xlu0 %3402 }
 0x865   : > { %v3401_v3 = vpop.permute.xlu1 %3400  ;;  %6921 = vmatprep.subr.mxu1 %v3409_v30 }
 0x866   : > { %6922 = vmatpush3.msra.mxu1 %v3409_v30  ;;  %v3435_v57 = vsel %vm3432_vm8, %v3401_v3, %v3403_v63 }
 0x867   : > { %6923 = vmatprep.subr.mxu1 %v3436_v55 }
 0x868   : > { %6924 = vmatpush3.msra.mxu1 %v3436_v55  ;;  %v3399_v52 = vpop.permute.xlu0 %3398 }
 0x869   : > { %v3397_v48 = vpop.permute.xlu1 %3396  ;;  %6925 = vmatprep.subr.mxu1 %v3435_v57 }
 0x86a   : > { %6926 = vmatpush3.msra.mxu1 %v3435_v57  ;;  %v3434_v50 = vsel %vm3432_vm8, %v3397_v48, %v3399_v52 }
 0x86b   : > { %6927 = vmatprep.subr.mxu1 %v3434_v50 }
 0x86c   : > { %6928 = vmatpush3.msra.mxu1 %v3434_v50  ;;  %v3395_v5 = vpop.permute.xlu0 %3394 }
 0x86d   : > { %v3393_v6 = vpop.permute.xlu1 %3392 }
 0x86e   : > { %v3433_v49 = vsel %vm3432_vm8, %v3393_v6, %v3395_v5 }
 0x86f   : > { %6929 = vmatprep.subr.mxu1 %v3433_v49 }
 0x870   : > { %6930 = vmatpush3.msra.mxu1 %v3433_v49 }
 0x871   : > { %6932 = vmatmul.mubr.msk.f32.vlgmr.msra.gmra.mxu1 %vm3453_vm7, %v3365_v0 }
 0x872   : > { %6934 = vmatprep.mubr.msk.f32.mxu1 %vm3453_vm7, %v3366_v59 }
 0x875   : > { %6935 = vmatmul.mubr.msk.f32.gmra.mxu1 %vm3453_vm7, %v3367_v58 }
 0x879   : > { %v3385_v8 = vpop.permute.xlu0 %3384 }
 0x87a   : > { %v3390_v61 = vpop.permute.xlu1 %3389 }
 0x87d   : > { %v3375_v46 = vpop.permute.xlu0 %3374 }
 0x87e   : > { %v3380_v62 = vpop.permute.xlu1 %3379 }
 0x881   : > { %v3576_v13 = vpop.permute.xlu0 %3575 }
 0x882   : > { %v3581_v11 = vpop.permute.xlu1 %3580 }
 0x885   : > { %v3566_v23 = vpop.permute.xlu0 %3565 }
 0x886   : > { %v3571_v24 = vpop.permute.xlu1 %3570 }
 0x931   : > { %v6933_v7 = vpop.f32.mrf.mxu1 }
 0x932   : > { %v3538_v1 = vadd.f32 %v6933_v7, %v3380_v62  ;;  %v6066_v62 = vld [vmem:[%s9106_s18 + $0x30] sm:$0xff] }
 0x933   : > { %v3532_v9 = vpop.f32.mrf.mxu1 }
 0x934   : > { %v3533_v17 = vadd.f32 %v3532_v9, %v3375_v46  ;;  %v3552_v20 = vmax.f32 %v3538_v1, 0.0  ;;  %v6064_v1 = vld [vmem:[%s9106_s18 + $0x20] sm:$0xff]  ;;  %v6077_v46 = vld [vmem:[%s9108_s20 + $0x28] sm:$0xff] }
 0x935   : > { %v6936_v10 = vpop.f32.mrf.mxu1 }
 0x936   : > { %v3548_v15 = vadd.f32 %v6936_v10, %v3390_v61  ;;  %v3551_v21 = vmax.f32 %v3533_v17, 0.0  ;;  %v6060_v10 = vld [vmem:[%s9105_s17 + $0x20] sm:$0xff] }
 0x937   : > { %v3542_v2 = vpop.f32.mrf.mxu1  ;;  %v6076_v17 = vld [vmem:[%s9108_s20 + $0x20] sm:$0xff] }
 0x938   : > { %v3554_v4 = vmax.f32 %v3548_v15, 0.0  ;;  %v3543_v16 = vadd.f32 %v3542_v2, %v3385_v8  ;;  %v6067_v15 = vld [vmem:[%s9106_s18 + $0x38] sm:$0xff]  ;;  %v6065_v2 = vld [vmem:[%s9106_s18 + $0x28] sm:$0xff] }
 0x93a   : > { %v3553_v19 = vmax.f32 %v3543_v16, 0.0  ;;  %6937 = vmatprep.subr.mxu0 %v3554_v4  ;;  %v6078_v16 = vld [vmem:[%s9108_s20 + $0x30] sm:$0xff] }
 0x93b   : > { %6938 = vmatpush3.msra.mxu0 %v3554_v4  ;;  %v6079_v4 = vld [vmem:[%s9108_s20 + $0x38] sm:$0xff] }
 0x93c   : > { %6939 = vmatprep.subr.mxu0 %v3553_v19 }
 0x93d   : > { %6940 = vmatpush3.msra.mxu0 %v3553_v19 }
 0x93e   : > { %6941 = vmatprep.subr.mxu0 %v3552_v20 }
 0x93f   : > { %6942 = vmatpush3.msra.mxu0 %v3552_v20 }
 0x940   : > { %6943 = vmatprep.subr.mxu0 %v3551_v21 }
 0x941   : > { %6944 = vmatpush3.msra.mxu0 %v3551_v21 }
 0x942   : > { %6946 = vmatmul.mubr.msk.f32.vlgmr.msra.gmra.mxu0 %vm1168_vm5, %v3556_v22 }
 0x943   : > { %6948 = vmatprep.mubr.msk.f32.mxu0 %vm1168_vm5, %v3557_v27 }
 0x946   : > { %6949 = vmatmul.mubr.msk.f32.gmra.mxu0 %vm1168_vm5, %v3558_v12 }
 0x947   : > { %6975 = vmatprep.mubr.msk.f32.mxu0 %vm3453_vm7, %v6060_v10  ;;  %v6075_v10 = vld [vmem:[%s9107_s19 + $0x38] sm:$0xff] }
 0xa02   : > { %v6947_v14 = vpop.f32.mrf.mxu0 }
 0xa03   : > { %v3667_v31 = vadd.f32 %v6947_v14, %v3571_v24 }
 0xa04   : > { %v3661_v28 = vpop.f32.mrf.mxu0 }
 0xa05   : > { %v3662_v18 = vadd.f32 %v3661_v28, %v3566_v23  ;;  %v3681_v36 = vadd.f32 %v3667_v31, %v8223_v47 }
 0xa06   : > { %v6950_v26 = vpop.f32.mrf.mxu0 }
 0xa07   : > { %v3677_v32 = vadd.f32 %v6950_v26, %v3581_v11  ;;  %v3680_v38 = vadd.f32 %v3662_v18, %v8217_v56 }
 0xa08   : > { %v3671_v25 = vpop.f32.mrf.mxu0 }
 0xa09   : > { %v3683_v33 = vadd.f32 %v3677_v32, %v8215_v54  ;;  %v3672_v34 = vadd.f32 %v3671_v25, %v3576_v13  ;;  %v8363_v54 = vmul.f32 %v8347_v35, %v3681_v36 }
 0xa0b   : > { %v3682_v37 = vadd.f32 %v3672_v34, %v8211_v44  ;;  %v8352_v29 = vmul.f32 %v8347_v35, %v3683_v33  ;;  %v8368_v44 = vmul.f32 %v8347_v35, %v3680_v38 }
 0xa0d   : > { %3704 = vrot.lane.b32.xlu1 %v8352_v29, %s9158_s5  ;;  %v8358_v39 = vmul.f32 %v8347_v35, %v3682_v37 }
 0xa0f   : > { %3702 = vrot.lane.b32.xlu0 %v8358_v39, %s9158_s5 }
 0xa11   : > { %3700 = vrot.lane.b32.xlu1 %v8363_v54, %s9158_s5 }
 0xa13   : > { %3698 = vrot.lane.b32.xlu0 %v8368_v44, %s9158_s5 }
 0xa7f   : > { %v3705_v56 = vpop.permute.xlu1 %3704 }
 0xa80   : > { %3716 = vst.msk [vmem:[#allocation2 + $0x30] sm:$0xff] %vm768_vm1, %v3705_v56 }
 0xa81   : > { %3717 = vst.msk [vmem:[#allocation2 + $0x38] sm:$0xff] %vm770_vm2, %v3705_v56  ;;  %v3703_v47 = vpop.permute.xlu0 %3702 }
 0xa82   : > { %3714 = vst.msk [vmem:[#allocation2 + $0x20] sm:$0xff] %vm768_vm1, %v3703_v47 }
 0xa83   : > { %3715 = vst.msk [vmem:[#allocation2 + $0x28] sm:$0xff] %vm770_vm2, %v3703_v47  ;;  %v3701_v40 = vpop.permute.xlu1 %3700 }
 0xa84   : > { %3712 = vst.msk [vmem:[#allocation2 + $0x10] sm:$0xff] %vm768_vm1, %v3701_v40 }
 0xa85   : > { %3713 = vst.msk [vmem:[#allocation2 + $0x18] sm:$0xff] %vm770_vm2, %v3701_v40  ;;  %v3699_v41 = vpop.permute.xlu0 %3698 }
 0xa86   : > { %3710 = vst.msk [vmem:[#allocation2] sm:$0xff] %vm768_vm1, %v3699_v41 }
 0xa87   : > { %3711 = vst.msk [vmem:[#allocation2 + $0x8] sm:$0xff] %vm770_vm2, %v3699_v41  ;;  %v3724_v43 = vld [vmem:[#allocation2 + $0x30] sm:$0xff] }
 0xa88   : > { %v3725_v51 = vld [vmem:[#allocation2 + $0x38] sm:$0xff] }
 0xa89   : > { %v3722_v45 = vld [vmem:[#allocation2 + $0x20] sm:$0xff] }
 0xa8a   : > { %v3723_v53 = vld [vmem:[#allocation2 + $0x28] sm:$0xff] }
 0xa8b   : > { %v3720_v42 = vld [vmem:[#allocation2 + $0x10] sm:$0xff] }
 0xa8c   : > { %v3721_v30 = vld [vmem:[#allocation2 + $0x18] sm:$0xff]  ;;  %3746 = vrot.lane.b32.xlu1 %v3720_v42, %s9137_s27 }
 0xa8d   : > { %3748 = vrot.lane.b32.xlu0 %v3721_v30, %s9137_s27  ;;  %v3718_v3 = vld [vmem:[#allocation2] sm:$0xff] }
 0xa8e   : > { %v3719_v63 = vld [vmem:[#allocation2 + $0x8] sm:$0xff] }
 0xa90   : > { %3754 = vrot.lane.b32.xlu1 %v3724_v43, %s9137_s27 }
 0xa91   : > { %3756 = vrot.lane.b32.xlu0 %v3725_v51, %s9137_s27 }
 0xa94   : > { %3750 = vrot.lane.b32.xlu1 %v3722_v45, %s9137_s27 }
 0xa95   : > { %3752 = vrot.lane.b32.xlu0 %v3723_v53, %s9137_s27 }
 0xa98   : > { %3742 = vrot.lane.b32.xlu1 %v3718_v3, %s9137_s27 }
 0xa99   : > { %3744 = vrot.lane.b32.xlu0 %v3719_v63, %s9137_s27  ;;  %s734_s27 = sand.u32 1, %s7258_s4   ;;  %s9188_s4 = smov 2  }
 0xa9c   : > { %3732 = vrot.lane.b32.xlu1 %v8352_v29, %s9135_s26 }
 0xa9d   : > { %3730 = vrot.lane.b32.xlu0 %v8358_v39, %s9135_s26 }
 0xaa0   : > { %3728 = vrot.lane.b32.xlu1 %v8363_v54, %s9135_s26 }
 0xaa1   : > { %3726 = vrot.lane.b32.xlu0 %v8368_v44, %s9135_s26  ;;  %s5982_s26 = sshll.u32 %s734_s27, 4 }
 0xaa2   : > { %s8651_s29 = scalar_lea.vmem [#allocation3], %s5982_s26 }
 0xafe   : > { %v3747_v55 = vpop.permute.xlu1 %3746 }
 0xaff   : > { %v3749_v52 = vpop.permute.xlu0 %3748 }
 0xb00   : > { %v3760_v58 = vsel %vm3758_vm9, %v3747_v55, %v3749_v52 }
 0xb02   : > { %v3755_v57 = vpop.permute.xlu1 %3754 }
 0xb03   : > { %v3757_v48 = vpop.permute.xlu0 %3756 }
 0xb04   : > { %v3762_v61 = vsel %vm3758_vm9, %v3755_v57, %v3757_v48 }
 0xb06   : > { %v3751_v50 = vpop.permute.xlu1 %3750 }
 0xb07   : > { %v3753_v5 = vpop.permute.xlu0 %3752 }
 0xb08   : > { %v3761_v7 = vsel %vm3758_vm9, %v3751_v50, %v3753_v5 }
 0xb0a   : > { %v3743_v6 = vpop.permute.xlu1 %3742 }
 0xb0b   : > { %v3745_v49 = vpop.permute.xlu0 %3744 }
 0xb0c   : > { %v3759_v60 = vsel %vm3758_vm9, %v3743_v6, %v3745_v49 }
 0xb0e   : > { %v3733_v0 = vpop.permute.xlu1 %3732 }
 0xb0f   : > { %v3731_v59 = vpop.permute.xlu0 %3730  ;;  %3815 = vrot.lane.b32.xlu1 %v3733_v0, %s9164_s7 }
 0xb10   : > { %3813 = vrot.lane.b32.xlu0 %v3731_v59, %s9164_s7 }
 0xb12   : > { %v3729_v8 = vpop.permute.xlu1 %3728 }
 0xb13   : > { %3821 = vrot.lane.b32.xlu1 %v3760_v58, %s9164_s7  ;;  %v3727_v9 = vpop.permute.xlu0 %3726 }
 0xb14   : > { %3823 = vrot.lane.b32.xlu0 %v3749_v52, %s9164_s7 }
 0xb17   : > { %3817 = vrot.lane.b32.xlu1 %v3759_v60, %s9164_s7 }
 0xb18   : > { %3819 = vrot.lane.b32.xlu0 %v3745_v49, %s9164_s7 }
 0xb1b   : > { %3829 = vrot.lane.b32.xlu1 %v3762_v61, %s9164_s7 }
 0xb1c   : > { %3831 = vrot.lane.b32.xlu0 %v3757_v48, %s9164_s7 }
 0xb1f   : > { %3825 = vrot.lane.b32.xlu1 %v3761_v7, %s9164_s7 }
 0xb20   : > { %3827 = vrot.lane.b32.xlu0 %v3753_v5, %s9164_s7 }
 0xb23   : > { %3811 = vrot.lane.b32.xlu1 %v3729_v8, %s9164_s7  ;;  %v6073_v8 = vld [vmem:[%s9107_s19 + $0x28] sm:$0xff] }
 0xb24   : > { %3809 = vrot.lane.b32.xlu0 %v3727_v9, %s9164_s7  ;;  %v6074_v9 = vld [vmem:[%s9107_s19 + $0x30] sm:$0xff] }
 0xb27   : > { %3805 = vrot.lane.b32.xlu1 %v3724_v43, %s9164_s7  ;;  %v6061_v43 = vld [vmem:[%s9105_s17 + $0x28] sm:$0xff] }
 0xb28   : > { %3807 = vrot.lane.b32.xlu0 %v3725_v51, %s9164_s7  ;;  %v6062_v51 = vld [vmem:[%s9105_s17 + $0x30] sm:$0xff] }
 0xb2b   : > { %3801 = vrot.lane.b32.xlu1 %v3722_v45, %s9164_s7  ;;  %v6072_v45 = vld [vmem:[%s9107_s19 + $0x20] sm:$0xff] }
 0xb2c   : > { %3803 = vrot.lane.b32.xlu0 %v3723_v53, %s9164_s7  ;;  %v6063_v53 = vld [vmem:[%s9105_s17 + $0x38] sm:$0xff]  ;;  %6989 = vmatprep.mubr.msk.f32.mxu1 %vm1168_vm5, %v6072_v45  ;;  %v4525_v45 = vld [vmem:[%s9104_s16 + $0x8] sm:$0xff] }
 0xb2f   : > { %3797 = vrot.lane.b32.xlu1 %v3720_v42, %s9164_s7 }
 0xb30   : > { %3799 = vrot.lane.b32.xlu0 %v3721_v30, %s9164_s7 }
 0xb33   : > { %3793 = vrot.lane.b32.xlu1 %v3718_v3, %s9164_s7 }
 0xb34   : > { %3795 = vrot.lane.b32.xlu0 %v3719_v63, %s9164_s7 }
 0xb37   : > { %3790 = vperm.xlu1 %7237, %v6067_v15  }
 0xb38   : > { %3785 = vperm.xlu0 %7238, %v6066_v62  }
 0xb3b   : > { %3780 = vperm.xlu1 %7237, %v6065_v2  }
 0xb3c   : > { %3775 = vperm.xlu0 %7238, %v6064_v1  }
 0xb3f   : > { %3981 = vperm.xlu1 %7237, %v6079_v4  }
 0xb40   : > { %3976 = vperm.xlu0 %7238, %v6078_v16  }
 0xb43   : > { %3971 = vperm.xlu1 %7237, %v6077_v46  }
 0xb44   : > { %3966 = vperm.xlu0 %7238, %v6076_v17  }
 0xb81   : > { %v3816_v19 = vpop.permute.xlu1 %3815 }
 0xb82   : > { %v3814_v20 = vpop.permute.xlu0 %3813 }
 0xb85   : > { %v3822_v21 = vpop.permute.xlu1 %3821 }
 0xb86   : > { %v3824_v22 = vpop.permute.xlu0 %3823 }
 0xb87   : > { %v3838_v31 = vsel %vm886_vm3, %v3822_v21, %v3824_v22 }
 0xb89   : > { %v3818_v27 = vpop.permute.xlu1 %3817 }
 0xb8a   : > { %v3820_v12 = vpop.permute.xlu0 %3819 }
 0xb8b   : > { %v3837_v25 = vsel %vm886_vm3, %v3818_v27, %v3820_v12 }
 0xb8d   : > { %v3830_v11 = vpop.permute.xlu1 %3829 }
 0xb8e   : > { %v3832_v13 = vpop.permute.xlu0 %3831 }
 0xb8f   : > { %v3840_v14 = vsel %vm886_vm3, %v3830_v11, %v3832_v13 }
 0xb90   : > { %6951 = vmatprep.subr.mxu0 %v3840_v14 }
 0xb91   : > { %6952 = vmatpush3.msra.mxu0 %v3840_v14  ;;  %v3826_v28 = vpop.permute.xlu1 %3825 }
 0xb92   : > { %v3828_v24 = vpop.permute.xlu0 %3827 }
 0xb93   : > { %v3839_v26 = vsel %vm886_vm3, %v3826_v28, %v3828_v24 }
 0xb94   : > { %6953 = vmatprep.subr.mxu0 %v3839_v26 }
 0xb95   : > { %6954 = vmatpush3.msra.mxu0 %v3839_v26  ;;  %v3812_v32 = vpop.permute.xlu1 %3811 }
 0xb96   : > { %6955 = vmatprep.subr.mxu0 %v3838_v31  ;;  %v3810_v23 = vpop.permute.xlu0 %3809 }
 0xb97   : > { %6956 = vmatpush3.msra.mxu0 %v3838_v31 }
 0xb98   : > { %6957 = vmatprep.subr.mxu0 %v3837_v25 }
 0xb99   : > { %6958 = vmatpush3.msra.mxu0 %v3837_v25  ;;  %v3806_v18 = vpop.permute.xlu1 %3805 }
 0xb9a   : > { %6959 = vmatprep.subr.mxu0 %v3816_v19  ;;  %v3808_v33 = vpop.permute.xlu0 %3807 }
 0xb9b   : > { %6960 = vmatpush3.msra.mxu0 %v3816_v19  ;;  %v3836_v37 = vsel %vm886_vm3, %v3806_v18, %v3808_v33 }
 0xb9c   : > { %6961 = vmatprep.subr.mxu0 %v3814_v20 }
 0xb9d   : > { %6962 = vmatpush3.msra.mxu0 %v3814_v20  ;;  %v3802_v34 = vpop.permute.xlu1 %3801 }
 0xb9e   : > { %6963 = vmatprep.subr.mxu0 %v3812_v32  ;;  %v3804_v36 = vpop.permute.xlu0 %3803 }
 0xb9f   : > { %6964 = vmatpush3.msra.mxu0 %v3812_v32  ;;  %v3835_v47 = vsel %vm886_vm3, %v3802_v34, %v3804_v36 }
 0xba0   : > { %6965 = vmatprep.subr.mxu0 %v3810_v23 }
 0xba1   : > { %6966 = vmatpush3.msra.mxu0 %v3810_v23  ;;  %v3798_v38 = vpop.permute.xlu1 %3797 }
 0xba2   : > { %6967 = vmatprep.subr.mxu0 %v3836_v37  ;;  %v3800_v56 = vpop.permute.xlu0 %3799 }
 0xba3   : > { %6968 = vmatpush3.msra.mxu0 %v3836_v37  ;;  %v3834_v40 = vsel %vm886_vm3, %v3798_v38, %v3800_v56  ;;  %v6090_v37 = vld [vmem:[%s9106_s18 + $0x50] sm:$0xff]  ;;  %v6091_v38 = vld [vmem:[%s9106_s18 + $0x58] sm:$0xff]  ;;  %v6088_v56 = vld [vmem:[%s9106_s18 + $0x40] sm:$0xff] }
 0xba4   : > { %6969 = vmatprep.subr.mxu0 %v3835_v47 }
 0xba5   : > { %6970 = vmatpush3.msra.mxu0 %v3835_v47  ;;  %v3794_v41 = vpop.permute.xlu1 %3793  ;;  %v6089_v47 = vld [vmem:[%s9106_s18 + $0x48] sm:$0xff] }
 0xba6   : > { %6971 = vmatprep.subr.mxu0 %v3834_v40  ;;  %v3796_v42 = vpop.permute.xlu0 %3795 }
 0xba7   : > { %6972 = vmatpush3.msra.mxu0 %v3834_v40  ;;  %v3833_v30 = vsel %vm886_vm3, %v3794_v41, %v3796_v42  ;;  %v6084_v40 = vld [vmem:[%s9105_s17 + $0x40] sm:$0xff]  ;;  %v6102_v41 = vld [vmem:[%s9108_s20 + $0x50] sm:$0xff]  ;;  %v6103_v42 = vld [vmem:[%s9108_s20 + $0x58] sm:$0xff] }
 0xba8   : > { %6973 = vmatprep.subr.mxu0 %v3833_v30 }
 0xba9   : > { %6974 = vmatpush3.msra.mxu0 %v3833_v30  ;;  %v6100_v30 = vld [vmem:[%s9108_s20 + $0x40] sm:$0xff] }
 0xbaa   : > { %6976 = vmatmul.mubr.msk.f32.vlgmr.msra.gmra.mxu0 %vm3453_vm7, %v6061_v43  ;;  %v6101_v43 = vld [vmem:[%s9108_s20 + $0x48] sm:$0xff] }
 0xbab   : > { %6978 = vmatprep.mubr.msk.f32.mxu0 %vm3453_vm7, %v6062_v51  ;;  %v4527_v51 = vld [vmem:[%s9104_s16 + $0x18] sm:$0xff] }
 0xbae   : > { %6979 = vmatmul.mubr.msk.f32.gmra.mxu0 %vm3453_vm7, %v6063_v53  ;;  %v4420_v53 = vld [vmem:[%s9110_s22] sm:$0xff] }
 0xbb2   : > { %v3791_v63 = vpop.permute.xlu1 %3790 }
 0xbb3   : > { %v3786_v55 = vpop.permute.xlu0 %3785 }
 0xbb6   : > { %v3781_v50 = vpop.permute.xlu1 %3780 }
 0xbb7   : > { %v3776_v59 = vpop.permute.xlu0 %3775 }
 0xbba   : > { %v3982_v15 = vpop.permute.xlu1 %3981 }
 0xbbb   : > { %v3977_v62 = vpop.permute.xlu0 %3976 }
 0xbbe   : > { %v3972_v4 = vpop.permute.xlu1 %3971 }
 0xbbf   : > { %v3967_v19 = vpop.permute.xlu0 %3966 }
 0xc6a   : > { %v6977_v3 = vpop.f32.mrf.mxu0 }
 0xc6b   : > { %v3937_v6 = vadd.f32 %v6977_v3, %v3781_v50  ;;  %v4524_v3 = vld [vmem:[%s9104_s16] sm:$0xff] }
 0xc6c   : > { %v3931_v52 = vpop.f32.mrf.mxu0 }
 0xc6d   : > { %v3932_v58 = vadd.f32 %v3931_v52, %v3776_v59  ;;  %v3951_v61 = vmax.f32 %v3937_v6, 0.0 }
 0xc6e   : > { %v6980_v57 = vpop.f32.mrf.mxu0 }
 0xc6f   : > { %v3947_v48 = vadd.f32 %v6980_v57, %v3791_v63  ;;  %v3950_v7 = vmax.f32 %v3932_v58, 0.0  ;;  %v4526_v63 = vld [vmem:[%s9104_s16 + $0x10] sm:$0xff] }
 0xc70   : > { %v3941_v5 = vpop.f32.mrf.mxu0 }
 0xc71   : > { %v3953_v49 = vmax.f32 %v3947_v48, 0.0  ;;  %v3942_v0 = vadd.f32 %v3941_v5, %v3786_v55 }
 0xc73   : > { %v3952_v60 = vmax.f32 %v3942_v0, 0.0  ;;  %6981 = vmatprep.subr.mxu1 %v3953_v49 }
 0xc74   : > { %6982 = vmatpush3.msra.mxu1 %v3953_v49 }
 0xc75   : > { %6983 = vmatprep.subr.mxu1 %v3952_v60 }
 0xc76   : > { %6984 = vmatpush3.msra.mxu1 %v3952_v60 }
 0xc77   : > { %6985 = vmatprep.subr.mxu1 %v3951_v61 }
 0xc78   : > { %6986 = vmatpush3.msra.mxu1 %v3951_v61  ;;  %v6085_v61 = vld [vmem:[%s9105_s17 + $0x48] sm:$0xff] }
 0xc79   : > { %6987 = vmatprep.subr.mxu1 %v3950_v7 }
 0xc7a   : > { %6988 = vmatpush3.msra.mxu1 %v3950_v7  ;;  %v6086_v7 = vld [vmem:[%s9105_s17 + $0x50] sm:$0xff] }
 0xc7b   : > { %6990 = vmatmul.mubr.msk.f32.vlgmr.msra.gmra.mxu1 %vm1168_vm5, %v6073_v8  ;;  %v9184_v8 = vmov 0.0  }
 0xc7c   : > { %6992 = vmatprep.mubr.msk.f32.mxu1 %vm1168_vm5, %v6074_v9  ;;  %v6087_v9 = vld [vmem:[%s9105_s17 + $0x58] sm:$0xff] }
 0xc7f   : > { %6993 = vmatmul.mubr.msk.f32.gmra.mxu1 %vm1168_vm5, %v6075_v10  ;;  %v6096_v10 = vld [vmem:[%s9107_s19 + $0x40] sm:$0xff] }
 0xc80   : > { %7019 = vmatprep.mubr.msk.f32.mxu1 %vm3453_vm7, %v6084_v40  ;;  %7033 = vmatprep.mubr.msk.f32.mxu0 %vm1168_vm5, %v6096_v10 }
 0xd3b   : > { %v6991_v2 = vpop.f32.mrf.mxu1 }
 0xd3c   : > { %v4068_v46 = vadd.f32 %v6991_v2, %v3972_v4 }
 0xd3d   : > { %v4062_v1 = vpop.f32.mrf.mxu1 }
 0xd3e   : > { %v4063_v21 = vadd.f32 %v4062_v1, %v3967_v19  ;;  %v4082_v12 = vadd.f32 %v4068_v46, %v8363_v54 }
 0xd3f   : > { %v6994_v16 = vpop.f32.mrf.mxu1 }
 0xd40   : > { %v4078_v17 = vadd.f32 %v6994_v16, %v3982_v15  ;;  %v4081_v14 = vadd.f32 %v4063_v21, %v8368_v44  ;;  %v8497_v24 = vmul.f32 %v8347_v35, %v4082_v12 }
 0xd41   : > { %v4072_v20 = vpop.f32.mrf.mxu1 }
 0xd42   : > { %v4084_v22 = vadd.f32 %v4078_v17, %v8352_v29  ;;  %v4073_v27 = vadd.f32 %v4072_v20, %v3977_v62  ;;  %v8502_v29 = vmul.f32 %v8347_v35, %v4081_v14 }
 0xd44   : > { %v8487_v11 = vmul.f32 %v8347_v35, %v4084_v22  ;;  %v4083_v13 = vadd.f32 %v4073_v27, %v8358_v39 }
 0xd46   : > { %v8492_v28 = vmul.f32 %v8347_v35, %v4083_v13  ;;  %4099 = vrot.lane.b32.xlu1 %v8487_v11, %s9158_s5 }
 0xd48   : > { %4097 = vrot.lane.b32.xlu0 %v8492_v28, %s9158_s5 }
 0xd4a   : > { %4095 = vrot.lane.b32.xlu1 %v8497_v24, %s9158_s5 }
 0xd4c   : > { %4093 = vrot.lane.b32.xlu0 %v8502_v29, %s9158_s5 }
 0xdb8   : > { %v4100_v39 = vpop.permute.xlu1 %4099 }
 0xdb9   : > { %4111 = vst.msk [vmem:[#allocation2 + $0x30] sm:$0xff] %vm768_vm1, %v4100_v39 }
 0xdba   : > { %4112 = vst.msk [vmem:[#allocation2 + $0x38] sm:$0xff] %vm770_vm2, %v4100_v39  ;;  %v4098_v54 = vpop.permute.xlu0 %4097  ;;  %v6097_v39 = vld [vmem:[%s9107_s19 + $0x48] sm:$0xff] }
 0xdbb   : > { %4109 = vst.msk [vmem:[#allocation2 + $0x20] sm:$0xff] %vm768_vm1, %v4098_v54 }
 0xdbc   : > { %4110 = vst.msk [vmem:[#allocation2 + $0x28] sm:$0xff] %vm770_vm2, %v4098_v54  ;;  %v4096_v44 = vpop.permute.xlu1 %4095  ;;  %v6098_v54 = vld [vmem:[%s9107_s19 + $0x50] sm:$0xff] }
 0xdbd   : > { %4107 = vst.msk [vmem:[#allocation2 + $0x10] sm:$0xff] %vm768_vm1, %v4096_v44 }
 0xdbe   : > { %4108 = vst.msk [vmem:[#allocation2 + $0x18] sm:$0xff] %vm770_vm2, %v4096_v44  ;;  %v4094_v26 = vpop.permute.xlu0 %4093  ;;  %v6099_v44 = vld [vmem:[%s9107_s19 + $0x58] sm:$0xff] }
 0xdbf   : > { %4105 = vst.msk [vmem:[#allocation2] sm:$0xff] %vm768_vm1, %v4094_v26 }
 0xdc0   : > { %4106 = vst.msk [vmem:[#allocation2 + $0x8] sm:$0xff] %vm770_vm2, %v4094_v26  ;;  %v8521_v23 = vld [vmem:[#allocation2 + $0x30] sm:$0xff] }
 0xdc1   : > { %v4120_v25 = vld [vmem:[#allocation2 + $0x38] sm:$0xff] }
 0xdc2   : > { %v8526_v33 = vld [vmem:[#allocation2 + $0x20] sm:$0xff] }
 0xdc3   : > { %v4119_v18 = vld [vmem:[#allocation2 + $0x28] sm:$0xff] }
 0xdc4   : > { %v8516_v31 = vld [vmem:[#allocation2 + $0x10] sm:$0xff] }
 0xdc5   : > { %v4118_v32 = vld [vmem:[#allocation2 + $0x18] sm:$0xff]  ;;  %4133 = vrot.lane.b32.xlu1 %v8516_v31, %s9166_s28 }
 0xdc6   : > { %4135 = vrot.lane.b32.xlu0 %v4118_v32, %s9166_s28  ;;  %v8531_v36 = vld [vmem:[#allocation2] sm:$0xff] }
 0xdc7   : > { %v4117_v34 = vld [vmem:[#allocation2 + $0x8] sm:$0xff] }
 0xdc9   : > { %4141 = vrot.lane.b32.xlu1 %v8521_v23, %s9166_s28 }
 0xdca   : > { %4143 = vrot.lane.b32.xlu0 %v4120_v25, %s9166_s28 }
 0xdcd   : > { %4137 = vrot.lane.b32.xlu1 %v8526_v33, %s9166_s28 }
 0xdce   : > { %4139 = vrot.lane.b32.xlu0 %v4119_v18, %s9166_s28 }
 0xdd1   : > { %4129 = vrot.lane.b32.xlu1 %v8531_v36, %s9166_s28 }
 0xdd2   : > { %4131 = vrot.lane.b32.xlu0 %v4117_v34, %s9166_s28 }
 0xdd5   : > { %4180 = vperm.xlu1 %7237, %v6091_v38  }
 0xdd6   : > { %4175 = vperm.xlu0 %7238, %v6090_v37  }
 0xdd9   : > { %4170 = vperm.xlu1 %7237, %v6089_v47  }
 0xdda   : > { %4165 = vperm.xlu0 %7238, %v6088_v56  }
 0xddd   : > { %4311 = vperm.xlu1 %7237, %v6103_v42  }
 0xdde   : > { %4306 = vperm.xlu0 %7238, %v6102_v41  }
 0xde1   : > { %4301 = vperm.xlu1 %7237, %v6101_v43  }
 0xde2   : > { %4296 = vperm.xlu0 %7238, %v6100_v30  }
 0xde5   : > { %4423 = vperm.xlu1 %7237, %v4420_v53  }
 0xde6   : > { %4545 = vperm.xlu0 %7238, %v4527_v51  }
 0xde9   : > { %4540 = vperm.xlu1 %7237, %v4526_v63  }
 0xdea   : > { %4535 = vperm.xlu0 %7238, %v4525_v45  }
 0xded   : > { %4530 = vperm.xlu1 %7237, %v4524_v3  }
 0xe37   : > { %v4134_v55 = vpop.permute.xlu1 %4133 }
 0xe38   : > { %v4136_v52 = vpop.permute.xlu0 %4135 }
 0xe39   : > { %v4146_v0 = vsel %vm1358_vm6, %v4134_v55, %v4136_v52  ;;  %v7279_v55 = vmov -1e+30  }
 0xe3b   : > { %v4142_v57 = vpop.permute.xlu1 %4141 }
 0xe3c   : > { %v4144_v48 = vpop.permute.xlu0 %4143 }
 0xe3d   : > { %v4148_v50 = vsel %vm1358_vm6, %v4142_v57, %v4144_v48 }
 0xe3e   : > { %6995 = vmatprep.subr.mxu1 %v4148_v50 }
 0xe3f   : > { %6996 = vmatpush3.msra.mxu1 %v4148_v50  ;;  %v4138_v5 = vpop.permute.xlu1 %4137 }
 0xe40   : > { %v4140_v6 = vpop.permute.xlu0 %4139 }
 0xe41   : > { %v4147_v49 = vsel %vm1358_vm6, %v4138_v5, %v4140_v6 }
 0xe42   : > { %6997 = vmatprep.subr.mxu1 %v4147_v49 }
 0xe43   : > { %6998 = vmatpush3.msra.mxu1 %v4147_v49  ;;  %v4130_v59 = vpop.permute.xlu1 %4129 }
 0xe44   : > { %6999 = vmatprep.subr.mxu1 %v4146_v0  ;;  %v4132_v58 = vpop.permute.xlu0 %4131 }
 0xe45   : > { %7000 = vmatpush3.msra.mxu1 %v4146_v0  ;;  %v4145_v60 = vsel %vm1358_vm6, %v4130_v59, %v4132_v58 }
 0xe46   : > { %7001 = vmatprep.subr.mxu1 %v4145_v60 }
 0xe47   : > { %7002 = vmatpush3.msra.mxu1 %v4145_v60 }
 0xe48   : > { %7003 = vmatprep.subr.mxu1 %v8487_v11 }
 0xe49   : > { %7004 = vmatpush3.msra.mxu1 %v8487_v11 }
 0xe4a   : > { %7005 = vmatprep.subr.mxu1 %v8492_v28 }
 0xe4b   : > { %7006 = vmatpush3.msra.mxu1 %v8492_v28 }
 0xe4c   : > { %7007 = vmatprep.subr.mxu1 %v8497_v24 }
 0xe4d   : > { %7008 = vmatpush3.msra.mxu1 %v8497_v24 }
 0xe4e   : > { %7009 = vmatprep.subr.mxu1 %v8502_v29 }
 0xe4f   : > { %7010 = vmatpush3.msra.mxu1 %v8502_v29 }
 0xe50   : > { %7011 = vmatprep.subr.mxu1 %v8521_v23  ;;  %v4181_v15 = vpop.permute.xlu1 %4180 }
 0xe51   : > { %7012 = vmatpush3.msra.mxu1 %v8521_v23  ;;  %v4176_v2 = vpop.permute.xlu0 %4175 }
 0xe52   : > { %7013 = vmatprep.subr.mxu1 %v8526_v33 }
 0xe53   : > { %7014 = vmatpush3.msra.mxu1 %v8526_v33 }
 0xe54   : > { %7015 = vmatprep.subr.mxu1 %v8516_v31  ;;  %v4171_v46 = vpop.permute.xlu1 %4170 }
 0xe55   : > { %7016 = vmatpush3.msra.mxu1 %v8516_v31  ;;  %v4166_v22 = vpop.permute.xlu0 %4165 }
 0xe56   : > { %7017 = vmatprep.subr.mxu1 %v8531_v36 }
 0xe57   : > { %7018 = vmatpush3.msra.mxu1 %v8531_v36 }
 0xe58   : > { %7020 = vmatmul.mubr.msk.f32.vlgmr.msra.gmra.mxu1 %vm3453_vm7, %v6085_v61  ;;  %7039 = vmatprep.subr.mxu1 %v9184_v8  ;;  %v4312_v26 = vpop.permute.xlu1 %4311 }
 0xe59   : > { %7022 = vmatprep.mubr.msk.f32.mxu1 %vm3453_vm7, %v6086_v7  ;;  %v4307_v31 = vpop.permute.xlu0 %4306 }
 0xe5c   : > { %7023 = vmatmul.mubr.msk.f32.gmra.mxu1 %vm3453_vm7, %v6087_v9  ;;  %v4302_v25 = vpop.permute.xlu1 %4301 }
 0xe5d   : > { %7047 = vmatprep.mubr.msk.f32.mxu1 %vm7278_vm10, %v9184_v8  ;;  %v4297_v36 = vpop.permute.xlu0 %4296 }
 0xe60   : > { %v4424_v45 = vpop.permute.xlu1 %4423 }
 0xf18   : > { %v7021_v62 = vpop.f32.mrf.mxu1 }
 0xf19   : > { %v4267_v19 = vadd.f32 %v7021_v62, %v4171_v46 }
 0xf1a   : > { %v4261_v1 = vpop.f32.mrf.mxu1 }
 0xf1b   : > { %v4262_v27 = vadd.f32 %v4261_v1, %v4166_v22  ;;  %v4281_v13 = vmax.f32 %v4267_v19, 0.0  ;;  %v4522_v19 = vld [vmem:[%s9103_s15 + $0x10] sm:$0xff] }
 0xf1c   : > { %v7024_v4 = vpop.f32.mrf.mxu1 }
 0xf1d   : > { %v4277_v16 = vadd.f32 %v7024_v4, %v4181_v15  ;;  %v4280_v14 = vmax.f32 %v4262_v27, 0.0  ;;  %v4541_v27 = vpop.permute.xlu1 %4540 }
 0xf1e   : > { %v4271_v17 = vpop.f32.mrf.mxu1 }
 0xf1f   : > { %v4283_v20 = vmax.f32 %v4277_v16, 0.0  ;;  %v4272_v21 = vadd.f32 %v4271_v17, %v4176_v2  ;;  %v4521_v17 = vld [vmem:[%s9103_s15 + $0x8] sm:$0xff] }
 0xf21   : > { %v4282_v12 = vmax.f32 %v4272_v21, 0.0  ;;  %7025 = vmatprep.subr.mxu0 %v4283_v20  ;;  %v4546_v21 = vpop.permute.xlu0 %4545 }
 0xf22   : > { %7026 = vmatpush3.msra.mxu0 %v4283_v20  ;;  %v4523_v20 = vld [vmem:[%s9103_s15 + $0x18] sm:$0xff] }
 0xf23   : > { %7027 = vmatprep.subr.mxu0 %v4282_v12 }
 0xf24   : > { %7028 = vmatpush3.msra.mxu0 %v4282_v12 }
 0xf25   : > { %7029 = vmatprep.subr.mxu0 %v4281_v13 }
 0xf26   : > { %7030 = vmatpush3.msra.mxu0 %v4281_v13 }
 0xf27   : > { %7031 = vmatprep.subr.mxu0 %v4280_v14 }
 0xf28   : > { %7032 = vmatpush3.msra.mxu0 %v4280_v14 }
 0xf29   : > { %7034 = vmatmul.mubr.msk.f32.vlgmr.msra.gmra.mxu0 %vm1168_vm5, %v6097_v39 }
 0xf2a   : > { %7036 = vmatprep.mubr.msk.f32.mxu0 %vm1168_vm5, %v6098_v54  ;;  %v4536_v54 = vpop.permute.xlu0 %4535 }
 0xf2d   : > { %7037 = vmatmul.mubr.msk.f32.gmra.mxu0 %vm1168_vm5, %v6099_v44 }
 0xfe9   : > { %v7035_v32 = vpop.f32.mrf.mxu0 }
 0xfea   : > { %v4398_v33 = vadd.f32 %v7035_v32, %v4302_v25 }
 0xfeb   : > { %v4392_v23 = vpop.f32.mrf.mxu0 }
 0xfec   : > { %v4393_v38 = vadd.f32 %v4392_v23, %v4297_v36  ;;  %v4412_v40 = vadd.f32 %v4398_v33, %v8497_v24  ;;  %v4520_v24 = vld [vmem:[%s9103_s15] sm:$0xff] }
 0xfed   : > { %v7038_v18 = vpop.f32.mrf.mxu0 }
 0xfee   : > { %v4408_v34 = vadd.f32 %v7038_v18, %v4312_v26  ;;  %v4411_v30 = vadd.f32 %v4393_v38, %v8502_v29  ;;  %v4416_v51 = vmul.f32 %v8347_v35, %v4412_v40  ;;  %v3292_v29 = vlaneseq  ;;  %v4531_v26 = vpop.permute.xlu1 %4530 }
 0xfef   : > { %v4402_v37 = vpop.f32.mrf.mxu0 }
 0xff0   : > { %v4414_v56 = vadd.f32 %v4408_v34, %v8487_v11  ;;  %v4403_v47 = vadd.f32 %v4402_v37, %v4307_v31  ;;  %v4415_v11 = vmul.f32 %v8347_v35, %v4411_v30  ;;  %v3293_v53 = vshrl.u32 %v3292_v29, 7 }
 0xff2   : > { %v4418_v41 = vmul.f32 %v8347_v35, %v4414_v56  ;;  %v4413_v42 = vadd.f32 %v4403_v47, %v8492_v28  ;;  %v4419_v28 = vld [vmem:[%s9109_s21] sm:$0xff]  ;;  %vm3294_vm11 = vcmp.lt.s32.totalorder %v3293_v53, 7 }
 0xff3   : > { %v3295_v52 = vsel %vm3294_vm11, 0.0, %v7279_v55 }
 0xff4   : > { %v4417_v43 = vmul.f32 %v8347_v35, %v4413_v42  ;;  %7040 = vmatpush3.msra.mxu1 %v4418_v41 }
 0xff5   : > { %7041 = vmatprep.subr.mxu1 %v9184_v8 }
 0xff6   : > { %7042 = vmatpush3.msra.mxu1 %v4417_v43 }
 0xff7   : > { %7043 = vmatprep.subr.mxu1 %v9184_v8 }
 0xff8   : > { %7044 = vmatpush3.msra.mxu1 %v4416_v51 }
 0xff9   : > { %7045 = vmatprep.subr.mxu1 %v9184_v8 }
 0xffa   : > { %7046 = vmatpush3.msra.mxu1 %v4415_v11 }
 0xffb   : > { %7048 = vmatmul.mubr.msk.f32.vlgmr.msra.gmra.mxu1 %vm1168_vm5, %v4419_v28 }
 0xffc   : > { %7052 = vmatprep.mubr.msk.f32.mxu1 %vm755_vm0, %v4520_v24 }
0x10bb   : > { %v4495_v63 = vpop.f32.mrf.mxu1 }
0x10bc   : > { %v4496_v3 = vadd.f32 %v4495_v63, %v4424_v45 }
0x10bd   : > { %v7049_v57 = vpop.f32.mrf.mxu1 }
0x10be   : > { %v4499_v48 = vmul.f32 %v8347_v35, %v4496_v3 }
0x10c0   : > { %4500 = vst [vmem:[%s8651_s29] sm:$0xff] %v4499_v48  ;;  %v4501_v50 = vadd.f32 %v4499_v48, %v3295_v52  ;;  %v6113_v48 = vld [vmem:[%s9105_s17 + $0x60] sm:$0xff] }
0x10c1   : > { %7082 = vmatprep.mubr.msk.f32.mxu0 %vm3453_vm7, %v6113_v48  ;;  %v6128_v48 = vld [vmem:[%s9107_s19 + $0x78] sm:$0xff] }
0x10c2   : > { %v4502_v5 = vrot.slane %v4501_v50, 4 }
0x10c4   : > { %v4503_v6 = vmax.f32 %v4501_v50, %v4502_v5  ;;  %v6120_v5 = vld [vmem:[%s9106_s18 + $0x78] sm:$0xff] }
0x10c6   : > { %v4504_v49 = vrot.slane %v4503_v6, 2 }
0x10c8   : > { %v4505_v0 = vmax.f32 %v4503_v6, %v4504_v49  ;;  %v6117_v6 = vld [vmem:[%s9106_s18 + $0x60] sm:$0xff]  ;;  %v6118_v49 = vld [vmem:[%s9106_s18 + $0x68] sm:$0xff] }
0x10ca   : > { %v4506_v59 = vrot.slane %v4505_v0, 1 }
0x10cc   : > { %v4507_v58 = vmax.f32 %v4505_v0, %v4506_v59  ;;  %v6131_v0 = vld [vmem:[%s9108_s20 + $0x70] sm:$0xff]  ;;  %v6132_v59 = vld [vmem:[%s9108_s20 + $0x78] sm:$0xff] }
0x10ce   : > { %v4508_v60 = vsub.f32 %v4501_v50, %v4507_v58  ;;  %v6119_v50 = vld [vmem:[%s9106_s18 + $0x70] sm:$0xff]  ;;  %v6129_v58 = vld [vmem:[%s9108_s20 + $0x60] sm:$0xff] }
0x10d0   : > { %v4509_v61 = vmul.f32 1.442695, %v4508_v60  ;;  %v6130_v60 = vld [vmem:[%s9108_s20 + $0x68] sm:$0xff] }
0x10d2   : > { %7239 = vpow2.f32 %v4509_v61 }
0x10df   : > { %v7240_v7 = vpop.eup %7239 }
0x10e0   : > { %v4511_v9 = vrot.slane %v7240_v7, 4 }
0x10e2   : > { %v4512_v10 = vadd.f32 %v7240_v7, %v4511_v9 }
0x10e4   : > { %v4513_v15 = vrot.slane %v4512_v10, 2 }
0x10e6   : > { %v4514_v62 = vadd.f32 %v4513_v15, %v4512_v10 }
0x10e8   : > { %v4515_v2 = vrot.slane %v4514_v62, 1 }
0x10ea   : > { %v4516_v1 = vadd.f32 %v4515_v2, %v4514_v62 }
0x10ec   : > { %7241 = vrcp.f32 %v4516_v1 }
0x10f9   : > { %v7242_v4 = vpop.eup %7241 }
0x10fa   : > { %v4518_v16 = vmul.f32 %v7242_v4, %v7240_v7 }
0x10fc   : > { %v4519_v46 = vmul.f32 %v8347_v35, %v4518_v16 }
0x10fe   : > { %7050 = vmatprep.subr.mxu1 %v4519_v46 }
0x10ff   : > { %7051 = vmatpush3.msra.mxu1 %v4519_v46 }
0x1100   : > { %7053 = vmatmul.mubr.msk.f32.vlgmr.msra.gmra.mxu1 %vm755_vm0, %v4521_v17 }
0x1101   : > { %7055 = vmatprep.mubr.msk.f32.mxu1 %vm755_vm0, %v4522_v19 }
0x1104   : > { %7056 = vmatmul.mubr.msk.f32.gmra.mxu1 %vm755_vm0, %v4523_v20 }
0x11c0   : > { %v7054_v35 = vpop.f32.mrf.mxu1 }
0x11c1   : > { %v8673_v44 = vadd.f32 %v7054_v35, %v4536_v54 }
0x11c2   : > { %v4626_v22 = vpop.f32.mrf.mxu1 }
0x11c3   : > { %v8677_v31 = vadd.f32 %v4626_v22, %v4531_v26 }
0x11c4   : > { %v7057_v12 = vpop.f32.mrf.mxu1 }
0x11c5   : > { %v8667_v13 = vadd.f32 %v7057_v12, %v4546_v21 }
0x11c6   : > { %v4636_v14 = vpop.f32.mrf.mxu1 }
0x11c7   : > { %v8669_v39 = vadd.f32 %v4636_v14, %v4541_v27  ;;  %4655 = vrot.lane.b32.xlu0 %v8667_v13, %s9158_s5 }
0x11c9   : > { %4653 = vrot.lane.b32.xlu1 %v8669_v39, %s9158_s5 }
0x11cb   : > { %4651 = vrot.lane.b32.xlu0 %v8673_v44, %s9158_s5 }
0x11cd   : > { %4649 = vrot.lane.b32.xlu1 %v8677_v31, %s9158_s5 }
0x1239   : > { %v4656_v32 = vpop.permute.xlu0 %4655 }
0x123a   : > { %4667 = vst.msk [vmem:[#allocation2 + $0x30] sm:$0xff] %vm768_vm1, %v4656_v32 }
0x123b   : > { %4668 = vst.msk [vmem:[#allocation2 + $0x38] sm:$0xff] %vm770_vm2, %v4656_v32  ;;  %v4654_v23 = vpop.permute.xlu1 %4653 }
0x123c   : > { %4665 = vst.msk [vmem:[#allocation2 + $0x20] sm:$0xff] %vm768_vm1, %v4654_v23 }
0x123d   : > { %4666 = vst.msk [vmem:[#allocation2 + $0x28] sm:$0xff] %vm770_vm2, %v4654_v23  ;;  %v4652_v25 = vpop.permute.xlu0 %4651 }
0x123e   : > { %4663 = vst.msk [vmem:[#allocation2 + $0x10] sm:$0xff] %vm768_vm1, %v4652_v25 }
0x123f   : > { %4664 = vst.msk [vmem:[#allocation2 + $0x18] sm:$0xff] %vm770_vm2, %v4652_v25  ;;  %v4650_v18 = vpop.permute.xlu1 %4649 }
0x1240   : > { %4661 = vst.msk [vmem:[#allocation2] sm:$0xff] %vm768_vm1, %v4650_v18 }
0x1241   : > { %4662 = vst.msk [vmem:[#allocation2 + $0x8] sm:$0xff] %vm770_vm2, %v4650_v18  ;;  %v4675_v37 = vld [vmem:[#allocation2 + $0x30] sm:$0xff] }
0x1242   : > { %v4676_v36 = vld [vmem:[#allocation2 + $0x38] sm:$0xff] }
0x1243   : > { %v4673_v56 = vld [vmem:[#allocation2 + $0x20] sm:$0xff] }
0x1244   : > { %v4674_v38 = vld [vmem:[#allocation2 + $0x28] sm:$0xff] }
0x1245   : > { %v4671_v34 = vld [vmem:[#allocation2 + $0x10] sm:$0xff] }
0x1246   : > { %v4672_v33 = vld [vmem:[#allocation2 + $0x18] sm:$0xff]  ;;  %4697 = vrot.lane.b32.xlu0 %v4671_v34, %s9164_s7 }
0x1247   : > { %4699 = vrot.lane.b32.xlu1 %v4672_v33, %s9164_s7  ;;  %v4669_v40 = vld [vmem:[#allocation2] sm:$0xff] }
0x1248   : > { %v4670_v47 = vld [vmem:[#allocation2 + $0x8] sm:$0xff] }
0x124a   : > { %4705 = vrot.lane.b32.xlu0 %v4675_v37, %s9164_s7 }
0x124b   : > { %4707 = vrot.lane.b32.xlu1 %v4676_v36, %s9164_s7 }
0x124e   : > { %4701 = vrot.lane.b32.xlu0 %v4673_v56, %s9164_s7 }
0x124f   : > { %4703 = vrot.lane.b32.xlu1 %v4674_v38, %s9164_s7 }
0x1252   : > { %4693 = vrot.lane.b32.xlu0 %v4669_v40, %s9164_s7 }
0x1253   : > { %4695 = vrot.lane.b32.xlu1 %v4670_v47, %s9164_s7 }
0x1256   : > { %4683 = vrot.lane.b32.xlu0 %v8667_v13, %s9185_s8 }
0x1257   : > { %4681 = vrot.lane.b32.xlu1 %v8669_v39, %s9185_s8 }
0x125a   : > { %4679 = vrot.lane.b32.xlu0 %v8673_v44, %s9185_s8 }
0x125b   : > { %4677 = vrot.lane.b32.xlu1 %v8677_v31, %s9185_s8  ;;  %s9189_s8 = sld [smem:[#allocation24_spill]] (%p7425_p4) }
0x1261   : > { %s5856_s27 = scalar_lea.vmem (%p7425_p4), %s9189_s8, %s6190_s0 }
0x12b8   : > { %v4698_v42 = vpop.permute.xlu0 %4697 }
0x12b9   : > { %v4700_v41 = vpop.permute.xlu1 %4699 }
0x12ba   : > { %v4710_v45 = vsel %vm886_vm3, %v4698_v42, %v4700_v41 }
0x12bc   : > { %v4706_v43 = vpop.permute.xlu0 %4705 }
0x12bd   : > { %v4708_v30 = vpop.permute.xlu1 %4707 }
0x12be   : > { %v4712_v3 = vsel %vm886_vm3, %v4706_v43, %v4708_v30 }
0x12c0   : > { %v4702_v11 = vpop.permute.xlu0 %4701 }
0x12c1   : > { %v4704_v51 = vpop.permute.xlu1 %4703 }
0x12c2   : > { %v4711_v55 = vsel %vm886_vm3, %v4702_v11, %v4704_v51 }
0x12c4   : > { %v4694_v24 = vpop.permute.xlu0 %4693 }
0x12c5   : > { %v4696_v28 = vpop.permute.xlu1 %4695 }
0x12c6   : > { %v4709_v63 = vsel %vm886_vm3, %v4694_v24, %v4696_v28 }
0x12c8   : > { %v4684_v53 = vpop.permute.xlu0 %4683 }
0x12c9   : > { %v4682_v29 = vpop.permute.xlu1 %4681  ;;  %4765 = vrot.lane.b32.xlu0 %v4684_v53, %s9186_s9 }
0x12ca   : > { %4763 = vrot.lane.b32.xlu1 %v4682_v29, %s9186_s9 }
0x12cc   : > { %v4680_v57 = vpop.permute.xlu0 %4679 }
0x12cd   : > { %4771 = vrot.lane.b32.xlu0 %v4710_v45, %s9186_s9  ;;  %v4678_v52 = vpop.permute.xlu1 %4677 }
0x12ce   : > { %4773 = vrot.lane.b32.xlu1 %v4700_v41, %s9186_s9 }
0x12d1   : > { %4767 = vrot.lane.b32.xlu0 %v4709_v63, %s9186_s9 }
0x12d2   : > { %4769 = vrot.lane.b32.xlu1 %v4696_v28, %s9186_s9 }
0x12d5   : > { %4779 = vrot.lane.b32.xlu0 %v4712_v3, %s9186_s9 }
0x12d6   : > { %4781 = vrot.lane.b32.xlu1 %v4708_v30, %s9186_s9 }
0x12d9   : > { %4775 = vrot.lane.b32.xlu0 %v4711_v55, %s9186_s9 }
0x12da   : > { %4777 = vrot.lane.b32.xlu1 %v4704_v51, %s9186_s9 }
0x12dd   : > { %4761 = vrot.lane.b32.xlu0 %v4680_v57, %s9186_s9  ;;  %v6127_v57 = vld [vmem:[%s9107_s19 + $0x70] sm:$0xff] }
0x12de   : > { %4759 = vrot.lane.b32.xlu1 %v4678_v52, %s9186_s9  ;;  %v6126_v52 = vld [vmem:[%s9107_s19 + $0x68] sm:$0xff] }
0x12e1   : > { %4755 = vrot.lane.b32.xlu0 %v4675_v37, %s9186_s9  ;;  %v6115_v37 = vld [vmem:[%s9105_s17 + $0x70] sm:$0xff] }
0x12e2   : > { %4757 = vrot.lane.b32.xlu1 %v4676_v36, %s9186_s9  ;;  %v6114_v36 = vld [vmem:[%s9105_s17 + $0x68] sm:$0xff] }
0x12e5   : > { %4751 = vrot.lane.b32.xlu0 %v4673_v56, %s9186_s9  ;;  %v6125_v56 = vld [vmem:[%s9107_s19 + $0x60] sm:$0xff] }
0x12e6   : > { %4753 = vrot.lane.b32.xlu1 %v4674_v38, %s9186_s9  ;;  %v6116_v38 = vld [vmem:[%s9105_s17 + $0x78] sm:$0xff]  ;;  %7096 = vmatprep.mubr.msk.f32.mxu1 %vm1168_vm5, %v6125_v56 }
0x12e9   : > { %4747 = vrot.lane.b32.xlu0 %v4671_v34, %s9186_s9 }
0x12ea   : > { %4749 = vrot.lane.b32.xlu1 %v4672_v33, %s9186_s9 }
0x12ed   : > { %4743 = vrot.lane.b32.xlu0 %v4669_v40, %s9186_s9 }
0x12ee   : > { %4745 = vrot.lane.b32.xlu1 %v4670_v47, %s9186_s9 }
0x12f1   : > { %4740 = vperm.xlu0 %7238, %v6120_v5  }
0x12f2   : > { %4735 = vperm.xlu1 %7237, %v6119_v50  }
0x12f5   : > { %4730 = vperm.xlu0 %7238, %v6118_v49  }
0x12f6   : > { %4725 = vperm.xlu1 %7237, %v6117_v6  }
0x12f9   : > { %4931 = vperm.xlu0 %7238, %v6132_v59  }
0x12fa   : > { %4926 = vperm.xlu1 %7237, %v6131_v0  }
0x12fd   : > { %4921 = vperm.xlu0 %7238, %v6130_v60  }
0x12fe   : > { %4916 = vperm.xlu1 %7237, %v6129_v58  }
0x133b   : > { %v4766_v7 = vpop.permute.xlu0 %4765 }
0x133c   : > { %v4764_v61 = vpop.permute.xlu1 %4763 }
0x133f   : > { %v4772_v10 = vpop.permute.xlu0 %4771 }
0x1340   : > { %v4774_v9 = vpop.permute.xlu1 %4773 }
0x1341   : > { %v4788_v19 = vsel %vm3432_vm8, %v4772_v10, %v4774_v9 }
0x1343   : > { %v4768_v62 = vpop.permute.xlu0 %4767 }
0x1344   : > { %v4770_v15 = vpop.permute.xlu1 %4769 }
0x1345   : > { %v4787_v21 = vsel %vm3432_vm8, %v4768_v62, %v4770_v15 }
0x1347   : > { %v4780_v1 = vpop.permute.xlu0 %4779 }
0x1348   : > { %v4782_v2 = vpop.permute.xlu1 %4781 }
0x1349   : > { %v4790_v4 = vsel %vm3432_vm8, %v4780_v1, %v4782_v2  ;;  %v8798_v2 = vld [vmem:[%s8343_s30] ss:$0 sm:$0xff]  ;;  %s9187_s30 = smov 124  }
0x134a   : > { %7058 = vmatprep.subr.mxu0 %v4790_v4 }
0x134b   : > { %7059 = vmatpush3.msra.mxu0 %v4790_v4  ;;  %v4776_v46 = vpop.permute.xlu0 %4775 }
0x134c   : > { %v4778_v16 = vpop.permute.xlu1 %4777 }
0x134d   : > { %v4789_v17 = vsel %vm3432_vm8, %v4776_v46, %v4778_v16 }
0x134e   : > { %7060 = vmatprep.subr.mxu0 %v4789_v17 }
0x134f   : > { %7061 = vmatpush3.msra.mxu0 %v4789_v17  ;;  %v4762_v35 = vpop.permute.xlu0 %4761 }
0x1350   : > { %v4760_v20 = vpop.permute.xlu1 %4759  ;;  %7062 = vmatprep.subr.mxu0 %v4788_v19 }
0x1351   : > { %7063 = vmatpush3.msra.mxu0 %v4788_v19 }
0x1352   : > { %7064 = vmatprep.subr.mxu0 %v4787_v21 }
0x1353   : > { %7065 = vmatpush3.msra.mxu0 %v4787_v21  ;;  %v4756_v27 = vpop.permute.xlu0 %4755 }
0x1354   : > { %v4758_v22 = vpop.permute.xlu1 %4757  ;;  %7066 = vmatprep.subr.mxu0 %v4766_v7 }
0x1355   : > { %7067 = vmatpush3.msra.mxu0 %v4766_v7  ;;  %v4786_v54 = vsel %vm3432_vm8, %v4756_v27, %v4758_v22 }
0x1356   : > { %7068 = vmatprep.subr.mxu0 %v4764_v61 }
0x1357   : > { %7069 = vmatpush3.msra.mxu0 %v4764_v61  ;;  %v4752_v14 = vpop.permute.xlu0 %4751 }
0x1358   : > { %v4754_v12 = vpop.permute.xlu1 %4753  ;;  %7070 = vmatprep.subr.mxu0 %v4762_v35 }
0x1359   : > { %7071 = vmatpush3.msra.mxu0 %v4762_v35  ;;  %v4785_v23 = vsel %vm3432_vm8, %v4752_v14, %v4754_v12 }
0x135a   : > { %7072 = vmatprep.subr.mxu0 %v4760_v20 }
0x135b   : > { %7073 = vmatpush3.msra.mxu0 %v4760_v20  ;;  %v4748_v32 = vpop.permute.xlu0 %4747 }
0x135c   : > { %v4750_v26 = vpop.permute.xlu1 %4749  ;;  %7074 = vmatprep.subr.mxu0 %v4786_v54 }
0x135d   : > { %7075 = vmatpush3.msra.mxu0 %v4786_v54  ;;  %v4784_v25 = vsel %vm3432_vm8, %v4748_v32, %v4750_v26 }
0x135e   : > { %7076 = vmatprep.subr.mxu0 %v4785_v23 }
0x135f   : > { %7077 = vmatpush3.msra.mxu0 %v4785_v23  ;;  %v4744_v33 = vpop.permute.xlu0 %4743 }
0x1360   : > { %v4746_v18 = vpop.permute.xlu1 %4745  ;;  %7078 = vmatprep.subr.mxu0 %v4784_v25 }
0x1361   : > { %7079 = vmatpush3.msra.mxu0 %v4784_v25  ;;  %v4783_v34 = vsel %vm3432_vm8, %v4744_v33, %v4746_v18 }
0x1362   : > { %7080 = vmatprep.subr.mxu0 %v4783_v34 }
0x1363   : > { %7081 = vmatpush3.msra.mxu0 %v4783_v34 }
0x1364   : > { %7083 = vmatmul.mubr.msk.f32.vlgmr.msra.gmra.mxu0 %vm3453_vm7, %v6114_v36 }
0x1365   : > { %7085 = vmatprep.mubr.msk.f32.mxu0 %vm3453_vm7, %v6115_v37 }
0x1368   : > { %7086 = vmatmul.mubr.msk.f32.gmra.mxu0 %vm3453_vm7, %v6116_v38 }
0x136c   : > { %v4741_v47 = vpop.permute.xlu0 %4740 }
0x136d   : > { %v4736_v41 = vpop.permute.xlu1 %4735 }
0x1370   : > { %v4731_v51 = vpop.permute.xlu0 %4730 }
0x1371   : > { %v4726_v53 = vpop.permute.xlu1 %4725 }
0x1374   : > { %v4932_v50 = vpop.permute.xlu0 %4931 }
0x1375   : > { %v4927_v5 = vpop.permute.xlu1 %4926 }
0x1378   : > { %v4922_v0 = vpop.permute.xlu0 %4921 }
0x1379   : > { %v4917_v61 = vpop.permute.xlu1 %4916 }
0x1424   : > { %v7084_v40 = vpop.f32.mrf.mxu0 }
0x1425   : > { %v4887_v28 = vadd.f32 %v7084_v40, %v4731_v51  ;;  %v6143_v51 = vld [vmem:[%s9106_s18 + $0x90] sm:$0xff] }
0x1426   : > { %v4881_v42 = vpop.f32.mrf.mxu0 }
0x1427   : > { %v4882_v45 = vadd.f32 %v4881_v42, %v4726_v53  ;;  %v4901_v3 = vmax.f32 %v4887_v28, 0.0  ;;  %v6141_v28 = vld [vmem:[%s9106_s18 + $0x80] sm:$0xff]  ;;  %v6156_v53 = vld [vmem:[%s9108_s20 + $0x98] sm:$0xff] }
0x1428   : > { %v7087_v30 = vpop.f32.mrf.mxu0 }
0x1429   : > { %v4897_v43 = vadd.f32 %v7087_v30, %v4741_v47  ;;  %v4900_v55 = vmax.f32 %v4882_v45, 0.0  ;;  %v6153_v45 = vld [vmem:[%s9108_s20 + $0x80] sm:$0xff] }
0x142a   : > { %v4891_v11 = vpop.f32.mrf.mxu0 }
0x142b   : > { %v4903_v24 = vmax.f32 %v4897_v43, 0.0  ;;  %v4892_v29 = vadd.f32 %v4891_v11, %v4736_v41  ;;  %v6137_v43 = vld [vmem:[%s9105_s17 + $0x80] sm:$0xff]  ;;  %v6144_v11 = vld [vmem:[%s9106_s18 + $0x98] sm:$0xff] }
0x142d   : > { %v4902_v63 = vmax.f32 %v4892_v29, 0.0  ;;  %7088 = vmatprep.subr.mxu1 %v4903_v24  ;;  %v6155_v29 = vld [vmem:[%s9108_s20 + $0x90] sm:$0xff] }
0x142e   : > { %7089 = vmatpush3.msra.mxu1 %v4903_v24  ;;  %v6142_v24 = vld [vmem:[%s9106_s18 + $0x88] sm:$0xff] }
0x142f   : > { %7090 = vmatprep.subr.mxu1 %v4902_v63 }
0x1430   : > { %7091 = vmatpush3.msra.mxu1 %v4902_v63  ;;  %v6154_v63 = vld [vmem:[%s9108_s20 + $0x88] sm:$0xff] }
0x1431   : > { %7092 = vmatprep.subr.mxu1 %v4901_v3 }
0x1432   : > { %7093 = vmatpush3.msra.mxu1 %v4901_v3 }
0x1433   : > { %7094 = vmatprep.subr.mxu1 %v4900_v55 }
0x1434   : > { %7095 = vmatpush3.msra.mxu1 %v4900_v55 }
0x1435   : > { %7097 = vmatmul.mubr.msk.f32.vlgmr.msra.gmra.mxu1 %vm1168_vm5, %v6126_v52 }
0x1436   : > { %7099 = vmatprep.mubr.msk.f32.mxu1 %vm1168_vm5, %v6127_v57 }
0x1439   : > { %7100 = vmatmul.mubr.msk.f32.gmra.mxu1 %vm1168_vm5, %v6128_v48 }
0x143a   : > { %7126 = vmatprep.mubr.msk.f32.mxu1 %vm3453_vm7, %v6137_v43  ;;  %v6151_v43 = vld [vmem:[%s9107_s19 + $0x90] sm:$0xff] }
0x14f5   : > { %v7098_v6 = vpop.f32.mrf.mxu1 }
0x14f6   : > { %v5018_v58 = vadd.f32 %v7098_v6, %v4922_v0 }
0x14f7   : > { %v5012_v49 = vpop.f32.mrf.mxu1 }
0x14f8   : > { %v5013_v9 = vadd.f32 %v5012_v49, %v4917_v61  ;;  %v5032_v62 = vadd.f32 %v5018_v58, %v8673_v44 }
0x14f9   : > { %v7101_v59 = vpop.f32.mrf.mxu1 }
0x14fa   : > { %v5028_v60 = vadd.f32 %v7101_v59, %v4932_v50  ;;  %v5031_v16 = vadd.f32 %v5013_v9, %v8677_v31 }
0x14fb   : > { %v5022_v7 = vpop.f32.mrf.mxu1 }
0x14fc   : > { %v5034_v10 = vadd.f32 %v5028_v60, %v8667_v13  ;;  %v5023_v15 = vadd.f32 %v5022_v7, %v4927_v5  ;;  %v8811_v13 = vmul.f32 %v8798_v2, %v5032_v62  ;;  %v8816_v44 = vmul.f32 %v8798_v2, %v5031_v16 }
0x14fe   : > { %v8801_v1 = vmul.f32 %v8798_v2, %v5034_v10  ;;  %v5033_v4 = vadd.f32 %v5023_v15, %v8669_v39 }
0x1500   : > { %v8806_v46 = vmul.f32 %v8798_v2, %v5033_v4  ;;  %5049 = vrot.lane.b32.xlu0 %v8801_v1, %s9158_s5 }
0x1502   : > { %5047 = vrot.lane.b32.xlu1 %v8806_v46, %s9158_s5 }
0x1504   : > { %5045 = vrot.lane.b32.xlu0 %v8811_v13, %s9158_s5 }
0x1506   : > { %5043 = vrot.lane.b32.xlu1 %v8816_v44, %s9158_s5 }
0x1572   : > { %v5050_v39 = vpop.permute.xlu0 %5049 }
0x1573   : > { %5061 = vst.msk [vmem:[#allocation2 + $0x30] sm:$0xff] %vm768_vm1, %v5050_v39 }
0x1574   : > { %5062 = vst.msk [vmem:[#allocation2 + $0x38] sm:$0xff] %vm770_vm2, %v5050_v39  ;;  %v5048_v31 = vpop.permute.xlu1 %5047 }
0x1575   : > { %5059 = vst.msk [vmem:[#allocation2 + $0x20] sm:$0xff] %vm768_vm1, %v5048_v31 }
0x1576   : > { %5060 = vst.msk [vmem:[#allocation2 + $0x28] sm:$0xff] %vm770_vm2, %v5048_v31  ;;  %v5046_v17 = vpop.permute.xlu0 %5045 }
0x1577   : > { %5057 = vst.msk [vmem:[#allocation2 + $0x10] sm:$0xff] %vm768_vm1, %v5046_v17 }
0x1578   : > { %5058 = vst.msk [vmem:[#allocation2 + $0x18] sm:$0xff] %vm770_vm2, %v5046_v17  ;;  %v5044_v19 = vpop.permute.xlu1 %5043 }
0x1579   : > { %5055 = vst.msk [vmem:[#allocation2] sm:$0xff] %vm768_vm1, %v5044_v19 }
0x157a   : > { %5056 = vst.msk [vmem:[#allocation2 + $0x8] sm:$0xff] %vm770_vm2, %v5044_v19  ;;  %v5069_v22 = vld [vmem:[#allocation2 + $0x30] sm:$0xff] }
0x157b   : > { %v5070_v21 = vld [vmem:[#allocation2 + $0x38] sm:$0xff] }
0x157c   : > { %v5067_v12 = vld [vmem:[#allocation2 + $0x20] sm:$0xff] }
0x157d   : > { %v5068_v27 = vld [vmem:[#allocation2 + $0x28] sm:$0xff] }
0x157e   : > { %v5065_v35 = vld [vmem:[#allocation2 + $0x10] sm:$0xff] }
0x157f   : > { %v5066_v20 = vld [vmem:[#allocation2 + $0x18] sm:$0xff]  ;;  %5091 = vrot.lane.b32.xlu0 %v5065_v35, %s9187_s30 }
0x1580   : > { %5093 = vrot.lane.b32.xlu1 %v5066_v20, %s9187_s30  ;;  %v5063_v54 = vld [vmem:[#allocation2] sm:$0xff] }
0x1581   : > { %v5064_v14 = vld [vmem:[#allocation2 + $0x8] sm:$0xff] }
0x1583   : > { %5099 = vrot.lane.b32.xlu0 %v5069_v22, %s9187_s30 }
0x1584   : > { %5101 = vrot.lane.b32.xlu1 %v5070_v21, %s9187_s30 }
0x1587   : > { %5095 = vrot.lane.b32.xlu0 %v5067_v12, %s9187_s30 }
0x1588   : > { %5097 = vrot.lane.b32.xlu1 %v5068_v27, %s9187_s30 }
0x158b   : > { %5087 = vrot.lane.b32.xlu0 %v5063_v54, %s9187_s30 }
0x158c   : > { %5089 = vrot.lane.b32.xlu1 %v5064_v14, %s9187_s30 }
0x158f   : > { %5077 = vrot.lane.b32.xlu0 %v8801_v1, %s9188_s4 }
0x1590   : > { %5075 = vrot.lane.b32.xlu1 %v8806_v46, %s9188_s4 }
0x1593   : > { %5073 = vrot.lane.b32.xlu0 %v8811_v13, %s9188_s4 }
0x1594   : > { %5071 = vrot.lane.b32.xlu1 %v8816_v44, %s9188_s4 }
0x15f1   : > { %v5092_v32 = vpop.permute.xlu0 %5091 }
0x15f2   : > { %v5094_v26 = vpop.permute.xlu1 %5093 }
0x15f3   : > { %v5104_v56 = vsel %vm3758_vm9, %v5092_v32, %v5094_v26 }
0x15f5   : > { %v5100_v25 = vpop.permute.xlu0 %5099 }
0x15f6   : > { %v5102_v23 = vpop.permute.xlu1 %5101 }
0x15f7   : > { %v5106_v40 = vsel %vm3758_vm9, %v5100_v25, %v5102_v23 }
0x15f9   : > { %v5096_v33 = vpop.permute.xlu0 %5095 }
0x15fa   : > { %v5098_v18 = vpop.permute.xlu1 %5097 }
0x15fb   : > { %v5105_v41 = vsel %vm3758_vm9, %v5096_v33, %v5098_v18 }
0x15fd   : > { %v5088_v36 = vpop.permute.xlu0 %5087 }
0x15fe   : > { %v5090_v34 = vpop.permute.xlu1 %5089 }
0x15ff   : > { %v5103_v47 = vsel %vm3758_vm9, %v5088_v36, %v5090_v34 }
0x1601   : > { %v5078_v38 = vpop.permute.xlu0 %5077 }
0x1602   : > { %v5076_v37 = vpop.permute.xlu1 %5075  ;;  %5159 = vrot.lane.b32.xlu0 %v5078_v38, %s9164_s7 }
0x1603   : > { %5157 = vrot.lane.b32.xlu1 %v5076_v37, %s9164_s7 }
0x1605   : > { %v5074_v30 = vpop.permute.xlu0 %5073 }
0x1606   : > { %5165 = vrot.lane.b32.xlu0 %v5104_v56, %s9164_s7  ;;  %v5072_v42 = vpop.permute.xlu1 %5071 }
0x1607   : > { %5167 = vrot.lane.b32.xlu1 %v5094_v26, %s9164_s7 }
0x160a   : > { %5161 = vrot.lane.b32.xlu0 %v5103_v47, %s9164_s7 }
0x160b   : > { %5163 = vrot.lane.b32.xlu1 %v5090_v34, %s9164_s7 }
0x160e   : > { %5173 = vrot.lane.b32.xlu0 %v5106_v40, %s9164_s7 }
0x160f   : > { %5175 = vrot.lane.b32.xlu1 %v5102_v23, %s9164_s7 }
0x1612   : > { %5169 = vrot.lane.b32.xlu0 %v5105_v41, %s9164_s7 }
0x1613   : > { %5171 = vrot.lane.b32.xlu1 %v5098_v18, %s9164_s7 }
0x1616   : > { %5155 = vrot.lane.b32.xlu0 %v5074_v30, %s9164_s7  ;;  %v6150_v30 = vld [vmem:[%s9107_s19 + $0x88] sm:$0xff] }
0x1617   : > { %5153 = vrot.lane.b32.xlu1 %v5072_v42, %s9164_s7 }
0x161a   : > { %5149 = vrot.lane.b32.xlu0 %v5069_v22, %s9164_s7  ;;  %v6138_v22 = vld [vmem:[%s9105_s17 + $0x88] sm:$0xff] }
0x161b   : > { %5151 = vrot.lane.b32.xlu1 %v5070_v21, %s9164_s7 }
0x161e   : > { %5145 = vrot.lane.b32.xlu0 %v5067_v12, %s9164_s7  ;;  %v6140_v12 = vld [vmem:[%s9105_s17 + $0x98] sm:$0xff] }
0x161f   : > { %5147 = vrot.lane.b32.xlu1 %v5068_v27, %s9164_s7  ;;  %v6139_v27 = vld [vmem:[%s9105_s17 + $0x90] sm:$0xff] }
0x1622   : > { %5141 = vrot.lane.b32.xlu0 %v5065_v35, %s9164_s7 }
0x1623   : > { %5143 = vrot.lane.b32.xlu1 %v5066_v20, %s9164_s7 }
0x1626   : > { %5137 = vrot.lane.b32.xlu0 %v5063_v54, %s9164_s7 }
0x1627   : > { %5139 = vrot.lane.b32.xlu1 %v5064_v14, %s9164_s7  ;;  %v6149_v14 = vld [vmem:[%s9107_s19 + $0x80] sm:$0xff] }
0x1628   : > { %7140 = vmatprep.mubr.msk.f32.mxu0 %vm1168_vm5, %v6149_v14 }
0x162a   : > { %5134 = vperm.xlu0 %7238, %v6144_v11  }
0x162b   : > { %5129 = vperm.xlu1 %7237, %v6143_v51   ;;  %v6152_v51 = vld [vmem:[%s9107_s19 + $0x98] sm:$0xff] }
0x162e   : > { %5124 = vperm.xlu0 %7238, %v6142_v24  }
0x162f   : > { %5119 = vperm.xlu1 %7237, %v6141_v28  }
0x1632   : > { %5325 = vperm.xlu0 %7238, %v6156_v53  }
0x1633   : > { %5320 = vperm.xlu1 %7237, %v6155_v29  }
0x1636   : > { %5315 = vperm.xlu0 %7238, %v6154_v63  }
0x1637   : > { %5310 = vperm.xlu1 %7237, %v6153_v45  }
0x1674   : > { %v5160_v55 = vpop.permute.xlu0 %5159 }
0x1675   : > { %v5158_v3 = vpop.permute.xlu1 %5157 }
0x1678   : > { %v5166_v57 = vpop.permute.xlu0 %5165 }
0x1679   : > { %v5168_v52 = vpop.permute.xlu1 %5167 }
0x167a   : > { %v5182_v60 = vsel %vm886_vm3, %v5166_v57, %v5168_v52 }
0x167c   : > { %v5162_v50 = vpop.permute.xlu0 %5161 }
0x167d   : > { %v5164_v48 = vpop.permute.xlu1 %5163 }
0x167e   : > { %v5181_v9 = vsel %vm886_vm3, %v5162_v50, %v5164_v48 }
0x1680   : > { %v5174_v6 = vpop.permute.xlu0 %5173 }
0x1681   : > { %v5176_v5 = vpop.permute.xlu1 %5175 }
0x1682   : > { %v5184_v49 = vsel %vm886_vm3, %v5174_v6, %v5176_v5 }
0x1683   : > { %7102 = vmatprep.subr.mxu1 %v5184_v49 }
0x1684   : > { %7103 = vmatpush3.msra.mxu1 %v5184_v49  ;;  %v5170_v59 = vpop.permute.xlu0 %5169 }
0x1685   : > { %v5172_v0 = vpop.permute.xlu1 %5171 }
0x1686   : > { %v5183_v58 = vsel %vm886_vm3, %v5170_v59, %v5172_v0 }
0x1687   : > { %7104 = vmatprep.subr.mxu1 %v5183_v58 }
0x1688   : > { %7105 = vmatpush3.msra.mxu1 %v5183_v58  ;;  %v5156_v7 = vpop.permute.xlu0 %5155 }
0x1689   : > { %v5154_v61 = vpop.permute.xlu1 %5153  ;;  %7106 = vmatprep.subr.mxu1 %v5182_v60 }
0x168a   : > { %7107 = vmatpush3.msra.mxu1 %v5182_v60 }
0x168b   : > { %7108 = vmatprep.subr.mxu1 %v5181_v9 }
0x168c   : > { %7109 = vmatpush3.msra.mxu1 %v5181_v9  ;;  %v5150_v15 = vpop.permute.xlu0 %5149 }
0x168d   : > { %v5152_v10 = vpop.permute.xlu1 %5151  ;;  %7110 = vmatprep.subr.mxu1 %v5160_v55 }
0x168e   : > { %7111 = vmatpush3.msra.mxu1 %v5160_v55  ;;  %v5180_v16 = vsel %vm886_vm3, %v5150_v15, %v5152_v10 }
0x168f   : > { %7112 = vmatprep.subr.mxu1 %v5158_v3 }
0x1690   : > { %7113 = vmatpush3.msra.mxu1 %v5158_v3  ;;  %v5146_v4 = vpop.permute.xlu0 %5145 }
0x1691   : > { %v5148_v62 = vpop.permute.xlu1 %5147  ;;  %7114 = vmatprep.subr.mxu1 %v5156_v7 }
0x1692   : > { %7115 = vmatpush3.msra.mxu1 %v5156_v7  ;;  %v5179_v17 = vsel %vm886_vm3, %v5146_v4, %v5148_v62 }
0x1693   : > { %7116 = vmatprep.subr.mxu1 %v5154_v61 }
0x1694   : > { %7117 = vmatpush3.msra.mxu1 %v5154_v61  ;;  %v5142_v31 = vpop.permute.xlu0 %5141 }
0x1695   : > { %v5144_v39 = vpop.permute.xlu1 %5143  ;;  %7118 = vmatprep.subr.mxu1 %v5180_v16 }
0x1696   : > { %7119 = vmatpush3.msra.mxu1 %v5180_v16  ;;  %v5178_v19 = vsel %vm886_vm3, %v5142_v31, %v5144_v39  ;;  %v6167_v39 = vld [vmem:[%s9106_s18 + $0xb0] sm:$0xff]  ;;  %v6168_v31 = vld [vmem:[%s9106_s18 + $0xb8] sm:$0xff] }
0x1697   : > { %7120 = vmatprep.subr.mxu1 %v5179_v17 }
0x1698   : > { %7121 = vmatpush3.msra.mxu1 %v5179_v17  ;;  %v5138_v35 = vpop.permute.xlu0 %5137  ;;  %v6165_v17 = vld [vmem:[%s9106_s18 + $0xa0] sm:$0xff] }
0x1699   : > { %v5140_v20 = vpop.permute.xlu1 %5139  ;;  %7122 = vmatprep.subr.mxu1 %v5178_v19 }
0x169a   : > { %7123 = vmatpush3.msra.mxu1 %v5178_v19  ;;  %v5177_v21 = vsel %vm886_vm3, %v5138_v35, %v5140_v20  ;;  %v6166_v19 = vld [vmem:[%s9106_s18 + $0xa8] sm:$0xff]  ;;  %v6161_v20 = vld [vmem:[%s9105_s17 + $0xa0] sm:$0xff]  ;;  %v6179_v35 = vld [vmem:[%s9108_s20 + $0xb0] sm:$0xff] }
0x169b   : > { %7124 = vmatprep.subr.mxu1 %v5177_v21 }
0x169c   : > { %7125 = vmatpush3.msra.mxu1 %v5177_v21  ;;  %v6180_v21 = vld [vmem:[%s9108_s20 + $0xb8] sm:$0xff] }
0x169d   : > { %7127 = vmatmul.mubr.msk.f32.vlgmr.msra.gmra.mxu1 %vm3453_vm7, %v6138_v22  ;;  %v6177_v22 = vld [vmem:[%s9108_s20 + $0xa0] sm:$0xff] }
0x169e   : > { %7129 = vmatprep.mubr.msk.f32.mxu1 %vm3453_vm7, %v6139_v27  ;;  %v6178_v27 = vld [vmem:[%s9108_s20 + $0xa8] sm:$0xff] }
0x16a1   : > { %7130 = vmatmul.mubr.msk.f32.gmra.mxu1 %vm3453_vm7, %v6140_v12  ;;  %v6186_v12 = vld [vmem:[%s9110_s22 + $0x8] sm:$0xff] }
0x16a5   : > { %v5135_v54 = vpop.permute.xlu0 %5134 }
0x16a6   : > { %v5130_v32 = vpop.permute.xlu1 %5129 }
0x16a9   : > { %v5125_v33 = vpop.permute.xlu0 %5124 }
0x16aa   : > { %v5120_v56 = vpop.permute.xlu1 %5119 }
0x16ad   : > { %v5326_v11 = vpop.permute.xlu0 %5325 }
0x16ae   : > { %v5321_v28 = vpop.permute.xlu1 %5320 }
0x16b1   : > { %v5316_v53 = vpop.permute.xlu0 %5315 }
0x16b2   : > { %v5311_v55 = vpop.permute.xlu1 %5310 }
0x175d   : > { %v7128_v26 = vpop.f32.mrf.mxu1 }
0x175e   : > { %v5281_v36 = vadd.f32 %v7128_v26, %v5125_v33 }
0x175f   : > { %v5275_v23 = vpop.f32.mrf.mxu1 }
0x1760   : > { %v5276_v47 = vadd.f32 %v5275_v23, %v5120_v56  ;;  %v5295_v41 = vmax.f32 %v5281_v36, 0.0  ;;  %v6162_v56 = vld [vmem:[%s9105_s17 + $0xa8] sm:$0xff] }
0x1761   : > { %v7131_v25 = vpop.f32.mrf.mxu1 }
0x1762   : > { %v5291_v18 = vadd.f32 %v7131_v25, %v5135_v54  ;;  %v5294_v42 = vmax.f32 %v5276_v47, 0.0  ;;  %v6163_v47 = vld [vmem:[%s9105_s17 + $0xb0] sm:$0xff] }
0x1763   : > { %v5285_v34 = vpop.f32.mrf.mxu1 }
0x1764   : > { %v5297_v37 = vmax.f32 %v5291_v18, 0.0  ;;  %v5286_v38 = vadd.f32 %v5285_v34, %v5130_v32 }
0x1766   : > { %v5296_v40 = vmax.f32 %v5286_v38, 0.0  ;;  %7132 = vmatprep.subr.mxu0 %v5297_v37 }
0x1767   : > { %7133 = vmatpush3.msra.mxu0 %v5297_v37 }
0x1768   : > { %7134 = vmatprep.subr.mxu0 %v5296_v40 }
0x1769   : > { %7135 = vmatpush3.msra.mxu0 %v5296_v40  ;;  %v6164_v40 = vld [vmem:[%s9105_s17 + $0xb8] sm:$0xff] }
0x176a   : > { %7136 = vmatprep.subr.mxu0 %v5295_v41 }
0x176b   : > { %7137 = vmatpush3.msra.mxu0 %v5295_v41  ;;  %v6173_v41 = vld [vmem:[%s9107_s19 + $0xa0] sm:$0xff] }
0x176c   : > { %7138 = vmatprep.subr.mxu0 %v5294_v42  ;;  %7184 = vmatprep.mubr.msk.f32.mxu1 %vm1168_vm5, %v6173_v41 }
0x176d   : > { %7139 = vmatpush3.msra.mxu0 %v5294_v42 }
0x176e   : > { %7141 = vmatmul.mubr.msk.f32.vlgmr.msra.gmra.mxu0 %vm1168_vm5, %v6150_v30 }
0x176f   : > { %7143 = vmatprep.mubr.msk.f32.mxu0 %vm1168_vm5, %v6151_v43 }
0x1772   : > { %7144 = vmatmul.mubr.msk.f32.gmra.mxu0 %vm1168_vm5, %v6152_v51 }
0x1773   : > { %7170 = vmatprep.mubr.msk.f32.mxu0 %vm3453_vm7, %v6161_v20 }
0x182e   : > { %v7142_v24 = vpop.f32.mrf.mxu0 }
0x182f   : > { %v5412_v63 = vadd.f32 %v7142_v24, %v5316_v53 }
0x1830   : > { %v5406_v29 = vpop.f32.mrf.mxu0 }
0x1831   : > { %v5407_v57 = vadd.f32 %v5406_v29, %v5311_v55  ;;  %v5426_v5 = vadd.f32 %v5412_v63, %v8811_v13 }
0x1832   : > { %v7145_v45 = vpop.f32.mrf.mxu0 }
0x1833   : > { %v5422_v3 = vadd.f32 %v7145_v45, %v5326_v11  ;;  %v5425_v0 = vadd.f32 %v5407_v57, %v8816_v44  ;;  %v8947_v58 = vmul.f32 %v8798_v2, %v5426_v5  ;;  %v6175_v5 = vld [vmem:[%s9107_s19 + $0xb0] sm:$0xff] }
0x1834   : > { %v5416_v52 = vpop.f32.mrf.mxu0 }
0x1835   : > { %v5428_v48 = vadd.f32 %v5422_v3, %v8801_v1  ;;  %v5417_v50 = vadd.f32 %v5416_v52, %v5321_v28  ;;  %v8952_v1 = vmul.f32 %v8798_v2, %v5425_v0 }
0x1837   : > { %v8937_v6 = vmul.f32 %v8798_v2, %v5428_v48  ;;  %v5427_v49 = vadd.f32 %v5417_v50, %v8806_v46  ;;  %v6174_v50 = vld [vmem:[%s9107_s19 + $0xa8] sm:$0xff] }
0x1839   : > { %v8942_v59 = vmul.f32 %v8798_v2, %v5427_v49  ;;  %5443 = vrot.lane.b32.xlu0 %v8937_v6, %s9158_s5  ;;  %v6176_v49 = vld [vmem:[%s9107_s19 + $0xb8] sm:$0xff] }
0x183b   : > { %5441 = vrot.lane.b32.xlu1 %v8942_v59, %s9158_s5 }
0x183d   : > { %5439 = vrot.lane.b32.xlu0 %v8947_v58, %s9158_s5 }
0x183f   : > { %5437 = vrot.lane.b32.xlu1 %v8952_v1, %s9158_s5 }
0x18ab   : > { %v5444_v46 = vpop.permute.xlu0 %5443 }
0x18ac   : > { %5455 = vst.msk [vmem:[#allocation2 + $0x30] sm:$0xff] %vm768_vm1, %v5444_v46 }
0x18ad   : > { %5456 = vst.msk [vmem:[#allocation2 + $0x38] sm:$0xff] %vm770_vm2, %v5444_v46  ;;  %v5442_v13 = vpop.permute.xlu1 %5441 }
0x18ae   : > { %5453 = vst.msk [vmem:[#allocation2 + $0x20] sm:$0xff] %vm768_vm1, %v5442_v13 }
0x18af   : > { %5454 = vst.msk [vmem:[#allocation2 + $0x28] sm:$0xff] %vm770_vm2, %v5442_v13  ;;  %v5440_v44 = vpop.permute.xlu0 %5439 }
0x18b0   : > { %5451 = vst.msk [vmem:[#allocation2 + $0x10] sm:$0xff] %vm768_vm1, %v5440_v44 }
0x18b1   : > { %5452 = vst.msk [vmem:[#allocation2 + $0x18] sm:$0xff] %vm770_vm2, %v5440_v44  ;;  %v5438_v60 = vpop.permute.xlu1 %5437 }
0x18b2   : > { %5449 = vst.msk [vmem:[#allocation2] sm:$0xff] %vm768_vm1, %v5438_v60 }
0x18b3   : > { %5450 = vst.msk [vmem:[#allocation2 + $0x8] sm:$0xff] %vm770_vm2, %v5438_v60  ;;  %v5460_v10 = vld [vmem:[#allocation2 + $0x30] sm:$0xff] }
0x18b4   : > { %v5464_v9 = vld [vmem:[#allocation2 + $0x38] sm:$0xff] }
0x18b5   : > { %v5459_v62 = vld [vmem:[#allocation2 + $0x20] sm:$0xff] }
0x18b6   : > { %v5463_v15 = vld [vmem:[#allocation2 + $0x28] sm:$0xff] }
0x18b7   : > { %v8966_v7 = vld [vmem:[#allocation2 + $0x10] sm:$0xff] }
0x18b8   : > { %v5462_v61 = vld [vmem:[#allocation2 + $0x18] sm:$0xff]  ;;  %5477 = vrot.lane.b32.xlu0 %v8966_v7, %s9166_s28 }
0x18b9   : > { %5479 = vrot.lane.b32.xlu1 %v5462_v61, %s9166_s28  ;;  %v5457_v16 = vld [vmem:[#allocation2] sm:$0xff] }
0x18ba   : > { %v5461_v4 = vld [vmem:[#allocation2 + $0x8] sm:$0xff] }
0x18bc   : > { %5485 = vrot.lane.b32.xlu0 %v5460_v10, %s9166_s28 }
0x18bd   : > { %5487 = vrot.lane.b32.xlu1 %v5464_v9, %s9166_s28 }
0x18c0   : > { %5481 = vrot.lane.b32.xlu0 %v5459_v62, %s9166_s28 }
0x18c1   : > { %5483 = vrot.lane.b32.xlu1 %v5463_v15, %s9166_s28 }
0x18c4   : > { %5473 = vrot.lane.b32.xlu0 %v5457_v16, %s9166_s28 }
0x18c5   : > { %5475 = vrot.lane.b32.xlu1 %v5461_v4, %s9166_s28 }
0x18c8   : > { %5524 = vperm.xlu0 %7238, %v6168_v31  }
0x18c9   : > { %5519 = vperm.xlu1 %7237, %v6167_v39  }
0x18cc   : > { %5514 = vperm.xlu0 %7238, %v6166_v19  }
0x18cd   : > { %5509 = vperm.xlu1 %7237, %v6165_v17  }
0x18d0   : > { %5655 = vperm.xlu0 %7238, %v6180_v21  }
0x18d1   : > { %5650 = vperm.xlu1 %7237, %v6179_v35  }
0x18d4   : > { %5645 = vperm.xlu0 %7238, %v6178_v27  }
0x18d5   : > { %5640 = vperm.xlu1 %7237, %v6177_v22  }
0x18d8   : > { %5769 = vperm.xlu0 %7238, %v6186_v12   ;;  %v5887_v12 = vld [vmem:[%s8651_s29] sm:$0xff] (%p7425_p4) }
0x18d9   : > { %5888 = vst [vmem:[%s5856_s27] sm:$0xff] (%p7425_p4), %v5887_v12 }
0x192a   : > { %v5478_v54 = vpop.permute.xlu0 %5477 }
0x192b   : > { %v5480_v14 = vpop.permute.xlu1 %5479 }
0x192c   : > { %v5490_v34 = vsel %vm1358_vm6, %v5478_v54, %v5480_v14 }
0x192e   : > { %v5486_v32 = vpop.permute.xlu0 %5485 }
0x192f   : > { %v5488_v26 = vpop.permute.xlu1 %5487 }
0x1930   : > { %v5492_v23 = vsel %vm1358_vm6, %v5486_v32, %v5488_v26 }
0x1931   : > { %7146 = vmatprep.subr.mxu0 %v5492_v23 }
0x1932   : > { %7147 = vmatpush3.msra.mxu0 %v5492_v23  ;;  %v5482_v18 = vpop.permute.xlu0 %5481 }
0x1933   : > { %v5484_v25 = vpop.permute.xlu1 %5483 }
0x1934   : > { %v5491_v33 = vsel %vm1358_vm6, %v5482_v18, %v5484_v25 }
0x1935   : > { %7148 = vmatprep.subr.mxu0 %v5491_v33 }
0x1936   : > { %7149 = vmatpush3.msra.mxu0 %v5491_v33  ;;  %v5474_v37 = vpop.permute.xlu0 %5473 }
0x1937   : > { %v5476_v36 = vpop.permute.xlu1 %5475  ;;  %7150 = vmatprep.subr.mxu0 %v5490_v34 }
0x1938   : > { %7151 = vmatpush3.msra.mxu0 %v5490_v34  ;;  %v5489_v38 = vsel %vm1358_vm6, %v5474_v37, %v5476_v36 }
0x1939   : > { %7152 = vmatprep.subr.mxu0 %v5489_v38 }
0x193a   : > { %7153 = vmatpush3.msra.mxu0 %v5489_v38 }
0x193b   : > { %7154 = vmatprep.subr.mxu0 %v8937_v6 }
0x193c   : > { %7155 = vmatpush3.msra.mxu0 %v8937_v6 }
0x193d   : > { %7156 = vmatprep.subr.mxu0 %v8942_v59 }
0x193e   : > { %7157 = vmatpush3.msra.mxu0 %v8942_v59 }
0x193f   : > { %7158 = vmatprep.subr.mxu0 %v8947_v58 }
0x1940   : > { %7159 = vmatpush3.msra.mxu0 %v8947_v58 }
0x1941   : > { %7160 = vmatprep.subr.mxu0 %v8952_v1 }
0x1942   : > { %7161 = vmatpush3.msra.mxu0 %v8952_v1 }
0x1943   : > { %7162 = vmatprep.subr.mxu0 %v5460_v10  ;;  %v5525_v42 = vpop.permute.xlu0 %5524 }
0x1944   : > { %7163 = vmatpush3.msra.mxu0 %v5460_v10  ;;  %v5520_v43 = vpop.permute.xlu1 %5519 }
0x1945   : > { %7164 = vmatprep.subr.mxu0 %v5459_v62 }
0x1946   : > { %7165 = vmatpush3.msra.mxu0 %v5459_v62 }
0x1947   : > { %7166 = vmatprep.subr.mxu0 %v8966_v7  ;;  %v5515_v24 = vpop.permute.xlu0 %5514 }
0x1948   : > { %7167 = vmatpush3.msra.mxu0 %v8966_v7  ;;  %v5510_v3 = vpop.permute.xlu1 %5509 }
0x1949   : > { %7168 = vmatprep.subr.mxu0 %v5457_v16 }
0x194a   : > { %7169 = vmatpush3.msra.mxu0 %v5457_v16 }
0x194b   : > { %7171 = vmatmul.mubr.msk.f32.vlgmr.msra.gmra.mxu0 %vm3453_vm7, %v6162_v56  ;;  %v5656_v0 = vpop.permute.xlu0 %5655 }
0x194c   : > { %7173 = vmatprep.mubr.msk.f32.mxu0 %vm3453_vm7, %v6163_v47  ;;  %v5651_v46 = vpop.permute.xlu1 %5650 }
0x194f   : > { %7174 = vmatmul.mubr.msk.f32.gmra.mxu0 %vm3453_vm7, %v6164_v40  ;;  %v5646_v60 = vpop.permute.xlu0 %5645 }
0x1950   : > { %v5641_v10 = vpop.permute.xlu1 %5640 }
0x1a0b   : > { %v7172_v30 = vpop.f32.mrf.mxu0 }
0x1a0c   : > { %v5611_v53 = vadd.f32 %v7172_v30, %v5515_v24 }
0x1a0d   : > { %v5605_v51 = vpop.f32.mrf.mxu0 }
0x1a0e   : > { %v5606_v55 = vadd.f32 %v5605_v51, %v5510_v3  ;;  %v5625_v57 = vmax.f32 %v5611_v53, 0.0 }
0x1a0f   : > { %v7175_v11 = vpop.f32.mrf.mxu0 }
0x1a10   : > { %v5621_v28 = vadd.f32 %v7175_v11, %v5525_v42  ;;  %v5624_v48 = vmax.f32 %v5606_v55, 0.0 }
0x1a11   : > { %v5615_v29 = vpop.f32.mrf.mxu0 }
0x1a12   : > { %v5627_v45 = vmax.f32 %v5621_v28, 0.0  ;;  %v5616_v63 = vadd.f32 %v5615_v29, %v5520_v43 }
0x1a14   : > { %v5626_v52 = vmax.f32 %v5616_v63, 0.0  ;;  %7176 = vmatprep.subr.mxu1 %v5627_v45 }
0x1a15   : > { %7177 = vmatpush3.msra.mxu1 %v5627_v45 }
0x1a16   : > { %7178 = vmatprep.subr.mxu1 %v5626_v52 }
0x1a17   : > { %7179 = vmatpush3.msra.mxu1 %v5626_v52 }
0x1a18   : > { %7180 = vmatprep.subr.mxu1 %v5625_v57 }
0x1a19   : > { %7181 = vmatpush3.msra.mxu1 %v5625_v57 }
0x1a1a   : > { %7182 = vmatprep.subr.mxu1 %v5624_v48 }
0x1a1b   : > { %7183 = vmatpush3.msra.mxu1 %v5624_v48 }
0x1a1c   : > { %7185 = vmatmul.mubr.msk.f32.vlgmr.msra.gmra.mxu1 %vm1168_vm5, %v6174_v50  ;;  %7190 = vmatprep.subr.mxu1 %v9184_v8 }
0x1a1d   : > { %7187 = vmatprep.mubr.msk.f32.mxu1 %vm1168_vm5, %v6175_v5 }
0x1a20   : > { %7188 = vmatmul.mubr.msk.f32.gmra.mxu1 %vm1168_vm5, %v6176_v49 }
0x1a21   : > { %7198 = vmatprep.mubr.msk.f32.mxu1 %vm7278_vm10, %v9184_v8 }
0x1adc   : > { %v7186_v13 = vpop.f32.mrf.mxu1 }
0x1add   : > { %v5742_v7 = vadd.f32 %v7186_v13, %v5646_v60 }
0x1ade   : > { %v5736_v44 = vpop.f32.mrf.mxu1 }
0x1adf   : > { %v5737_v62 = vadd.f32 %v5736_v44, %v5641_v10  ;;  %v5756_v39 = vadd.f32 %v5742_v7, %v8947_v58  ;;  %v5770_v58 = vpop.permute.xlu0 %5769 }
0x1ae0   : > { %v7189_v61 = vpop.f32.mrf.mxu1 }
0x1ae1   : > { %v5752_v9 = vadd.f32 %v7189_v61, %v5656_v0  ;;  %v5755_v19 = vadd.f32 %v5737_v62, %v8952_v1  ;;  %v5760_v35 = vmul.f32 %v8798_v2, %v5756_v39 }
0x1ae2   : > { %v5746_v15 = vpop.f32.mrf.mxu1 }
0x1ae3   : > { %v5758_v4 = vadd.f32 %v5752_v9, %v8937_v6  ;;  %v5747_v16 = vadd.f32 %v5746_v15, %v5651_v46  ;;  %v5759_v6 = vmul.f32 %v8798_v2, %v5755_v19 }
0x1ae5   : > { %v5762_v31 = vmul.f32 %v8798_v2, %v5758_v4  ;;  %v5757_v17 = vadd.f32 %v5747_v16, %v8942_v59  ;;  %v6185_v59 = vld [vmem:[%s9109_s21 + $0x8] sm:$0xff] }
0x1ae7   : > { %v5761_v20 = vmul.f32 %v8798_v2, %v5757_v17  ;;  %7191 = vmatpush3.msra.mxu1 %v5762_v31 }
0x1ae8   : > { %7192 = vmatprep.subr.mxu1 %v9184_v8 }
0x1ae9   : > { %7193 = vmatpush3.msra.mxu1 %v5761_v20 }
0x1aea   : > { %7194 = vmatprep.subr.mxu1 %v9184_v8 }
0x1aeb   : > { %7195 = vmatpush3.msra.mxu1 %v5760_v35 }
0x1aec   : > { %7196 = vmatprep.subr.mxu1 %v9184_v8 }
0x1aed   : > { %7197 = vmatpush3.msra.mxu1 %v5759_v6 }
0x1aee   : > { %7199 = vmatmul.mubr.msk.f32.vlgmr.msra.gmra.mxu1 %vm1168_vm5, %v6185_v59 }
0x1bae   : > { %v5841_v1 = vpop.f32.mrf.mxu1 }
0x1baf   : > { %v5842_v21 = vadd.f32 %v5841_v1, %v5770_v58  ;;  %5854 = sbr.rel (!%p7425_p4) target bundleno = 7100 (0x1bbc), region = 116 }
0x1bb0   : > { %v7200_v22 = vpop.f32.mrf.mxu1 }
0x1bb1   : > { %v5845_v27 = vmul.f32 %v8798_v2, %v5842_v21 }
0x1bb3   : > { %6188 = vst [vmem:[%s8651_s29 + $0x8] sm:$0xff] %v5845_v27 }
0x1bba   : > { %v5889_v14 = vld [vmem:[%s8651_s29 + $0x8] sm:$0xff] }
0x1bbb   : > { %5890 = vst [vmem:[%s5856_s27 + $0x10] sm:$0xff] %v5889_v14 }
0x1bbc PF: > { %s9190_s24 = sld [smem:[#allocation5_spill]] }
0x1bbd   : > { %s9191_s4 = sld [smem:[#allocation4_spill]] }
0x1bbe   : > { %s9192_s30 = sld [smem:[#allocation6_spill]] }
0x1bc2   : > { %p30_p8 = scmp.ge.s32.totalorder %s9190_s24, 4  }
0x1bc4   :  { %32 = sbr.rel (!%p30_p8) target bundleno = 14 (0xe), region = 220 }

</bundles_post_ra>
